<compile_context>
chip_gen: v5e
topology: v5e:2x2
jax: 0.10.0
libtpu: 0.0.40
codegen_flags: <defaults>
</compile_context>

<pallas_src>
import numpy as np
import jax
import jax.numpy as jnp
from jax import lax
from jax.experimental import pallas as pl
from jax.experimental.pallas import tpu as pltpu


def _round_up(n, m):
    return ((n + m - 1) // m) * m


# ------------------------------ fused kernel ------------------------------- #

def _lenet5_kernel(x_ref, a1_ref, bb1_ref, q1_ref, b2w_ref, bb2_ref,
                   gw1_ref, bfc1_ref, fc2w_ref, bfc2_ref, fc3w_ref, bfc3_ref,
                   o_ref, xp_ref, p1_ref):
    f32 = jnp.float32
    TB = x_ref.shape[1]                                    # batch tile (static)

    # ---- in-kernel zero padding (height; width pad is folded into A1) ----
    # xp rows are ordered (padded_row, batch): row = h*TB + b.
    xp_ref[0:2 * TB, :] = jnp.zeros((2 * TB, 28), f32)
    for h in range(28):
        xp_ref[(2 + h) * TB:(3 + h) * TB, :] = x_ref[h]    # [TB, 28]
    xp_ref[30 * TB:32 * TB, :] = jnp.zeros((2 * TB, 28), f32)

    # ---- conv1 (5x5, pad 2) as 5 banded MXU matmuls: cols = (ow, co) ----
    acc1 = jnp.zeros((28 * TB, 168), f32)
    for kh in range(5):
        acc1 = acc1 + jnp.dot(xp_ref[kh * TB:(kh + 28) * TB, :], a1_ref[kh],
                              preferred_element_type=f32)
    relu1 = jnp.maximum(acc1 + bb1_ref[...], 0.0)          # [28*TB, 168]

    # ---- avg_pool 2x2: width half via one matmul, height half via pair avgs ----
    t = jnp.dot(relu1, q1_ref[...], preferred_element_type=f32)   # [28*TB, 84]
    for ph in range(14):
        p1_ref[ph * TB:(ph + 1) * TB, :] = 0.5 * (
            t[(2 * ph) * TB:(2 * ph + 1) * TB, :]
            + t[(2 * ph + 1) * TB:(2 * ph + 2) * TB, :])

    # ---- conv2 (5x5, valid) as 5 banded MXU matmuls: cols = (ow, co) ----
    acc2 = jnp.zeros((10 * TB, 160), f32)
    for kh in range(5):
        acc2 = acc2 + jnp.dot(p1_ref[kh * TB:(kh + 10) * TB, :], b2w_ref[kh],
                              preferred_element_type=f32)
    relu2 = jnp.maximum(acc2 + bb2_ref[...], 0.0)          # [10*TB, 160]

    # ---- avg_pool 2x2 + NCHW flatten + fc1, fused into 10 matmuls ----
    h1 = jnp.zeros((TB, 120), f32)
    for oh in range(10):
        h1 = h1 + jnp.dot(relu2[oh * TB:(oh + 1) * TB, :], gw1_ref[oh],
                          preferred_element_type=f32)
    h1 = jnp.maximum(h1 + bfc1_ref[...], 0.0)              # [TB, 120]

    # ---- fc2 + ReLU ----
    h2 = jnp.maximum(jnp.dot(h1, fc2w_ref[...], preferred_element_type=f32)
                     + bfc2_ref[...], 0.0)                 # [TB, 84]

    # ---- fc3 (padded to 128 lanes) + fused log_softmax ----
    logits = (jnp.dot(h2, fc3w_ref[...], preferred_element_type=f32)
              + bfc3_ref[...])                             # [TB, 128]
    m = jnp.max(logits, axis=-1, keepdims=True)
    s = logits - m
    lse = jnp.log(jnp.sum(jnp.exp(s), axis=-1, keepdims=True))
    o_ref[...] = s - lse                                   # lane-dense store


# ---------------------------- host-side wrapper ----------------------------- #

def _pinned(arr):
    """Full-array block, same block every grid step (weights stay resident)."""
    shape = tuple(int(d) for d in arr.shape)
    return pl.BlockSpec(shape, lambda i, _r=len(shape): (0,) * _r)


def prepare_params(params):
    """One-time host re-layout of the PyTorch-style parameters."""
    w1 = np.asarray(params["conv1_w"], np.float32)     # [6,1,5,5]
    b1 = np.asarray(params["conv1_b"], np.float32)
    w2 = np.asarray(params["conv2_w"], np.float32)     # [16,6,5,5]
    b2 = np.asarray(params["conv2_b"], np.float32)
    fc1w = np.asarray(params["fc1_w"], np.float32)     # [120,400]
    fc1b = np.asarray(params["fc1_b"], np.float32)
    fc2w = np.asarray(params["fc2_w"], np.float32)     # [84,120]
    fc2b = np.asarray(params["fc2_b"], np.float32)
    fc3w = np.asarray(params["fc3_w"], np.float32)     # [10,84]
    fc3b = np.asarray(params["fc3_b"], np.float32)

    # conv1 banded blocks: A1[kh, iw, ow*6+co] = w1[co,0,kh, iw-ow+2]
    A1 = np.zeros((5, 28, 168), np.float32)
    for kh in range(5):
        for ow in range(28):
            for kw in range(5):
                iw = ow + kw - 2
                if 0 <= iw < 28:
                    A1[kh, iw, ow * 6:(ow + 1) * 6] = w1[:, 0, kh, kw]
    bb1 = np.tile(b1, 28).reshape(1, 168)

    # pool1 width-halving matmul (0.5 per tap), channel-minor layout preserved.
    Q1 = np.zeros((168, 84), np.float32)
    for ow in range(28):
        for c in range(6):
            Q1[ow * 6 + c, (ow // 2) * 6 + c] = 0.5

    # conv2 banded blocks: B2[kh, iw*6+ci, ow*16+co] = w2[co,ci,kh, iw-ow]
    B2 = np.zeros((5, 84, 160), np.float32)
    for kh in range(5):
        for ow in range(10):
            for kw in range(5):
                iw = ow + kw
                for ci in range(6):
                    B2[kh, iw * 6 + ci, ow * 16:(ow + 1) * 16] = w2[:, ci, kh, kw]
    bb2 = np.tile(b2, 10).reshape(1, 160)

    # pool2 + NCHW flatten composed into fc1: GW1[oh, ow*16+co, n]
    GW1 = np.zeros((10, 160, 120), np.float32)
    for oh in range(10):
        for ow in range(10):
            for co in range(16):
                GW1[oh, ow * 16 + co, :] = (
                    0.25 * fc1w[:, co * 25 + (oh // 2) * 5 + (ow // 2)])

    fc3w_pad = np.zeros((84, 128), np.float32)
    fc3w_pad[:, :10] = fc3w.T
    bfc3_pad = np.full((1, 128), -1e9, np.float32)     # padded cols: exp() == 0
    bfc3_pad[0, :10] = fc3b

    return {
        "A1": jnp.asarray(A1), "bb1": jnp.asarray(bb1), "Q1": jnp.asarray(Q1),
        "B2": jnp.asarray(B2), "bb2": jnp.asarray(bb2), "GW1": jnp.asarray(GW1),
        "fc1_b": jnp.asarray(fc1b.reshape(1, 120)),
        "fc2_w": jnp.asarray(fc2w.T.copy()),
        "fc2_b": jnp.asarray(fc2b.reshape(1, 84)),
        "fc3_w": jnp.asarray(fc3w_pad),
        "fc3_b": jnp.asarray(bfc3_pad),
    }


def lenet5_forward(kp, x, tile_batch=128):
    """x: [B, 1, 28, 28] (NCHW) or [B, 28, 28] float32. Returns [B, 10] log-probs."""
    x2 = x[:, 0] if x.ndim == 4 else x
    B = x2.shape[0]
    TB = min(tile_batch, _round_up(B, 8))               # batch tile, multiple of 8
    B_pad = _round_up(B, TB)
    if B_pad != B:
        x2 = jnp.pad(x2, ((0, B_pad - B), (0, 0), (0, 0)))
    xt = jnp.transpose(x2, (1, 0, 2))                   # [28, B_pad, 28]
    nt = B_pad // TB

    operands = [xt, kp["A1"], kp["bb1"], kp["Q1"], kp["B2"], kp["bb2"],
                kp["GW1"], kp["fc1_b"], kp["fc2_w"], kp["fc2_b"],
                kp["fc3_w"], kp["fc3_b"]]
    in_specs = [pl.BlockSpec((28, TB, 28), lambda i: (0, i, 0))]
    in_specs += [_pinned(op) for op in operands[1:]]

    out = pl.pallas_call(
        _lenet5_kernel,
        out_shape=jax.ShapeDtypeStruct((B_pad, 128), jnp.float32),
        grid=(nt,),
        in_specs=in_specs,
        out_specs=pl.BlockSpec((TB, 128), lambda i: (i, 0)),
        scratch_shapes=[pltpu.VMEM((32 * TB, 28), jnp.float32),   # padded input
                        pltpu.VMEM((14 * TB, 84), jnp.float32)],  # pooled conv1
        compiler_params=pltpu.CompilerParams(
            dimension_semantics=("parallel",),
            vmem_limit_bytes=32 * 1024 * 1024),
    )(*operands)
    return out[:B, :10]


# ------------------------------- parameters --------------------------------- #

def init_params(key):
    """Deterministic PyTorch-style uniform(-1/sqrt(fan_in), 1/sqrt(fan_in))."""
    def u(k, shape, fan_in):
        bound = 1.0 / np.sqrt(fan_in)
        return jax.random.uniform(k, shape, jnp.float32, -bound, bound)
    ks = jax.random.split(key, 10)
    return {
        "conv1_w": u(ks[0], (6, 1, 5, 5), 1 * 5 * 5),
        "conv1_b": u(ks[1], (6,), 1 * 5 * 5),
        "conv2_w": u(ks[2], (16, 6, 5, 5), 6 * 5 * 5),
        "conv2_b": u(ks[3], (16,), 6 * 5 * 5),
        "fc1_w":   u(ks[4], (120, 400), 400),
        "fc1_b":   u(ks[5], (120,), 400),
        "fc2_w":   u(ks[6], (84, 120), 120),
        "fc2_b":   u(ks[7], (84,), 120),
        "fc3_w":   u(ks[8], (10, 84), 84),
        "fc3_b":   u(ks[9], (10,), 84),
    }


# ------------------------------- reference ---------------------------------- #

def reference_forward(params, x):
    """Pure-JAX (XLA) reference of the same math for a correctness check."""
    hp = jax.lax.Precision.HIGHEST
    y = lax.conv_general_dilated(x, params["conv1_w"], (1, 1), ((2, 2), (2, 2)),
                                 dimension_numbers=("NCHW", "OIHW", "NCHW"),
                                 precision=hp)
    y = jnp.maximum(y + params["conv1_b"][None, :, None, None], 0.0)
    y = lax.reduce_window(y, 0.0, lax.add, (1, 1, 2, 2), (1, 1, 2, 2), "VALID") * 0.25
    y = lax.conv_general_dilated(y, params["conv2_w"], (1, 1), ((0, 0), (0, 0)),
                                 dimension_numbers=("NCHW", "OIHW", "NCHW"),
                                 precision=hp)
    y = jnp.maximum(y + params["conv2_b"][None, :, None, None], 0.0)
    y = lax.reduce_window(y, 0.0, lax.add, (1, 1, 2, 2), (1, 1, 2, 2), "VALID") * 0.25
    feat = y.reshape(y.shape[0], -1)
    h = jnp.maximum(jnp.dot(feat, params["fc1_w"].T, precision=hp) + params["fc1_b"], 0.0)
    h = jnp.maximum(jnp.dot(h, params["fc2_w"].T, precision=hp) + params["fc2_b"], 0.0)
    logits = jnp.dot(h, params["fc3_w"].T, precision=hp) + params["fc3_b"]
    return jax.nn.log_softmax(logits, axis=1)


if __name__ == "__main__":
    key = jax.random.PRNGKey(0)
    pkey, xkey = jax.random.split(key)
    params = init_params(pkey)
    kparams = prepare_params(params)                 # one-time weight re-layout
    x = jax.random.normal(xkey, (2, 1, 28, 28), jnp.float32)  # NCHW, MNIST-sized

    fwd = jax.jit(lenet5_forward)
    out = jax.block_until_ready(fwd(kparams, x))

    ref = reference_forward(params, x)
    assert out.shape == (2, 10)
    assert bool(jnp.allclose(out, ref, atol=2e-3, rtol=2e-3)), "mismatch vs reference"
    print("KERNEL_OK")
</pallas_src>

<mosaic_0001>
module attributes {stable_mosaic.version = 11 : i64} {
  func.func @_lenet5_kernel(%arg0: i32, %arg1: memref<28x8x28xf32, #tpu.memory_space<vmem>>, %arg2: memref<5x28x168xf32, #tpu.memory_space<vmem>>, %arg3: memref<1x168xf32, #tpu.memory_space<vmem>>, %arg4: memref<168x84xf32, #tpu.memory_space<vmem>>, %arg5: memref<5x84x160xf32, #tpu.memory_space<vmem>>, %arg6: memref<1x160xf32, #tpu.memory_space<vmem>>, %arg7: memref<10x160x120xf32, #tpu.memory_space<vmem>>, %arg8: memref<1x120xf32, #tpu.memory_space<vmem>>, %arg9: memref<120x84xf32, #tpu.memory_space<vmem>>, %arg10: memref<1x84xf32, #tpu.memory_space<vmem>>, %arg11: memref<84x128xf32, #tpu.memory_space<vmem>>, %arg12: memref<1x128xf32, #tpu.memory_space<vmem>>, %arg13: memref<8x128xf32, #tpu.memory_space<vmem>>, %arg14: memref<256x28xf32, #tpu.memory_space<vmem>>, %arg15: memref<112x84xf32, #tpu.memory_space<vmem>>) attributes {dimension_semantics = [#tpu.dimension_semantics<parallel>], iteration_bounds = array<i64: 1>, scalar_prefetch = 0 : i64, scratch_operands = 2 : i64, tpu.core_type = #tpu.core_type<tc>, window_params = [{transform_indices = @transform_0, window_bounds = array<i64: 28, 8, 28>}, {pipeline_mode = #tpu.pipeline_mode<synchronous>, transform_indices = @transform_1, window_bounds = array<i64: 5, 28, 168>}, {pipeline_mode = #tpu.pipeline_mode<synchronous>, transform_indices = @transform_2, window_bounds = array<i64: 1, 168>}, {pipeline_mode = #tpu.pipeline_mode<synchronous>, transform_indices = @transform_3, window_bounds = array<i64: 168, 84>}, {pipeline_mode = #tpu.pipeline_mode<synchronous>, transform_indices = @transform_4, window_bounds = array<i64: 5, 84, 160>}, {pipeline_mode = #tpu.pipeline_mode<synchronous>, transform_indices = @transform_5, window_bounds = array<i64: 1, 160>}, {pipeline_mode = #tpu.pipeline_mode<synchronous>, transform_indices = @transform_6, window_bounds = array<i64: 10, 160, 120>}, {pipeline_mode = #tpu.pipeline_mode<synchronous>, transform_indices = @transform_7, window_bounds = array<i64: 1, 120>}, {pipeline_mode = #tpu.pipeline_mode<synchronous>, transform_indices = @transform_8, window_bounds = array<i64: 120, 84>}, {pipeline_mode = #tpu.pipeline_mode<synchronous>, transform_indices = @transform_9, window_bounds = array<i64: 1, 84>}, {pipeline_mode = #tpu.pipeline_mode<synchronous>, transform_indices = @transform_10, window_bounds = array<i64: 84, 128>}, {pipeline_mode = #tpu.pipeline_mode<synchronous>, transform_indices = @transform_11, window_bounds = array<i64: 1, 128>}, {transform_indices = @transform_12, window_bounds = array<i64: 8, 128>}]} {
    %cst = arith.constant 0.000000e+00 : f32
    %0 = vector.broadcast %cst : f32 to vector<16x28xf32>
    %c0 = arith.constant 0 : index
    %c0_0 = arith.constant 0 : index
    %1 = vector.load %arg14[%c0, %c0_0] : memref<256x28xf32, #tpu.memory_space<vmem>>, vector<16x28xf32>
    tpu.vector_store %arg14[%c0, %c0_0], %0 {strides = array<i32>} : memref<256x28xf32, #tpu.memory_space<vmem>>, vector<16x28xf32>,
    %c0_1 = arith.constant 0 : index
    %c0_2 = arith.constant 0 : index
    %c0_3 = arith.constant 0 : index
    %2 = vector.load %arg1[%c0_1, %c0_2, %c0_3] : memref<28x8x28xf32, #tpu.memory_space<vmem>>, vector<1x8x28xf32>
    %3 = vector.shape_cast %2 : vector<1x8x28xf32> to vector<8x28xf32>
    %c16 = arith.constant 16 : index
    %c0_4 = arith.constant 0 : index
    %4 = vector.load %arg14[%c16, %c0_4] : memref<256x28xf32, #tpu.memory_space<vmem>>, vector<8x28xf32>
    tpu.vector_store %arg14[%c16, %c0_4], %3 {strides = array<i32>} : memref<256x28xf32, #tpu.memory_space<vmem>>, vector<8x28xf32>,
    %c1 = arith.constant 1 : index
    %c0_5 = arith.constant 0 : index
    %c0_6 = arith.constant 0 : index
    %5 = vector.load %arg1[%c1, %c0_5, %c0_6] : memref<28x8x28xf32, #tpu.memory_space<vmem>>, vector<1x8x28xf32>
    %6 = vector.shape_cast %5 : vector<1x8x28xf32> to vector<8x28xf32>
    %c24 = arith.constant 24 : index
    %c0_7 = arith.constant 0 : index
    %7 = vector.load %arg14[%c24, %c0_7] : memref<256x28xf32, #tpu.memory_space<vmem>>, vector<8x28xf32>
    tpu.vector_store %arg14[%c24, %c0_7], %6 {strides = array<i32>} : memref<256x28xf32, #tpu.memory_space<vmem>>, vector<8x28xf32>,
    %c2 = arith.constant 2 : index
    %c0_8 = arith.constant 0 : index
    %c0_9 = arith.constant 0 : index
    %8 = vector.load %arg1[%c2, %c0_8, %c0_9] : memref<28x8x28xf32, #tpu.memory_space<vmem>>, vector<1x8x28xf32>
    %9 = vector.shape_cast %8 : vector<1x8x28xf32> to vector<8x28xf32>
    %c32 = arith.constant 32 : index
    %c0_10 = arith.constant 0 : index
    %10 = vector.load %arg14[%c32, %c0_10] : memref<256x28xf32, #tpu.memory_space<vmem>>, vector<8x28xf32>
    tpu.vector_store %arg14[%c32, %c0_10], %9 {strides = array<i32>} : memref<256x28xf32, #tpu.memory_space<vmem>>, vector<8x28xf32>,
    %c3 = arith.constant 3 : index
    %c0_11 = arith.constant 0 : index
    %c0_12 = arith.constant 0 : index
    %11 = vector.load %arg1[%c3, %c0_11, %c0_12] : memref<28x8x28xf32, #tpu.memory_space<vmem>>, vector<1x8x28xf32>
    %12 = vector.shape_cast %11 : vector<1x8x28xf32> to vector<8x28xf32>
    %c40 = arith.constant 40 : index
    %c0_13 = arith.constant 0 : index
    %13 = vector.load %arg14[%c40, %c0_13] : memref<256x28xf32, #tpu.memory_space<vmem>>, vector<8x28xf32>
    tpu.vector_store %arg14[%c40, %c0_13], %12 {strides = array<i32>} : memref<256x28xf32, #tpu.memory_space<vmem>>, vector<8x28xf32>,
    %c4 = arith.constant 4 : index
    %c0_14 = arith.constant 0 : index
    %c0_15 = arith.constant 0 : index
    %14 = vector.load %arg1[%c4, %c0_14, %c0_15] : memref<28x8x28xf32, #tpu.memory_space<vmem>>, vector<1x8x28xf32>
    %15 = vector.shape_cast %14 : vector<1x8x28xf32> to vector<8x28xf32>
    %c48 = arith.constant 48 : index
    %c0_16 = arith.constant 0 : index
    %16 = vector.load %arg14[%c48, %c0_16] : memref<256x28xf32, #tpu.memory_space<vmem>>, vector<8x28xf32>
    tpu.vector_store %arg14[%c48, %c0_16], %15 {strides = array<i32>} : memref<256x28xf32, #tpu.memory_space<vmem>>, vector<8x28xf32>,
    %c5 = arith.constant 5 : index
    %c0_17 = arith.constant 0 : index
    %c0_18 = arith.constant 0 : index
    %17 = vector.load %arg1[%c5, %c0_17, %c0_18] : memref<28x8x28xf32, #tpu.memory_space<vmem>>, vector<1x8x28xf32>
    %18 = vector.shape_cast %17 : vector<1x8x28xf32> to vector<8x28xf32>
    %c56 = arith.constant 56 : index
    %c0_19 = arith.constant 0 : index
    %19 = vector.load %arg14[%c56, %c0_19] : memref<256x28xf32, #tpu.memory_space<vmem>>, vector<8x28xf32>
    tpu.vector_store %arg14[%c56, %c0_19], %18 {strides = array<i32>} : memref<256x28xf32, #tpu.memory_space<vmem>>, vector<8x28xf32>,
    %c6 = arith.constant 6 : index
    %c0_20 = arith.constant 0 : index
    %c0_21 = arith.constant 0 : index
    %20 = vector.load %arg1[%c6, %c0_20, %c0_21] : memref<28x8x28xf32, #tpu.memory_space<vmem>>, vector<1x8x28xf32>
    %21 = vector.shape_cast %20 : vector<1x8x28xf32> to vector<8x28xf32>
    %c64 = arith.constant 64 : index
    %c0_22 = arith.constant 0 : index
    %22 = vector.load %arg14[%c64, %c0_22] : memref<256x28xf32, #tpu.memory_space<vmem>>, vector<8x28xf32>
    tpu.vector_store %arg14[%c64, %c0_22], %21 {strides = array<i32>} : memref<256x28xf32, #tpu.memory_space<vmem>>, vector<8x28xf32>,
    %c7 = arith.constant 7 : index
    %c0_23 = arith.constant 0 : index
    %c0_24 = arith.constant 0 : index
    %23 = vector.load %arg1[%c7, %c0_23, %c0_24] : memref<28x8x28xf32, #tpu.memory_space<vmem>>, vector<1x8x28xf32>
    %24 = vector.shape_cast %23 : vector<1x8x28xf32> to vector<8x28xf32>
    %c72 = arith.constant 72 : index
    %c0_25 = arith.constant 0 : index
    %25 = vector.load %arg14[%c72, %c0_25] : memref<256x28xf32, #tpu.memory_space<vmem>>, vector<8x28xf32>
    tpu.vector_store %arg14[%c72, %c0_25], %24 {strides = array<i32>} : memref<256x28xf32, #tpu.memory_space<vmem>>, vector<8x28xf32>,
    %c8 = arith.constant 8 : index
    %c0_26 = arith.constant 0 : index
    %c0_27 = arith.constant 0 : index
    %26 = vector.load %arg1[%c8, %c0_26, %c0_27] : memref<28x8x28xf32, #tpu.memory_space<vmem>>, vector<1x8x28xf32>
    %27 = vector.shape_cast %26 : vector<1x8x28xf32> to vector<8x28xf32>
    %c80 = arith.constant 80 : index
    %c0_28 = arith.constant 0 : index
    %28 = vector.load %arg14[%c80, %c0_28] : memref<256x28xf32, #tpu.memory_space<vmem>>, vector<8x28xf32>
    tpu.vector_store %arg14[%c80, %c0_28], %27 {strides = array<i32>} : memref<256x28xf32, #tpu.memory_space<vmem>>, vector<8x28xf32>,
    %c9 = arith.constant 9 : index
    %c0_29 = arith.constant 0 : index
    %c0_30 = arith.constant 0 : index
    %29 = vector.load %arg1[%c9, %c0_29, %c0_30] : memref<28x8x28xf32, #tpu.memory_space<vmem>>, vector<1x8x28xf32>
    %30 = vector.shape_cast %29 : vector<1x8x28xf32> to vector<8x28xf32>
    %c88 = arith.constant 88 : index
    %c0_31 = arith.constant 0 : index
    %31 = vector.load %arg14[%c88, %c0_31] : memref<256x28xf32, #tpu.memory_space<vmem>>, vector<8x28xf32>
    tpu.vector_store %arg14[%c88, %c0_31], %30 {strides = array<i32>} : memref<256x28xf32, #tpu.memory_space<vmem>>, vector<8x28xf32>,
    %c10 = arith.constant 10 : index
    %c0_32 = arith.constant 0 : index
    %c0_33 = arith.constant 0 : index
    %32 = vector.load %arg1[%c10, %c0_32, %c0_33] : memref<28x8x28xf32, #tpu.memory_space<vmem>>, vector<1x8x28xf32>
    %33 = vector.shape_cast %32 : vector<1x8x28xf32> to vector<8x28xf32>
    %c96 = arith.constant 96 : index
    %c0_34 = arith.constant 0 : index
    %34 = vector.load %arg14[%c96, %c0_34] : memref<256x28xf32, #tpu.memory_space<vmem>>, vector<8x28xf32>
    tpu.vector_store %arg14[%c96, %c0_34], %33 {strides = array<i32>} : memref<256x28xf32, #tpu.memory_space<vmem>>, vector<8x28xf32>,
    %c11 = arith.constant 11 : index
    %c0_35 = arith.constant 0 : index
    %c0_36 = arith.constant 0 : index
    %35 = vector.load %arg1[%c11, %c0_35, %c0_36] : memref<28x8x28xf32, #tpu.memory_space<vmem>>, vector<1x8x28xf32>
    %36 = vector.shape_cast %35 : vector<1x8x28xf32> to vector<8x28xf32>
    %c104 = arith.constant 104 : index
    %c0_37 = arith.constant 0 : index
    %37 = vector.load %arg14[%c104, %c0_37] : memref<256x28xf32, #tpu.memory_space<vmem>>, vector<8x28xf32>
    tpu.vector_store %arg14[%c104, %c0_37], %36 {strides = array<i32>} : memref<256x28xf32, #tpu.memory_space<vmem>>, vector<8x28xf32>,
    %c12 = arith.constant 12 : index
    %c0_38 = arith.constant 0 : index
    %c0_39 = arith.constant 0 : index
    %38 = vector.load %arg1[%c12, %c0_38, %c0_39] : memref<28x8x28xf32, #tpu.memory_space<vmem>>, vector<1x8x28xf32>
    %39 = vector.shape_cast %38 : vector<1x8x28xf32> to vector<8x28xf32>
    %c112 = arith.constant 112 : index
    %c0_40 = arith.constant 0 : index
    %40 = vector.load %arg14[%c112, %c0_40] : memref<256x28xf32, #tpu.memory_space<vmem>>, vector<8x28xf32>
    tpu.vector_store %arg14[%c112, %c0_40], %39 {strides = array<i32>} : memref<256x28xf32, #tpu.memory_space<vmem>>, vector<8x28xf32>,
    %c13 = arith.constant 13 : index
    %c0_41 = arith.constant 0 : index
    %c0_42 = arith.constant 0 : index
    %41 = vector.load %arg1[%c13, %c0_41, %c0_42] : memref<28x8x28xf32, #tpu.memory_space<vmem>>, vector<1x8x28xf32>
    %42 = vector.shape_cast %41 : vector<1x8x28xf32> to vector<8x28xf32>
    %c120 = arith.constant 120 : index
    %c0_43 = arith.constant 0 : index
    %43 = vector.load %arg14[%c120, %c0_43] : memref<256x28xf32, #tpu.memory_space<vmem>>, vector<8x28xf32>
    tpu.vector_store %arg14[%c120, %c0_43], %42 {strides = array<i32>} : memref<256x28xf32, #tpu.memory_space<vmem>>, vector<8x28xf32>,
    %c14 = arith.constant 14 : index
    %c0_44 = arith.constant 0 : index
    %c0_45 = arith.constant 0 : index
    %44 = vector.load %arg1[%c14, %c0_44, %c0_45] : memref<28x8x28xf32, #tpu.memory_space<vmem>>, vector<1x8x28xf32>
    %45 = vector.shape_cast %44 : vector<1x8x28xf32> to vector<8x28xf32>
    %c128 = arith.constant 128 : index
    %c0_46 = arith.constant 0 : index
    %46 = vector.load %arg14[%c128, %c0_46] : memref<256x28xf32, #tpu.memory_space<vmem>>, vector<8x28xf32>
    tpu.vector_store %arg14[%c128, %c0_46], %45 {strides = array<i32>} : memref<256x28xf32, #tpu.memory_space<vmem>>, vector<8x28xf32>,
    %c15 = arith.constant 15 : index
    %c0_47 = arith.constant 0 : index
    %c0_48 = arith.constant 0 : index
    %47 = vector.load %arg1[%c15, %c0_47, %c0_48] : memref<28x8x28xf32, #tpu.memory_space<vmem>>, vector<1x8x28xf32>
    %48 = vector.shape_cast %47 : vector<1x8x28xf32> to vector<8x28xf32>
    %c136 = arith.constant 136 : index
    %c0_49 = arith.constant 0 : index
    %49 = vector.load %arg14[%c136, %c0_49] : memref<256x28xf32, #tpu.memory_space<vmem>>, vector<8x28xf32>
    tpu.vector_store %arg14[%c136, %c0_49], %48 {strides = array<i32>} : memref<256x28xf32, #tpu.memory_space<vmem>>, vector<8x28xf32>,
    %c16_50 = arith.constant 16 : index
    %c0_51 = arith.constant 0 : index
    %c0_52 = arith.constant 0 : index
    %50 = vector.load %arg1[%c16_50, %c0_51, %c0_52] : memref<28x8x28xf32, #tpu.memory_space<vmem>>, vector<1x8x28xf32>
    %51 = vector.shape_cast %50 : vector<1x8x28xf32> to vector<8x28xf32>
    %c144 = arith.constant 144 : index
    %c0_53 = arith.constant 0 : index
    %52 = vector.load %arg14[%c144, %c0_53] : memref<256x28xf32, #tpu.memory_space<vmem>>, vector<8x28xf32>
    tpu.vector_store %arg14[%c144, %c0_53], %51 {strides = array<i32>} : memref<256x28xf32, #tpu.memory_space<vmem>>, vector<8x28xf32>,
    %c17 = arith.constant 17 : index
    %c0_54 = arith.constant 0 : index
    %c0_55 = arith.constant 0 : index
    %53 = vector.load %arg1[%c17, %c0_54, %c0_55] : memref<28x8x28xf32, #tpu.memory_space<vmem>>, vector<1x8x28xf32>
    %54 = vector.shape_cast %53 : vector<1x8x28xf32> to vector<8x28xf32>
    %c152 = arith.constant 152 : index
    %c0_56 = arith.constant 0 : index
    %55 = vector.load %arg14[%c152, %c0_56] : memref<256x28xf32, #tpu.memory_space<vmem>>, vector<8x28xf32>
    tpu.vector_store %arg14[%c152, %c0_56], %54 {strides = array<i32>} : memref<256x28xf32, #tpu.memory_space<vmem>>, vector<8x28xf32>,
    %c18 = arith.constant 18 : index
    %c0_57 = arith.constant 0 : index
    %c0_58 = arith.constant 0 : index
    %56 = vector.load %arg1[%c18, %c0_57, %c0_58] : memref<28x8x28xf32, #tpu.memory_space<vmem>>, vector<1x8x28xf32>
    %57 = vector.shape_cast %56 : vector<1x8x28xf32> to vector<8x28xf32>
    %c160 = arith.constant 160 : index
    %c0_59 = arith.constant 0 : index
    %58 = vector.load %arg14[%c160, %c0_59] : memref<256x28xf32, #tpu.memory_space<vmem>>, vector<8x28xf32>
    tpu.vector_store %arg14[%c160, %c0_59], %57 {strides = array<i32>} : memref<256x28xf32, #tpu.memory_space<vmem>>, vector<8x28xf32>,
    %c19 = arith.constant 19 : index
    %c0_60 = arith.constant 0 : index
    %c0_61 = arith.constant 0 : index
    %59 = vector.load %arg1[%c19, %c0_60, %c0_61] : memref<28x8x28xf32, #tpu.memory_space<vmem>>, vector<1x8x28xf32>
    %60 = vector.shape_cast %59 : vector<1x8x28xf32> to vector<8x28xf32>
    %c168 = arith.constant 168 : index
    %c0_62 = arith.constant 0 : index
    %61 = vector.load %arg14[%c168, %c0_62] : memref<256x28xf32, #tpu.memory_space<vmem>>, vector<8x28xf32>
    tpu.vector_store %arg14[%c168, %c0_62], %60 {strides = array<i32>} : memref<256x28xf32, #tpu.memory_space<vmem>>, vector<8x28xf32>,
    %c20 = arith.constant 20 : index
    %c0_63 = arith.constant 0 : index
    %c0_64 = arith.constant 0 : index
    %62 = vector.load %arg1[%c20, %c0_63, %c0_64] : memref<28x8x28xf32, #tpu.memory_space<vmem>>, vector<1x8x28xf32>
    %63 = vector.shape_cast %62 : vector<1x8x28xf32> to vector<8x28xf32>
    %c176 = arith.constant 176 : index
    %c0_65 = arith.constant 0 : index
    %64 = vector.load %arg14[%c176, %c0_65] : memref<256x28xf32, #tpu.memory_space<vmem>>, vector<8x28xf32>
    tpu.vector_store %arg14[%c176, %c0_65], %63 {strides = array<i32>} : memref<256x28xf32, #tpu.memory_space<vmem>>, vector<8x28xf32>,
    %c21 = arith.constant 21 : index
    %c0_66 = arith.constant 0 : index
    %c0_67 = arith.constant 0 : index
    %65 = vector.load %arg1[%c21, %c0_66, %c0_67] : memref<28x8x28xf32, #tpu.memory_space<vmem>>, vector<1x8x28xf32>
    %66 = vector.shape_cast %65 : vector<1x8x28xf32> to vector<8x28xf32>
    %c184 = arith.constant 184 : index
    %c0_68 = arith.constant 0 : index
    %67 = vector.load %arg14[%c184, %c0_68] : memref<256x28xf32, #tpu.memory_space<vmem>>, vector<8x28xf32>
    tpu.vector_store %arg14[%c184, %c0_68], %66 {strides = array<i32>} : memref<256x28xf32, #tpu.memory_space<vmem>>, vector<8x28xf32>,
    %c22 = arith.constant 22 : index
    %c0_69 = arith.constant 0 : index
    %c0_70 = arith.constant 0 : index
    %68 = vector.load %arg1[%c22, %c0_69, %c0_70] : memref<28x8x28xf32, #tpu.memory_space<vmem>>, vector<1x8x28xf32>
    %69 = vector.shape_cast %68 : vector<1x8x28xf32> to vector<8x28xf32>
    %c192 = arith.constant 192 : index
    %c0_71 = arith.constant 0 : index
    %70 = vector.load %arg14[%c192, %c0_71] : memref<256x28xf32, #tpu.memory_space<vmem>>, vector<8x28xf32>
    tpu.vector_store %arg14[%c192, %c0_71], %69 {strides = array<i32>} : memref<256x28xf32, #tpu.memory_space<vmem>>, vector<8x28xf32>,
    %c23 = arith.constant 23 : index
    %c0_72 = arith.constant 0 : index
    %c0_73 = arith.constant 0 : index
    %71 = vector.load %arg1[%c23, %c0_72, %c0_73] : memref<28x8x28xf32, #tpu.memory_space<vmem>>, vector<1x8x28xf32>
    %72 = vector.shape_cast %71 : vector<1x8x28xf32> to vector<8x28xf32>
    %c200 = arith.constant 200 : index
    %c0_74 = arith.constant 0 : index
    %73 = vector.load %arg14[%c200, %c0_74] : memref<256x28xf32, #tpu.memory_space<vmem>>, vector<8x28xf32>
    tpu.vector_store %arg14[%c200, %c0_74], %72 {strides = array<i32>} : memref<256x28xf32, #tpu.memory_space<vmem>>, vector<8x28xf32>,
    %c24_75 = arith.constant 24 : index
    %c0_76 = arith.constant 0 : index
    %c0_77 = arith.constant 0 : index
    %74 = vector.load %arg1[%c24_75, %c0_76, %c0_77] : memref<28x8x28xf32, #tpu.memory_space<vmem>>, vector<1x8x28xf32>
    %75 = vector.shape_cast %74 : vector<1x8x28xf32> to vector<8x28xf32>
    %c208 = arith.constant 208 : index
    %c0_78 = arith.constant 0 : index
    %76 = vector.load %arg14[%c208, %c0_78] : memref<256x28xf32, #tpu.memory_space<vmem>>, vector<8x28xf32>
    tpu.vector_store %arg14[%c208, %c0_78], %75 {strides = array<i32>} : memref<256x28xf32, #tpu.memory_space<vmem>>, vector<8x28xf32>,
    %c25 = arith.constant 25 : index
    %c0_79 = arith.constant 0 : index
    %c0_80 = arith.constant 0 : index
    %77 = vector.load %arg1[%c25, %c0_79, %c0_80] : memref<28x8x28xf32, #tpu.memory_space<vmem>>, vector<1x8x28xf32>
    %78 = vector.shape_cast %77 : vector<1x8x28xf32> to vector<8x28xf32>
    %c216 = arith.constant 216 : index
    %c0_81 = arith.constant 0 : index
    %79 = vector.load %arg14[%c216, %c0_81] : memref<256x28xf32, #tpu.memory_space<vmem>>, vector<8x28xf32>
    tpu.vector_store %arg14[%c216, %c0_81], %78 {strides = array<i32>} : memref<256x28xf32, #tpu.memory_space<vmem>>, vector<8x28xf32>,
    %c26 = arith.constant 26 : index
    %c0_82 = arith.constant 0 : index
    %c0_83 = arith.constant 0 : index
    %80 = vector.load %arg1[%c26, %c0_82, %c0_83] : memref<28x8x28xf32, #tpu.memory_space<vmem>>, vector<1x8x28xf32>
    %81 = vector.shape_cast %80 : vector<1x8x28xf32> to vector<8x28xf32>
    %c224 = arith.constant 224 : index
    %c0_84 = arith.constant 0 : index
    %82 = vector.load %arg14[%c224, %c0_84] : memref<256x28xf32, #tpu.memory_space<vmem>>, vector<8x28xf32>
    tpu.vector_store %arg14[%c224, %c0_84], %81 {strides = array<i32>} : memref<256x28xf32, #tpu.memory_space<vmem>>, vector<8x28xf32>,
    %c27 = arith.constant 27 : index
    %c0_85 = arith.constant 0 : index
    %c0_86 = arith.constant 0 : index
    %83 = vector.load %arg1[%c27, %c0_85, %c0_86] : memref<28x8x28xf32, #tpu.memory_space<vmem>>, vector<1x8x28xf32>
    %84 = vector.shape_cast %83 : vector<1x8x28xf32> to vector<8x28xf32>
    %c232 = arith.constant 232 : index
    %c0_87 = arith.constant 0 : index
    %85 = vector.load %arg14[%c232, %c0_87] : memref<256x28xf32, #tpu.memory_space<vmem>>, vector<8x28xf32>
    tpu.vector_store %arg14[%c232, %c0_87], %84 {strides = array<i32>} : memref<256x28xf32, #tpu.memory_space<vmem>>, vector<8x28xf32>,
    %cst_88 = arith.constant 0.000000e+00 : f32
    %86 = vector.broadcast %cst_88 : f32 to vector<16x28xf32>
    %c240 = arith.constant 240 : index
    %c0_89 = arith.constant 0 : index
    %87 = vector.load %arg14[%c240, %c0_89] : memref<256x28xf32, #tpu.memory_space<vmem>>, vector<16x28xf32>
    tpu.vector_store %arg14[%c240, %c0_89], %86 {strides = array<i32>} : memref<256x28xf32, #tpu.memory_space<vmem>>, vector<16x28xf32>,
    %cst_90 = arith.constant 0.000000e+00 : f32
    %88 = vector.broadcast %cst_90 : f32 to vector<224x168xf32>
    %c0_91 = arith.constant 0 : index
    %c0_92 = arith.constant 0 : index
    %89 = vector.load %arg14[%c0_91, %c0_92] : memref<256x28xf32, #tpu.memory_space<vmem>>, vector<224x28xf32>
    %c0_93 = arith.constant 0 : index
    %c0_94 = arith.constant 0 : index
    %c0_95 = arith.constant 0 : index
    %90 = vector.load %arg2[%c0_93, %c0_94, %c0_95] : memref<5x28x168xf32, #tpu.memory_space<vmem>>, vector<1x28x168xf32>
    %91 = vector.shape_cast %90 : vector<1x28x168xf32> to vector<28x168xf32>
    %cst_96 = arith.constant dense<0.000000e+00> : vector<224x168xf32>
    %92 = tpu.matmul %89, %91, %cst_96 {dimension_numbers = #tpu.dot_dimension_numbers<[1], [0], [0], [1], [0, 0, 1, 1], [], []>} : vector<224x28xf32>, vector<28x168xf32>, vector<224x168xf32> -> vector<224x168xf32>
    %93 = arith.addf %88, %92 : vector<224x168xf32>
    %c8_97 = arith.constant 8 : index
    %c0_98 = arith.constant 0 : index
    %94 = vector.load %arg14[%c8_97, %c0_98] : memref<256x28xf32, #tpu.memory_space<vmem>>, vector<224x28xf32>
    %c1_99 = arith.constant 1 : index
    %c0_100 = arith.constant 0 : index
    %c0_101 = arith.constant 0 : index
    %95 = vector.load %arg2[%c1_99, %c0_100, %c0_101] : memref<5x28x168xf32, #tpu.memory_space<vmem>>, vector<1x28x168xf32>
    %96 = vector.shape_cast %95 : vector<1x28x168xf32> to vector<28x168xf32>
    %cst_102 = arith.constant dense<0.000000e+00> : vector<224x168xf32>
    %97 = tpu.matmul %94, %96, %cst_102 {dimension_numbers = #tpu.dot_dimension_numbers<[1], [0], [0], [1], [0, 0, 1, 1], [], []>} : vector<224x28xf32>, vector<28x168xf32>, vector<224x168xf32> -> vector<224x168xf32>
    %98 = arith.addf %93, %97 : vector<224x168xf32>
    %c16_103 = arith.constant 16 : index
    %c0_104 = arith.constant 0 : index
    %99 = vector.load %arg14[%c16_103, %c0_104] : memref<256x28xf32, #tpu.memory_space<vmem>>, vector<224x28xf32>
    %c2_105 = arith.constant 2 : index
    %c0_106 = arith.constant 0 : index
    %c0_107 = arith.constant 0 : index
    %100 = vector.load %arg2[%c2_105, %c0_106, %c0_107] : memref<5x28x168xf32, #tpu.memory_space<vmem>>, vector<1x28x168xf32>
    %101 = vector.shape_cast %100 : vector<1x28x168xf32> to vector<28x168xf32>
    %cst_108 = arith.constant dense<0.000000e+00> : vector<224x168xf32>
    %102 = tpu.matmul %99, %101, %cst_108 {dimension_numbers = #tpu.dot_dimension_numbers<[1], [0], [0], [1], [0, 0, 1, 1], [], []>} : vector<224x28xf32>, vector<28x168xf32>, vector<224x168xf32> -> vector<224x168xf32>
    %103 = arith.addf %98, %102 : vector<224x168xf32>
    %c24_109 = arith.constant 24 : index
    %c0_110 = arith.constant 0 : index
    %104 = vector.load %arg14[%c24_109, %c0_110] : memref<256x28xf32, #tpu.memory_space<vmem>>, vector<224x28xf32>
    %c3_111 = arith.constant 3 : index
    %c0_112 = arith.constant 0 : index
    %c0_113 = arith.constant 0 : index
    %105 = vector.load %arg2[%c3_111, %c0_112, %c0_113] : memref<5x28x168xf32, #tpu.memory_space<vmem>>, vector<1x28x168xf32>
    %106 = vector.shape_cast %105 : vector<1x28x168xf32> to vector<28x168xf32>
    %cst_114 = arith.constant dense<0.000000e+00> : vector<224x168xf32>
    %107 = tpu.matmul %104, %106, %cst_114 {dimension_numbers = #tpu.dot_dimension_numbers<[1], [0], [0], [1], [0, 0, 1, 1], [], []>} : vector<224x28xf32>, vector<28x168xf32>, vector<224x168xf32> -> vector<224x168xf32>
    %108 = arith.addf %103, %107 : vector<224x168xf32>
    %c32_115 = arith.constant 32 : index
    %c0_116 = arith.constant 0 : index
    %109 = vector.load %arg14[%c32_115, %c0_116] : memref<256x28xf32, #tpu.memory_space<vmem>>, vector<224x28xf32>
    %c4_117 = arith.constant 4 : index
    %c0_118 = arith.constant 0 : index
    %c0_119 = arith.constant 0 : index
    %110 = vector.load %arg2[%c4_117, %c0_118, %c0_119] : memref<5x28x168xf32, #tpu.memory_space<vmem>>, vector<1x28x168xf32>
    %111 = vector.shape_cast %110 : vector<1x28x168xf32> to vector<28x168xf32>
    %cst_120 = arith.constant dense<0.000000e+00> : vector<224x168xf32>
    %112 = tpu.matmul %109, %111, %cst_120 {dimension_numbers = #tpu.dot_dimension_numbers<[1], [0], [0], [1], [0, 0, 1, 1], [], []>} : vector<224x28xf32>, vector<28x168xf32>, vector<224x168xf32> -> vector<224x168xf32>
    %113 = arith.addf %108, %112 : vector<224x168xf32>
    %c0_121 = arith.constant 0 : index
    %c0_122 = arith.constant 0 : index
    %114 = vector.load %arg3[%c0_121, %c0_122] : memref<1x168xf32, #tpu.memory_space<vmem>>, vector<1x168xf32>
    %115 = vector.broadcast %114 : vector<1x168xf32> to vector<224x168xf32>
    %116 = arith.addf %113, %115 : vector<224x168xf32>
    %cst_123 = arith.constant 0.000000e+00 : f32
    %117 = vector.broadcast %cst_123 : f32 to vector<224x168xf32>
    %118 = arith.maximumf %116, %117 : vector<224x168xf32>
    %c0_124 = arith.constant 0 : index
    %c0_125 = arith.constant 0 : index
    %119 = vector.load %arg4[%c0_124, %c0_125] : memref<168x84xf32, #tpu.memory_space<vmem>>, vector<168x84xf32>
    %cst_126 = arith.constant dense<0.000000e+00> : vector<224x84xf32>
    %120 = tpu.matmul %118, %119, %cst_126 {dimension_numbers = #tpu.dot_dimension_numbers<[1], [0], [0], [1], [0, 0, 1, 1], [], []>} : vector<224x168xf32>, vector<168x84xf32>, vector<224x84xf32> -> vector<224x84xf32>
    %121 = vector.extract_strided_slice %120 {offsets = [0, 0], sizes = [8, 84], strides = [1, 1]} : vector<224x84xf32> to vector<8x84xf32>
    %122 = vector.extract_strided_slice %120 {offsets = [8, 0], sizes = [8, 84], strides = [1, 1]} : vector<224x84xf32> to vector<8x84xf32>
    %123 = arith.addf %121, %122 : vector<8x84xf32>
    %cst_127 = arith.constant 5.000000e-01 : f32
    %124 = vector.broadcast %cst_127 : f32 to vector<8x84xf32>
    %125 = arith.mulf %124, %123 : vector<8x84xf32>
    %c0_128 = arith.constant 0 : index
    %c0_129 = arith.constant 0 : index
    %126 = vector.load %arg15[%c0_128, %c0_129] : memref<112x84xf32, #tpu.memory_space<vmem>>, vector<8x84xf32>
    tpu.vector_store %arg15[%c0_128, %c0_129], %125 {strides = array<i32>} : memref<112x84xf32, #tpu.memory_space<vmem>>, vector<8x84xf32>,
    %127 = vector.extract_strided_slice %120 {offsets = [16, 0], sizes = [8, 84], strides = [1, 1]} : vector<224x84xf32> to vector<8x84xf32>
    %128 = vector.extract_strided_slice %120 {offsets = [24, 0], sizes = [8, 84], strides = [1, 1]} : vector<224x84xf32> to vector<8x84xf32>
    %129 = arith.addf %127, %128 : vector<8x84xf32>
    %cst_130 = arith.constant 5.000000e-01 : f32
    %130 = vector.broadcast %cst_130 : f32 to vector<8x84xf32>
    %131 = arith.mulf %130, %129 : vector<8x84xf32>
    %c8_131 = arith.constant 8 : index
    %c0_132 = arith.constant 0 : index
    %132 = vector.load %arg15[%c8_131, %c0_132] : memref<112x84xf32, #tpu.memory_space<vmem>>, vector<8x84xf32>
    tpu.vector_store %arg15[%c8_131, %c0_132], %131 {strides = array<i32>} : memref<112x84xf32, #tpu.memory_space<vmem>>, vector<8x84xf32>,
    %133 = vector.extract_strided_slice %120 {offsets = [32, 0], sizes = [8, 84], strides = [1, 1]} : vector<224x84xf32> to vector<8x84xf32>
    %134 = vector.extract_strided_slice %120 {offsets = [40, 0], sizes = [8, 84], strides = [1, 1]} : vector<224x84xf32> to vector<8x84xf32>
    %135 = arith.addf %133, %134 : vector<8x84xf32>
    %cst_133 = arith.constant 5.000000e-01 : f32
    %136 = vector.broadcast %cst_133 : f32 to vector<8x84xf32>
    %137 = arith.mulf %136, %135 : vector<8x84xf32>
    %c16_134 = arith.constant 16 : index
    %c0_135 = arith.constant 0 : index
    %138 = vector.load %arg15[%c16_134, %c0_135] : memref<112x84xf32, #tpu.memory_space<vmem>>, vector<8x84xf32>
    tpu.vector_store %arg15[%c16_134, %c0_135], %137 {strides = array<i32>} : memref<112x84xf32, #tpu.memory_space<vmem>>, vector<8x84xf32>,
    %139 = vector.extract_strided_slice %120 {offsets = [48, 0], sizes = [8, 84], strides = [1, 1]} : vector<224x84xf32> to vector<8x84xf32>
    %140 = vector.extract_strided_slice %120 {offsets = [56, 0], sizes = [8, 84], strides = [1, 1]} : vector<224x84xf32> to vector<8x84xf32>
    %141 = arith.addf %139, %140 : vector<8x84xf32>
    %cst_136 = arith.constant 5.000000e-01 : f32
    %142 = vector.broadcast %cst_136 : f32 to vector<8x84xf32>
    %143 = arith.mulf %142, %141 : vector<8x84xf32>
    %c24_137 = arith.constant 24 : index
    %c0_138 = arith.constant 0 : index
    %144 = vector.load %arg15[%c24_137, %c0_138] : memref<112x84xf32, #tpu.memory_space<vmem>>, vector<8x84xf32>
    tpu.vector_store %arg15[%c24_137, %c0_138], %143 {strides = array<i32>} : memref<112x84xf32, #tpu.memory_space<vmem>>, vector<8x84xf32>,
    %145 = vector.extract_strided_slice %120 {offsets = [64, 0], sizes = [8, 84], strides = [1, 1]} : vector<224x84xf32> to vector<8x84xf32>
    %146 = vector.extract_strided_slice %120 {offsets = [72, 0], sizes = [8, 84], strides = [1, 1]} : vector<224x84xf32> to vector<8x84xf32>
    %147 = arith.addf %145, %146 : vector<8x84xf32>
    %cst_139 = arith.constant 5.000000e-01 : f32
    %148 = vector.broadcast %cst_139 : f32 to vector<8x84xf32>
    %149 = arith.mulf %148, %147 : vector<8x84xf32>
    %c32_140 = arith.constant 32 : index
    %c0_141 = arith.constant 0 : index
    %150 = vector.load %arg15[%c32_140, %c0_141] : memref<112x84xf32, #tpu.memory_space<vmem>>, vector<8x84xf32>
    tpu.vector_store %arg15[%c32_140, %c0_141], %149 {strides = array<i32>} : memref<112x84xf32, #tpu.memory_space<vmem>>, vector<8x84xf32>,
    %151 = vector.extract_strided_slice %120 {offsets = [80, 0], sizes = [8, 84], strides = [1, 1]} : vector<224x84xf32> to vector<8x84xf32>
    %152 = vector.extract_strided_slice %120 {offsets = [88, 0], sizes = [8, 84], strides = [1, 1]} : vector<224x84xf32> to vector<8x84xf32>
    %153 = arith.addf %151, %152 : vector<8x84xf32>
    %cst_142 = arith.constant 5.000000e-01 : f32
    %154 = vector.broadcast %cst_142 : f32 to vector<8x84xf32>
    %155 = arith.mulf %154, %153 : vector<8x84xf32>
    %c40_143 = arith.constant 40 : index
    %c0_144 = arith.constant 0 : index
    %156 = vector.load %arg15[%c40_143, %c0_144] : memref<112x84xf32, #tpu.memory_space<vmem>>, vector<8x84xf32>
    tpu.vector_store %arg15[%c40_143, %c0_144], %155 {strides = array<i32>} : memref<112x84xf32, #tpu.memory_space<vmem>>, vector<8x84xf32>,
    %157 = vector.extract_strided_slice %120 {offsets = [96, 0], sizes = [8, 84], strides = [1, 1]} : vector<224x84xf32> to vector<8x84xf32>
    %158 = vector.extract_strided_slice %120 {offsets = [104, 0], sizes = [8, 84], strides = [1, 1]} : vector<224x84xf32> to vector<8x84xf32>
    %159 = arith.addf %157, %158 : vector<8x84xf32>
    %cst_145 = arith.constant 5.000000e-01 : f32
    %160 = vector.broadcast %cst_145 : f32 to vector<8x84xf32>
    %161 = arith.mulf %160, %159 : vector<8x84xf32>
    %c48_146 = arith.constant 48 : index
    %c0_147 = arith.constant 0 : index
    %162 = vector.load %arg15[%c48_146, %c0_147] : memref<112x84xf32, #tpu.memory_space<vmem>>, vector<8x84xf32>
    tpu.vector_store %arg15[%c48_146, %c0_147], %161 {strides = array<i32>} : memref<112x84xf32, #tpu.memory_space<vmem>>, vector<8x84xf32>,
    %163 = vector.extract_strided_slice %120 {offsets = [112, 0], sizes = [8, 84], strides = [1, 1]} : vector<224x84xf32> to vector<8x84xf32>
    %164 = vector.extract_strided_slice %120 {offsets = [120, 0], sizes = [8, 84], strides = [1, 1]} : vector<224x84xf32> to vector<8x84xf32>
    %165 = arith.addf %163, %164 : vector<8x84xf32>
    %cst_148 = arith.constant 5.000000e-01 : f32
    %166 = vector.broadcast %cst_148 : f32 to vector<8x84xf32>
    %167 = arith.mulf %166, %165 : vector<8x84xf32>
    %c56_149 = arith.constant 56 : index
    %c0_150 = arith.constant 0 : index
    %168 = vector.load %arg15[%c56_149, %c0_150] : memref<112x84xf32, #tpu.memory_space<vmem>>, vector<8x84xf32>
    tpu.vector_store %arg15[%c56_149, %c0_150], %167 {strides = array<i32>} : memref<112x84xf32, #tpu.memory_space<vmem>>, vector<8x84xf32>,
    %169 = vector.extract_strided_slice %120 {offsets = [128, 0], sizes = [8, 84], strides = [1, 1]} : vector<224x84xf32> to vector<8x84xf32>
    %170 = vector.extract_strided_slice %120 {offsets = [136, 0], sizes = [8, 84], strides = [1, 1]} : vector<224x84xf32> to vector<8x84xf32>
    %171 = arith.addf %169, %170 : vector<8x84xf32>
    %cst_151 = arith.constant 5.000000e-01 : f32
    %172 = vector.broadcast %cst_151 : f32 to vector<8x84xf32>
    %173 = arith.mulf %172, %171 : vector<8x84xf32>
    %c64_152 = arith.constant 64 : index
    %c0_153 = arith.constant 0 : index
    %174 = vector.load %arg15[%c64_152, %c0_153] : memref<112x84xf32, #tpu.memory_space<vmem>>, vector<8x84xf32>
    tpu.vector_store %arg15[%c64_152, %c0_153], %173 {strides = array<i32>} : memref<112x84xf32, #tpu.memory_space<vmem>>, vector<8x84xf32>,
    %175 = vector.extract_strided_slice %120 {offsets = [144, 0], sizes = [8, 84], strides = [1, 1]} : vector<224x84xf32> to vector<8x84xf32>
    %176 = vector.extract_strided_slice %120 {offsets = [152, 0], sizes = [8, 84], strides = [1, 1]} : vector<224x84xf32> to vector<8x84xf32>
    %177 = arith.addf %175, %176 : vector<8x84xf32>
    %cst_154 = arith.constant 5.000000e-01 : f32
    %178 = vector.broadcast %cst_154 : f32 to vector<8x84xf32>
    %179 = arith.mulf %178, %177 : vector<8x84xf32>
    %c72_155 = arith.constant 72 : index
    %c0_156 = arith.constant 0 : index
    %180 = vector.load %arg15[%c72_155, %c0_156] : memref<112x84xf32, #tpu.memory_space<vmem>>, vector<8x84xf32>
    tpu.vector_store %arg15[%c72_155, %c0_156], %179 {strides = array<i32>} : memref<112x84xf32, #tpu.memory_space<vmem>>, vector<8x84xf32>,
    %181 = vector.extract_strided_slice %120 {offsets = [160, 0], sizes = [8, 84], strides = [1, 1]} : vector<224x84xf32> to vector<8x84xf32>
    %182 = vector.extract_strided_slice %120 {offsets = [168, 0], sizes = [8, 84], strides = [1, 1]} : vector<224x84xf32> to vector<8x84xf32>
    %183 = arith.addf %181, %182 : vector<8x84xf32>
    %cst_157 = arith.constant 5.000000e-01 : f32
    %184 = vector.broadcast %cst_157 : f32 to vector<8x84xf32>
    %185 = arith.mulf %184, %183 : vector<8x84xf32>
    %c80_158 = arith.constant 80 : index
    %c0_159 = arith.constant 0 : index
    %186 = vector.load %arg15[%c80_158, %c0_159] : memref<112x84xf32, #tpu.memory_space<vmem>>, vector<8x84xf32>
    tpu.vector_store %arg15[%c80_158, %c0_159], %185 {strides = array<i32>} : memref<112x84xf32, #tpu.memory_space<vmem>>, vector<8x84xf32>,
    %187 = vector.extract_strided_slice %120 {offsets = [176, 0], sizes = [8, 84], strides = [1, 1]} : vector<224x84xf32> to vector<8x84xf32>
    %188 = vector.extract_strided_slice %120 {offsets = [184, 0], sizes = [8, 84], strides = [1, 1]} : vector<224x84xf32> to vector<8x84xf32>
    %189 = arith.addf %187, %188 : vector<8x84xf32>
    %cst_160 = arith.constant 5.000000e-01 : f32
    %190 = vector.broadcast %cst_160 : f32 to vector<8x84xf32>
    %191 = arith.mulf %190, %189 : vector<8x84xf32>
    %c88_161 = arith.constant 88 : index
    %c0_162 = arith.constant 0 : index
    %192 = vector.load %arg15[%c88_161, %c0_162] : memref<112x84xf32, #tpu.memory_space<vmem>>, vector<8x84xf32>
    tpu.vector_store %arg15[%c88_161, %c0_162], %191 {strides = array<i32>} : memref<112x84xf32, #tpu.memory_space<vmem>>, vector<8x84xf32>,
    %193 = vector.extract_strided_slice %120 {offsets = [192, 0], sizes = [8, 84], strides = [1, 1]} : vector<224x84xf32> to vector<8x84xf32>
    %194 = vector.extract_strided_slice %120 {offsets = [200, 0], sizes = [8, 84], strides = [1, 1]} : vector<224x84xf32> to vector<8x84xf32>
    %195 = arith.addf %193, %194 : vector<8x84xf32>
    %cst_163 = arith.constant 5.000000e-01 : f32
    %196 = vector.broadcast %cst_163 : f32 to vector<8x84xf32>
    %197 = arith.mulf %196, %195 : vector<8x84xf32>
    %c96_164 = arith.constant 96 : index
    %c0_165 = arith.constant 0 : index
    %198 = vector.load %arg15[%c96_164, %c0_165] : memref<112x84xf32, #tpu.memory_space<vmem>>, vector<8x84xf32>
    tpu.vector_store %arg15[%c96_164, %c0_165], %197 {strides = array<i32>} : memref<112x84xf32, #tpu.memory_space<vmem>>, vector<8x84xf32>,
    %199 = vector.extract_strided_slice %120 {offsets = [208, 0], sizes = [8, 84], strides = [1, 1]} : vector<224x84xf32> to vector<8x84xf32>
    %200 = vector.extract_strided_slice %120 {offsets = [216, 0], sizes = [8, 84], strides = [1, 1]} : vector<224x84xf32> to vector<8x84xf32>
    %201 = arith.addf %199, %200 : vector<8x84xf32>
    %cst_166 = arith.constant 5.000000e-01 : f32
    %202 = vector.broadcast %cst_166 : f32 to vector<8x84xf32>
    %203 = arith.mulf %202, %201 : vector<8x84xf32>
    %c104_167 = arith.constant 104 : index
    %c0_168 = arith.constant 0 : index
    %204 = vector.load %arg15[%c104_167, %c0_168] : memref<112x84xf32, #tpu.memory_space<vmem>>, vector<8x84xf32>
    tpu.vector_store %arg15[%c104_167, %c0_168], %203 {strides = array<i32>} : memref<112x84xf32, #tpu.memory_space<vmem>>, vector<8x84xf32>,
    %cst_169 = arith.constant 0.000000e+00 : f32
    %205 = vector.broadcast %cst_169 : f32 to vector<80x160xf32>
    %c0_170 = arith.constant 0 : index
    %c0_171 = arith.constant 0 : index
    %206 = vector.load %arg15[%c0_170, %c0_171] : memref<112x84xf32, #tpu.memory_space<vmem>>, vector<80x84xf32>
    %c0_172 = arith.constant 0 : index
    %c0_173 = arith.constant 0 : index
    %c0_174 = arith.constant 0 : index
    %207 = vector.load %arg5[%c0_172, %c0_173, %c0_174] : memref<5x84x160xf32, #tpu.memory_space<vmem>>, vector<1x84x160xf32>
    %208 = vector.shape_cast %207 : vector<1x84x160xf32> to vector<84x160xf32>
    %cst_175 = arith.constant dense<0.000000e+00> : vector<80x160xf32>
    %209 = tpu.matmul %206, %208, %cst_175 {dimension_numbers = #tpu.dot_dimension_numbers<[1], [0], [0], [1], [0, 0, 1, 1], [], []>} : vector<80x84xf32>, vector<84x160xf32>, vector<80x160xf32> -> vector<80x160xf32>
    %210 = arith.addf %205, %209 : vector<80x160xf32>
    %c8_176 = arith.constant 8 : index
    %c0_177 = arith.constant 0 : index
    %211 = vector.load %arg15[%c8_176, %c0_177] : memref<112x84xf32, #tpu.memory_space<vmem>>, vector<80x84xf32>
    %c1_178 = arith.constant 1 : index
    %c0_179 = arith.constant 0 : index
    %c0_180 = arith.constant 0 : index
    %212 = vector.load %arg5[%c1_178, %c0_179, %c0_180] : memref<5x84x160xf32, #tpu.memory_space<vmem>>, vector<1x84x160xf32>
    %213 = vector.shape_cast %212 : vector<1x84x160xf32> to vector<84x160xf32>
    %cst_181 = arith.constant dense<0.000000e+00> : vector<80x160xf32>
    %214 = tpu.matmul %211, %213, %cst_181 {dimension_numbers = #tpu.dot_dimension_numbers<[1], [0], [0], [1], [0, 0, 1, 1], [], []>} : vector<80x84xf32>, vector<84x160xf32>, vector<80x160xf32> -> vector<80x160xf32>
    %215 = arith.addf %210, %214 : vector<80x160xf32>
    %c16_182 = arith.constant 16 : index
    %c0_183 = arith.constant 0 : index
    %216 = vector.load %arg15[%c16_182, %c0_183] : memref<112x84xf32, #tpu.memory_space<vmem>>, vector<80x84xf32>
    %c2_184 = arith.constant 2 : index
    %c0_185 = arith.constant 0 : index
    %c0_186 = arith.constant 0 : index
    %217 = vector.load %arg5[%c2_184, %c0_185, %c0_186] : memref<5x84x160xf32, #tpu.memory_space<vmem>>, vector<1x84x160xf32>
    %218 = vector.shape_cast %217 : vector<1x84x160xf32> to vector<84x160xf32>
    %cst_187 = arith.constant dense<0.000000e+00> : vector<80x160xf32>
    %219 = tpu.matmul %216, %218, %cst_187 {dimension_numbers = #tpu.dot_dimension_numbers<[1], [0], [0], [1], [0, 0, 1, 1], [], []>} : vector<80x84xf32>, vector<84x160xf32>, vector<80x160xf32> -> vector<80x160xf32>
    %220 = arith.addf %215, %219 : vector<80x160xf32>
    %c24_188 = arith.constant 24 : index
    %c0_189 = arith.constant 0 : index
    %221 = vector.load %arg15[%c24_188, %c0_189] : memref<112x84xf32, #tpu.memory_space<vmem>>, vector<80x84xf32>
    %c3_190 = arith.constant 3 : index
    %c0_191 = arith.constant 0 : index
    %c0_192 = arith.constant 0 : index
    %222 = vector.load %arg5[%c3_190, %c0_191, %c0_192] : memref<5x84x160xf32, #tpu.memory_space<vmem>>, vector<1x84x160xf32>
    %223 = vector.shape_cast %222 : vector<1x84x160xf32> to vector<84x160xf32>
    %cst_193 = arith.constant dense<0.000000e+00> : vector<80x160xf32>
    %224 = tpu.matmul %221, %223, %cst_193 {dimension_numbers = #tpu.dot_dimension_numbers<[1], [0], [0], [1], [0, 0, 1, 1], [], []>} : vector<80x84xf32>, vector<84x160xf32>, vector<80x160xf32> -> vector<80x160xf32>
    %225 = arith.addf %220, %224 : vector<80x160xf32>
    %c32_194 = arith.constant 32 : index
    %c0_195 = arith.constant 0 : index
    %226 = vector.load %arg15[%c32_194, %c0_195] : memref<112x84xf32, #tpu.memory_space<vmem>>, vector<80x84xf32>
    %c4_196 = arith.constant 4 : index
    %c0_197 = arith.constant 0 : index
    %c0_198 = arith.constant 0 : index
    %227 = vector.load %arg5[%c4_196, %c0_197, %c0_198] : memref<5x84x160xf32, #tpu.memory_space<vmem>>, vector<1x84x160xf32>
    %228 = vector.shape_cast %227 : vector<1x84x160xf32> to vector<84x160xf32>
    %cst_199 = arith.constant dense<0.000000e+00> : vector<80x160xf32>
    %229 = tpu.matmul %226, %228, %cst_199 {dimension_numbers = #tpu.dot_dimension_numbers<[1], [0], [0], [1], [0, 0, 1, 1], [], []>} : vector<80x84xf32>, vector<84x160xf32>, vector<80x160xf32> -> vector<80x160xf32>
    %230 = arith.addf %225, %229 : vector<80x160xf32>
    %c0_200 = arith.constant 0 : index
    %c0_201 = arith.constant 0 : index
    %231 = vector.load %arg6[%c0_200, %c0_201] : memref<1x160xf32, #tpu.memory_space<vmem>>, vector<1x160xf32>
    %232 = vector.broadcast %231 : vector<1x160xf32> to vector<80x160xf32>
    %233 = arith.addf %230, %232 : vector<80x160xf32>
    %cst_202 = arith.constant 0.000000e+00 : f32
    %234 = vector.broadcast %cst_202 : f32 to vector<80x160xf32>
    %235 = arith.maximumf %233, %234 : vector<80x160xf32>
    %cst_203 = arith.constant 0.000000e+00 : f32
    %236 = vector.broadcast %cst_203 : f32 to vector<8x120xf32>
    %237 = vector.extract_strided_slice %235 {offsets = [0, 0], sizes = [8, 160], strides = [1, 1]} : vector<80x160xf32> to vector<8x160xf32>
    %c0_204 = arith.constant 0 : index
    %c0_205 = arith.constant 0 : index
    %c0_206 = arith.constant 0 : index
    %238 = vector.load %arg7[%c0_204, %c0_205, %c0_206] : memref<10x160x120xf32, #tpu.memory_space<vmem>>, vector<1x160x120xf32>
    %239 = vector.shape_cast %238 : vector<1x160x120xf32> to vector<160x120xf32>
    %cst_207 = arith.constant dense<0.000000e+00> : vector<8x120xf32>
    %240 = tpu.matmul %237, %239, %cst_207 {dimension_numbers = #tpu.dot_dimension_numbers<[1], [0], [0], [1], [0, 0, 1, 1], [], []>} : vector<8x160xf32>, vector<160x120xf32>, vector<8x120xf32> -> vector<8x120xf32>
    %241 = arith.addf %236, %240 : vector<8x120xf32>
    %242 = vector.extract_strided_slice %235 {offsets = [8, 0], sizes = [8, 160], strides = [1, 1]} : vector<80x160xf32> to vector<8x160xf32>
    %c1_208 = arith.constant 1 : index
    %c0_209 = arith.constant 0 : index
    %c0_210 = arith.constant 0 : index
    %243 = vector.load %arg7[%c1_208, %c0_209, %c0_210] : memref<10x160x120xf32, #tpu.memory_space<vmem>>, vector<1x160x120xf32>
    %244 = vector.shape_cast %243 : vector<1x160x120xf32> to vector<160x120xf32>
    %cst_211 = arith.constant dense<0.000000e+00> : vector<8x120xf32>
    %245 = tpu.matmul %242, %244, %cst_211 {dimension_numbers = #tpu.dot_dimension_numbers<[1], [0], [0], [1], [0, 0, 1, 1], [], []>} : vector<8x160xf32>, vector<160x120xf32>, vector<8x120xf32> -> vector<8x120xf32>
    %246 = arith.addf %241, %245 : vector<8x120xf32>
    %247 = vector.extract_strided_slice %235 {offsets = [16, 0], sizes = [8, 160], strides = [1, 1]} : vector<80x160xf32> to vector<8x160xf32>
    %c2_212 = arith.constant 2 : index
    %c0_213 = arith.constant 0 : index
    %c0_214 = arith.constant 0 : index
    %248 = vector.load %arg7[%c2_212, %c0_213, %c0_214] : memref<10x160x120xf32, #tpu.memory_space<vmem>>, vector<1x160x120xf32>
    %249 = vector.shape_cast %248 : vector<1x160x120xf32> to vector<160x120xf32>
    %cst_215 = arith.constant dense<0.000000e+00> : vector<8x120xf32>
    %250 = tpu.matmul %247, %249, %cst_215 {dimension_numbers = #tpu.dot_dimension_numbers<[1], [0], [0], [1], [0, 0, 1, 1], [], []>} : vector<8x160xf32>, vector<160x120xf32>, vector<8x120xf32> -> vector<8x120xf32>
    %251 = arith.addf %246, %250 : vector<8x120xf32>
    %252 = vector.extract_strided_slice %235 {offsets = [24, 0], sizes = [8, 160], strides = [1, 1]} : vector<80x160xf32> to vector<8x160xf32>
    %c3_216 = arith.constant 3 : index
    %c0_217 = arith.constant 0 : index
    %c0_218 = arith.constant 0 : index
    %253 = vector.load %arg7[%c3_216, %c0_217, %c0_218] : memref<10x160x120xf32, #tpu.memory_space<vmem>>, vector<1x160x120xf32>
    %254 = vector.shape_cast %253 : vector<1x160x120xf32> to vector<160x120xf32>
    %cst_219 = arith.constant dense<0.000000e+00> : vector<8x120xf32>
    %255 = tpu.matmul %252, %254, %cst_219 {dimension_numbers = #tpu.dot_dimension_numbers<[1], [0], [0], [1], [0, 0, 1, 1], [], []>} : vector<8x160xf32>, vector<160x120xf32>, vector<8x120xf32> -> vector<8x120xf32>
    %256 = arith.addf %251, %255 : vector<8x120xf32>
    %257 = vector.extract_strided_slice %235 {offsets = [32, 0], sizes = [8, 160], strides = [1, 1]} : vector<80x160xf32> to vector<8x160xf32>
    %c4_220 = arith.constant 4 : index
    %c0_221 = arith.constant 0 : index
    %c0_222 = arith.constant 0 : index
    %258 = vector.load %arg7[%c4_220, %c0_221, %c0_222] : memref<10x160x120xf32, #tpu.memory_space<vmem>>, vector<1x160x120xf32>
    %259 = vector.shape_cast %258 : vector<1x160x120xf32> to vector<160x120xf32>
    %cst_223 = arith.constant dense<0.000000e+00> : vector<8x120xf32>
    %260 = tpu.matmul %257, %259, %cst_223 {dimension_numbers = #tpu.dot_dimension_numbers<[1], [0], [0], [1], [0, 0, 1, 1], [], []>} : vector<8x160xf32>, vector<160x120xf32>, vector<8x120xf32> -> vector<8x120xf32>
    %261 = arith.addf %256, %260 : vector<8x120xf32>
    %262 = vector.extract_strided_slice %235 {offsets = [40, 0], sizes = [8, 160], strides = [1, 1]} : vector<80x160xf32> to vector<8x160xf32>
    %c5_224 = arith.constant 5 : index
    %c0_225 = arith.constant 0 : index
    %c0_226 = arith.constant 0 : index
    %263 = vector.load %arg7[%c5_224, %c0_225, %c0_226] : memref<10x160x120xf32, #tpu.memory_space<vmem>>, vector<1x160x120xf32>
    %264 = vector.shape_cast %263 : vector<1x160x120xf32> to vector<160x120xf32>
    %cst_227 = arith.constant dense<0.000000e+00> : vector<8x120xf32>
    %265 = tpu.matmul %262, %264, %cst_227 {dimension_numbers = #tpu.dot_dimension_numbers<[1], [0], [0], [1], [0, 0, 1, 1], [], []>} : vector<8x160xf32>, vector<160x120xf32>, vector<8x120xf32> -> vector<8x120xf32>
    %266 = arith.addf %261, %265 : vector<8x120xf32>
    %267 = vector.extract_strided_slice %235 {offsets = [48, 0], sizes = [8, 160], strides = [1, 1]} : vector<80x160xf32> to vector<8x160xf32>
    %c6_228 = arith.constant 6 : index
    %c0_229 = arith.constant 0 : index
    %c0_230 = arith.constant 0 : index
    %268 = vector.load %arg7[%c6_228, %c0_229, %c0_230] : memref<10x160x120xf32, #tpu.memory_space<vmem>>, vector<1x160x120xf32>
    %269 = vector.shape_cast %268 : vector<1x160x120xf32> to vector<160x120xf32>
    %cst_231 = arith.constant dense<0.000000e+00> : vector<8x120xf32>
    %270 = tpu.matmul %267, %269, %cst_231 {dimension_numbers = #tpu.dot_dimension_numbers<[1], [0], [0], [1], [0, 0, 1, 1], [], []>} : vector<8x160xf32>, vector<160x120xf32>, vector<8x120xf32> -> vector<8x120xf32>
    %271 = arith.addf %266, %270 : vector<8x120xf32>
    %272 = vector.extract_strided_slice %235 {offsets = [56, 0], sizes = [8, 160], strides = [1, 1]} : vector<80x160xf32> to vector<8x160xf32>
    %c7_232 = arith.constant 7 : index
    %c0_233 = arith.constant 0 : index
    %c0_234 = arith.constant 0 : index
    %273 = vector.load %arg7[%c7_232, %c0_233, %c0_234] : memref<10x160x120xf32, #tpu.memory_space<vmem>>, vector<1x160x120xf32>
    %274 = vector.shape_cast %273 : vector<1x160x120xf32> to vector<160x120xf32>
    %cst_235 = arith.constant dense<0.000000e+00> : vector<8x120xf32>
    %275 = tpu.matmul %272, %274, %cst_235 {dimension_numbers = #tpu.dot_dimension_numbers<[1], [0], [0], [1], [0, 0, 1, 1], [], []>} : vector<8x160xf32>, vector<160x120xf32>, vector<8x120xf32> -> vector<8x120xf32>
    %276 = arith.addf %271, %275 : vector<8x120xf32>
    %277 = vector.extract_strided_slice %235 {offsets = [64, 0], sizes = [8, 160], strides = [1, 1]} : vector<80x160xf32> to vector<8x160xf32>
    %c8_236 = arith.constant 8 : index
    %c0_237 = arith.constant 0 : index
    %c0_238 = arith.constant 0 : index
    %278 = vector.load %arg7[%c8_236, %c0_237, %c0_238] : memref<10x160x120xf32, #tpu.memory_space<vmem>>, vector<1x160x120xf32>
    %279 = vector.shape_cast %278 : vector<1x160x120xf32> to vector<160x120xf32>
    %cst_239 = arith.constant dense<0.000000e+00> : vector<8x120xf32>
    %280 = tpu.matmul %277, %279, %cst_239 {dimension_numbers = #tpu.dot_dimension_numbers<[1], [0], [0], [1], [0, 0, 1, 1], [], []>} : vector<8x160xf32>, vector<160x120xf32>, vector<8x120xf32> -> vector<8x120xf32>
    %281 = arith.addf %276, %280 : vector<8x120xf32>
    %282 = vector.extract_strided_slice %235 {offsets = [72, 0], sizes = [8, 160], strides = [1, 1]} : vector<80x160xf32> to vector<8x160xf32>
    %c9_240 = arith.constant 9 : index
    %c0_241 = arith.constant 0 : index
    %c0_242 = arith.constant 0 : index
    %283 = vector.load %arg7[%c9_240, %c0_241, %c0_242] : memref<10x160x120xf32, #tpu.memory_space<vmem>>, vector<1x160x120xf32>
    %284 = vector.shape_cast %283 : vector<1x160x120xf32> to vector<160x120xf32>
    %cst_243 = arith.constant dense<0.000000e+00> : vector<8x120xf32>
    %285 = tpu.matmul %282, %284, %cst_243 {dimension_numbers = #tpu.dot_dimension_numbers<[1], [0], [0], [1], [0, 0, 1, 1], [], []>} : vector<8x160xf32>, vector<160x120xf32>, vector<8x120xf32> -> vector<8x120xf32>
    %286 = arith.addf %281, %285 : vector<8x120xf32>
    %c0_244 = arith.constant 0 : index
    %c0_245 = arith.constant 0 : index
    %287 = vector.load %arg8[%c0_244, %c0_245] : memref<1x120xf32, #tpu.memory_space<vmem>>, vector<1x120xf32>
    %288 = vector.broadcast %287 : vector<1x120xf32> to vector<8x120xf32>
    %289 = arith.addf %286, %288 : vector<8x120xf32>
    %cst_246 = arith.constant 0.000000e+00 : f32
    %290 = vector.broadcast %cst_246 : f32 to vector<8x120xf32>
    %291 = arith.maximumf %289, %290 : vector<8x120xf32>
    %c0_247 = arith.constant 0 : index
    %c0_248 = arith.constant 0 : index
    %292 = vector.load %arg9[%c0_247, %c0_248] : memref<120x84xf32, #tpu.memory_space<vmem>>, vector<120x84xf32>
    %cst_249 = arith.constant dense<0.000000e+00> : vector<8x84xf32>
    %293 = tpu.matmul %291, %292, %cst_249 {dimension_numbers = #tpu.dot_dimension_numbers<[1], [0], [0], [1], [0, 0, 1, 1], [], []>} : vector<8x120xf32>, vector<120x84xf32>, vector<8x84xf32> -> vector<8x84xf32>
    %c0_250 = arith.constant 0 : index
    %c0_251 = arith.constant 0 : index
    %294 = vector.load %arg10[%c0_250, %c0_251] : memref<1x84xf32, #tpu.memory_space<vmem>>, vector<1x84xf32>
    %295 = vector.broadcast %294 : vector<1x84xf32> to vector<8x84xf32>
    %296 = arith.addf %293, %295 : vector<8x84xf32>
    %cst_252 = arith.constant 0.000000e+00 : f32
    %297 = vector.broadcast %cst_252 : f32 to vector<8x84xf32>
    %298 = arith.maximumf %296, %297 : vector<8x84xf32>
    %c0_253 = arith.constant 0 : index
    %c0_254 = arith.constant 0 : index
    %299 = vector.load %arg11[%c0_253, %c0_254] : memref<84x128xf32, #tpu.memory_space<vmem>>, vector<84x128xf32>
    %cst_255 = arith.constant dense<0.000000e+00> : vector<8x128xf32>
    %300 = tpu.matmul %298, %299, %cst_255 {dimension_numbers = #tpu.dot_dimension_numbers<[1], [0], [0], [1], [0, 0, 1, 1], [], []>} : vector<8x84xf32>, vector<84x128xf32>, vector<8x128xf32> -> vector<8x128xf32>
    %c0_256 = arith.constant 0 : index
    %c0_257 = arith.constant 0 : index
    %301 = vector.load %arg12[%c0_256, %c0_257] : memref<1x128xf32, #tpu.memory_space<vmem>>, vector<1x128xf32>
    %302 = vector.broadcast %301 : vector<1x128xf32> to vector<8x128xf32>
    %303 = arith.addf %300, %302 : vector<8x128xf32>
    %cst_258 = arith.constant dense<0xFF800000> : vector<8xf32>
    %304 = vector.multi_reduction <maximumf>, %303, %cst_258 [1] : vector<8x128xf32> to vector<8xf32>
    %305 = vector.shape_cast %304 : vector<8xf32> to vector<8x1xf32>
    %306 = vector.broadcast %305 : vector<8x1xf32> to vector<8x128xf32>
    %307 = arith.subf %303, %306 : vector<8x128xf32>
    %308 = math.exp %307 : vector<8x128xf32>
    %cst_259 = arith.constant dense<0.000000e+00> : vector<8xf32>
    %309 = vector.multi_reduction <add>, %308, %cst_259 [1] : vector<8x128xf32> to vector<8xf32>
    %310 = vector.shape_cast %309 : vector<8xf32> to vector<8x1xf32>
    %311 = math.log %310 : vector<8x1xf32>
    %312 = vector.broadcast %311 : vector<8x1xf32> to vector<8x128xf32>
    %313 = arith.subf %307, %312 : vector<8x128xf32>
    %c0_260 = arith.constant 0 : index
    %c0_261 = arith.constant 0 : index
    %314 = vector.load %arg13[%c0_260, %c0_261] : memref<8x128xf32, #tpu.memory_space<vmem>>, vector<8x128xf32>
    tpu.vector_store %arg13[%c0_260, %c0_261], %313 {strides = array<i32>} : memref<8x128xf32, #tpu.memory_space<vmem>>, vector<8x128xf32>,
    return
  }
  func.func @transform_0(%arg0: i32) -> (i32, i32, i32) {
    %c0_i32 = arith.constant 0 : i32
    %c0_i32_0 = arith.constant 0 : i32
    %c0_i32_1 = arith.constant 0 : i32
    return %c0_i32, %arg0, %c0_i32_0 : i32, i32, i32
  }
  func.func @transform_1(%arg0: i32) -> (i32, i32, i32) {
    %c0_i32 = arith.constant 0 : i32
    %c0_i32_0 = arith.constant 0 : i32
    %c0_i32_1 = arith.constant 0 : i32
    %c0_i32_2 = arith.constant 0 : i32
    return %c0_i32, %c0_i32_0, %c0_i32_1 : i32, i32, i32
  }
  func.func @transform_2(%arg0: i32) -> (i32, i32) {
    %c0_i32 = arith.constant 0 : i32
    %c0_i32_0 = arith.constant 0 : i32
    %c0_i32_1 = arith.constant 0 : i32
    return %c0_i32, %c0_i32_0 : i32, i32
  }
  func.func @transform_3(%arg0: i32) -> (i32, i32) {
    %c0_i32 = arith.constant 0 : i32
    %c0_i32_0 = arith.constant 0 : i32
    %c0_i32_1 = arith.constant 0 : i32
    return %c0_i32, %c0_i32_0 : i32, i32
  }
  func.func @transform_4(%arg0: i32) -> (i32, i32, i32) {
    %c0_i32 = arith.constant 0 : i32
    %c0_i32_0 = arith.constant 0 : i32
    %c0_i32_1 = arith.constant 0 : i32
    %c0_i32_2 = arith.constant 0 : i32
    return %c0_i32, %c0_i32_0, %c0_i32_1 : i32, i32, i32
  }
  func.func @transform_5(%arg0: i32) -> (i32, i32) {
    %c0_i32 = arith.constant 0 : i32
    %c0_i32_0 = arith.constant 0 : i32
    %c0_i32_1 = arith.constant 0 : i32
    return %c0_i32, %c0_i32_0 : i32, i32
  }
  func.func @transform_6(%arg0: i32) -> (i32, i32, i32) {
    %c0_i32 = arith.constant 0 : i32
    %c0_i32_0 = arith.constant 0 : i32
    %c0_i32_1 = arith.constant 0 : i32
    %c0_i32_2 = arith.constant 0 : i32
    return %c0_i32, %c0_i32_0, %c0_i32_1 : i32, i32, i32
  }
  func.func @transform_7(%arg0: i32) -> (i32, i32) {
    %c0_i32 = arith.constant 0 : i32
    %c0_i32_0 = arith.constant 0 : i32
    %c0_i32_1 = arith.constant 0 : i32
    return %c0_i32, %c0_i32_0 : i32, i32
  }
  func.func @transform_8(%arg0: i32) -> (i32, i32) {
    %c0_i32 = arith.constant 0 : i32
    %c0_i32_0 = arith.constant 0 : i32
    %c0_i32_1 = arith.constant 0 : i32
    return %c0_i32, %c0_i32_0 : i32, i32
  }
  func.func @transform_9(%arg0: i32) -> (i32, i32) {
    %c0_i32 = arith.constant 0 : i32
    %c0_i32_0 = arith.constant 0 : i32
    %c0_i32_1 = arith.constant 0 : i32
    return %c0_i32, %c0_i32_0 : i32, i32
  }
  func.func @transform_10(%arg0: i32) -> (i32, i32) {
    %c0_i32 = arith.constant 0 : i32
    %c0_i32_0 = arith.constant 0 : i32
    %c0_i32_1 = arith.constant 0 : i32
    return %c0_i32, %c0_i32_0 : i32, i32
  }
  func.func @transform_11(%arg0: i32) -> (i32, i32) {
    %c0_i32 = arith.constant 0 : i32
    %c0_i32_0 = arith.constant 0 : i32
    %c0_i32_1 = arith.constant 0 : i32
    return %c0_i32, %c0_i32_0 : i32, i32
  }
  func.func @transform_12(%arg0: i32) -> (i32, i32) {
    %c0_i32 = arith.constant 0 : i32
    %c0_i32_0 = arith.constant 0 : i32
    return %arg0, %c0_i32 : i32, i32
  }
}

</mosaic_0001>

<bundles_post_ra>
// kernel: lenet5_forward.1
= control target key start
LH: loop header
LB: loop body
LE: loop exit
PB: predicated region body
PF: predicated region fallthrough
CT: control target
= control target key end

     0   :  { %vm259_vm0 = vcmask 1043456   ;;  %vm41_vm1 = vcmask 228352   ;;  %v4717_v6 = vmov 0.0   ;;  %vm1973_vm2 = vcmask 326656   ;;  %s7739_s1 = inlined_call_operand.vmem [shape: f32[5,28,168], index: 1, kind: input, shape index: {}]   ;;  %s7740_s0 = inlined_call_operand.vmem [shape: f32[28,8,28], index: 0, kind: input, shape index: {}]   ;;  %s7741_s3 = inlined_call_operand.vmem [shape: f32[168,84], index: 3, kind: input, shape index: {}]   ;;  %s7742_s2 = inlined_call_operand.vmem [shape: f32[1,168], index: 2, kind: input, shape index: {}]   ;;  %s7743_s4 = inlined_call_operand.vmem [shape: f32[5,84,160], index: 4, kind: input, shape index: {}]   ;;  %s7744_s6 = inlined_call_operand.vmem [shape: f32[10,160,120], index: 6, kind: input, shape index: {}]   ;;  %s7745_s5 = inlined_call_operand.vmem [shape: f32[1,160], index: 5, kind: input, shape index: {}]   ;;  %s7746_s7 = inlined_call_operand.vmem [shape: f32[1,120], index: 7, kind: input, shape index: {}]   ;;  %s7747_s9 = inlined_call_operand.vmem [shape: f32[1,84], index: 9, kind: input, shape index: {}]   ;;  %s7748_s8 = inlined_call_operand.vmem [shape: f32[120,84], index: 8, kind: input, shape index: {}]   ;;  %s7749_s10 = inlined_call_operand.vmem [shape: f32[84,128], index: 10, kind: input, shape index: {}]   ;;  %s7750_s11 = inlined_call_operand.vmem [shape: f32[1,128], index: 11, kind: input, shape index: {}]   ;;  %s7751_s12 = inlined_call_operand.vmem [shape: f32[8,128], index: 12, kind: output, shape index: {}]  }
   0x1   :  { %v3974_v0 = vld [vmem:[%s7739_s1 + $0x70] sm:$0xf]  ;;  %v3975_v1 = vld [vmem:[%s7739_s1 + $0x78] sm:$0xf]  ;;  %v3972_v4 = vld [vmem:[%s7739_s1 + $0x60] sm:$0xff]  ;;  %43 = vst.msk [vmem:[#allocation2 + $0x8] sm:$0xff] %vm41_vm1, %v4717_v6 }
   0x2   :  { %v163_v2 = vld [vmem:[%s7739_s1 + $0x30] sm:$0xf]  ;;  %3976 = vmatpush.msk.msra.mxu0 %vm259_vm0, %v3974_v0  ;;  %4005 = vmatpush.msk.msra.mxu1 %vm259_vm0, %v3975_v1  ;;  %v164_v3 = vld [vmem:[%s7739_s1 + $0x38] sm:$0xf]  ;;  %v3973_v5 = vld [vmem:[%s7739_s1 + $0x68] sm:$0xff]  ;;  %42 = vst.msk [vmem:[#allocation2] sm:$0xff] %vm41_vm1, %v4717_v6 }
   0x3   :  { %4034 = vmatpush.msk.msra.mxu2 %vm259_vm0, %v163_v2  ;;  %4063 = vmatpush.msk.msra.mxu3 %vm259_vm0, %v164_v3  ;;  %v161_v7 = vld [vmem:[%s7739_s1 + $0x20] sm:$0xff]  ;;  %v162_v8 = vld [vmem:[%s7739_s1 + $0x28] sm:$0xff]  ;;  %v3970_v9 = vld [vmem:[%s7739_s1 + $0x50] sm:$0xff]  ;;  %127 = vst.msk [vmem:[#allocation2 + $0xf0] sm:$0xff] %vm41_vm1, %v4717_v6  ;;  %vm2262_vm3 = vcmask 687104   ;;  %vm3228_vm4 = vcmask 261120  }
   0x4   :  { %279 = vmatpush.msra.mxu0 %v3972_v4  ;;  %380 = vmatpush.msra.mxu1 %v3973_v5  ;;  %v3971_v10 = vld [vmem:[%s7739_s1 + $0x58] sm:$0xff]  ;;  %v159_v11 = vld [vmem:[%s7739_s1 + $0x10] sm:$0xff]  ;;  %v3968_v13 = vld [vmem:[%s7739_s1 + $0x40] sm:$0xff]  ;;  %128 = vst.msk [vmem:[#allocation2 + $0xf8] sm:$0xff] %vm41_vm1, %v4717_v6  ;;  %vm3860_vm5 = vcmask 982016  }
   0x5   :  { %v160_v12 = vld [vmem:[%s7739_s1 + $0x18] sm:$0xff]  ;;  %490 = vmatpush.msra.mxu2 %v161_v7  ;;  %591 = vmatpush.msra.mxu3 %v162_v8  ;;  %v3969_v14 = vld [vmem:[%s7739_s1 + $0x48] sm:$0xff]  ;;  %v157_v15 = vld [vmem:[%s7739_s1] sm:$0xff] }
   0x6   :  { %280 = vmatpush.msra.mxu0 %v3970_v9  ;;  %381 = vmatpush.msra.mxu1 %v3971_v10  ;;  %v158_v16 = vld [vmem:[%s7739_s1 + $0x8] sm:$0xff]  ;;  %v44_v17 = vld [vmem:[%s7740_s0] sm:$0xff]  ;;  %v3942_v19 = vld [vmem:[%s7740_s0 + $0x10] sm:$0xff] }
   0x7   :  { %491 = vmatpush.msra.mxu2 %v159_v11  ;;  %592 = vmatpush.msra.mxu3 %v160_v12  ;;  %v3941_v18 = vld [vmem:[%s7740_s0 + $0x8] sm:$0xff]  ;;  %45 = vst.msk [vmem:[#allocation2 + $0x10] sm:$0xff] %vm41_vm1, %v44_v17  ;;  %v3943_v20 = vld [vmem:[%s7740_s0 + $0x18] sm:$0xff]  ;;  %v4098_v22 = vld [vmem:[%s7739_s1 + $0xb0] sm:$0xf] }
   0x8   :  { %281 = vmatpush.msra.mxu0 %v3968_v13  ;;  %382 = vmatpush.msra.mxu1 %v3969_v14  ;;  %v130_v21 = vld [vmem:[#allocation2 + $0x8] sm:$0xff]  ;;  %v4099_v23 = vld [vmem:[%s7739_s1 + $0xb8] sm:$0xf]  ;;  %48 = vst.msk [vmem:[#allocation2 + $0x18] sm:$0xff] %vm41_vm1, %v3941_v18  ;;  %v3944_v25 = vld [vmem:[%s7740_s0 + $0x20] sm:$0xff] }
   0x9   :  { %492 = vmatpush.msra.mxu2 %v157_v15  ;;  %593 = vmatpush.msra.mxu3 %v158_v16  ;;  %v129_v24 = vld [vmem:[#allocation2] sm:$0xff]  ;;  %51 = vst.msk [vmem:[#allocation2 + $0x20] sm:$0xff] %vm41_vm1, %v3942_v19  ;;  %v3945_v27 = vld [vmem:[%s7740_s0 + $0x28] sm:$0xff]  ;;  %v3946_v29 = vld [vmem:[%s7740_s0 + $0x30] sm:$0xff] }
   0xa   :  { %3977 = vmatmul.msk.f32.vlgmr.msra.gmra.mxu0 %vm41_vm1, %v130_v21  ;;  %4006 = vmatmul.msk.f32.vlgmr.msra.gmra.mxu1 %vm41_vm1, %v130_v21  ;;  %54 = vst.msk [vmem:[#allocation2 + $0x28] sm:$0xff] %vm41_vm1, %v3943_v20  ;;  %v3947_v31 = vld [vmem:[%s7740_s0 + $0x38] sm:$0xff]  ;;  %v4096_v32 = vld [vmem:[%s7739_s1 + $0xa0] sm:$0xff]  ;;  %v4097_v33 = vld [vmem:[%s7739_s1 + $0xa8] sm:$0xff] }
   0xb   :  { %4035 = vmatmul.msk.f32.vlgmr.msra.gmra.mxu2 %vm41_vm1, %v129_v24  ;;  %4064 = vmatmul.msk.f32.vlgmr.msra.gmra.mxu3 %vm41_vm1, %v129_v24  ;;  %57 = vst.msk [vmem:[#allocation2 + $0x30] sm:$0xff] %vm41_vm1, %v3944_v25  ;;  %v3948_v35 = vld [vmem:[%s7740_s0 + $0x40] sm:$0xff]  ;;  %v3949_v37 = vld [vmem:[%s7740_s0 + $0x48] sm:$0xff]  ;;  %v3950_v39 = vld [vmem:[%s7740_s0 + $0x50] sm:$0xff] }
   0xc   :  { %4100 = vmatpush.msk.msrb.mxu0 %vm259_vm0, %v4098_v22  ;;  %4129 = vmatpush.msk.msrb.mxu1 %vm259_vm0, %v4099_v23  ;;  %60 = vst.msk [vmem:[#allocation2 + $0x38] sm:$0xff] %vm41_vm1, %v3945_v27  ;;  %v3951_v41 = vld [vmem:[%s7740_s0 + $0x58] sm:$0xff]  ;;  %v3952_v43 = vld [vmem:[%s7740_s0 + $0x60] sm:$0xff]  ;;  %v3953_v45 = vld [vmem:[%s7740_s0 + $0x68] sm:$0xff] }
   0xd   :  { %63 = vst.msk [vmem:[#allocation2 + $0x40] sm:$0xff] %vm41_vm1, %v3946_v29  ;;  %v3954_v47 = vld [vmem:[%s7740_s0 + $0x70] sm:$0xff]  ;;  %v4095_v49 = vld [vmem:[%s7739_s1 + $0x98] sm:$0xff]  ;;  %v3956_v53 = vld [vmem:[%s7740_s0 + $0x80] sm:$0xff] }
   0xe   :  { %v4871_v26 = vld [vmem:[#allocation2 + $0x10] sm:$0xff]  ;;  %66 = vst.msk [vmem:[#allocation2 + $0x48] sm:$0xff] %vm41_vm1, %v3947_v31  ;;  %819 = vmatpush.msrb.mxu0 %v4096_v32  ;;  %920 = vmatpush.msrb.mxu1 %v4097_v33  ;;  %v3955_v51 = vld [vmem:[%s7740_s0 + $0x78] sm:$0xff]  ;;  %v3957_v55 = vld [vmem:[%s7740_s0 + $0x88] sm:$0xff] }
   0xf   :  { %v4883_v28 = vld [vmem:[#allocation2 + $0x18] sm:$0xff]  ;;  %69 = vst.msk [vmem:[#allocation2 + $0x50] sm:$0xff] %vm41_vm1, %v3948_v35  ;;  %v4094_v48 = vld [vmem:[%s7739_s1 + $0x90] sm:$0xff]  ;;  %v3960_v1 = vld [vmem:[%s7740_s0 + $0xa0] sm:$0xff] }
  0x10   :  { %v4897_v30 = vld [vmem:[#allocation2 + $0x20] sm:$0xff]  ;;  %72 = vst.msk [vmem:[#allocation2 + $0x58] sm:$0xff] %vm41_vm1, %v3949_v37  ;;  %820 = vmatpush.msrb.mxu0 %v4094_v48  ;;  %921 = vmatpush.msrb.mxu1 %v4095_v49  ;;  %v4164_v56 = vld [vmem:[%s7739_s1 + $0xf0] sm:$0xf]  ;;  %v4165_v57 = vld [vmem:[%s7739_s1 + $0xf8] sm:$0xf] }
  0x11   :  { %v4917_v34 = vld [vmem:[#allocation2 + $0x28] sm:$0xff]  ;;  %75 = vst.msk [vmem:[#allocation2 + $0x60] sm:$0xff] %vm41_vm1, %v3950_v39  ;;  %4166 = vmatpush.msk.msrb.mxu2 %vm259_vm0, %v4164_v56  ;;  %4195 = vmatpush.msk.msrb.mxu3 %vm259_vm0, %v4165_v57  ;;  %v3958_v59 = vld [vmem:[%s7740_s0 + $0x90] sm:$0xff]  ;;  %v3959_v61 = vld [vmem:[%s7740_s0 + $0x98] sm:$0xff] }
  0x12   :  { %3978 = vmatmul.msk.f32.gmra.mxu0 %vm41_vm1, %v4871_v26  ;;  %4007 = vmatmul.msk.f32.gmra.mxu1 %vm41_vm1, %v4871_v26  ;;  %v4931_v36 = vld [vmem:[#allocation2 + $0x30] sm:$0xff]  ;;  %78 = vst.msk [vmem:[#allocation2 + $0x68] sm:$0xff] %vm41_vm1, %v3951_v41  ;;  %v3961_v9 = vld [vmem:[%s7740_s0 + $0xa8] sm:$0xff]  ;;  %v4092_v17 = vld [vmem:[%s7739_s1 + $0x80] sm:$0xff] }
  0x13   :  { %4036 = vmatmul.msk.f32.gmra.mxu2 %vm41_vm1, %v130_v21  ;;  %4065 = vmatmul.msk.f32.gmra.mxu3 %vm41_vm1, %v130_v21  ;;  %v4945_v38 = vld [vmem:[#allocation2 + $0x38] sm:$0xff]  ;;  %81 = vst.msk [vmem:[#allocation2 + $0x70] sm:$0xff] %vm41_vm1, %v3952_v43  ;;  %v4093_v18 = vld [vmem:[%s7739_s1 + $0x88] sm:$0xff]  ;;  %v3962_v19 = vld [vmem:[%s7740_s0 + $0xb0] sm:$0xff] }
  0x14   :  { %v4959_v40 = vld [vmem:[#allocation2 + $0x40] sm:$0xff]  ;;  %84 = vst.msk [vmem:[#allocation2 + $0x78] sm:$0xff] %vm41_vm1, %v3953_v45  ;;  %821 = vmatpush.msrb.mxu0 %v4092_v17  ;;  %922 = vmatpush.msrb.mxu1 %v4093_v18  ;;  %v3963_v29 = vld [vmem:[%s7740_s0 + $0xb8] sm:$0xff] }
  0x15   :  { %v4973_v42 = vld [vmem:[#allocation2 + $0x48] sm:$0xff]  ;;  %87 = vst.msk [vmem:[#allocation2 + $0x80] sm:$0xff] %vm41_vm1, %v3954_v47  ;;  %v3964_v43 = vld [vmem:[%s7740_s0 + $0xc0] sm:$0xff] }
  0x16   :  { %v4987_v44 = vld [vmem:[#allocation2 + $0x50] sm:$0xff]  ;;  %90 = vst.msk [vmem:[#allocation2 + $0x88] sm:$0xff] %vm41_vm1, %v3955_v51  ;;  %v4162_v45 = vld [vmem:[%s7739_s1 + $0xe0] sm:$0xff]  ;;  %v4163_v47 = vld [vmem:[%s7739_s1 + $0xe8] sm:$0xff] }
  0x17   :  { %v5001_v46 = vld [vmem:[#allocation2 + $0x58] sm:$0xff]  ;;  %93 = vst.msk [vmem:[#allocation2 + $0x90] sm:$0xff] %vm41_vm1, %v3956_v53  ;;  %1204 = vmatpush.msrb.mxu2 %v4162_v45  ;;  %1305 = vmatpush.msrb.mxu3 %v4163_v47 }
  0x18   :  { %v5021_v50 = vld [vmem:[#allocation2 + $0x60] sm:$0xff]  ;;  %96 = vst.msk [vmem:[#allocation2 + $0x98] sm:$0xff] %vm41_vm1, %v3957_v55 }
  0x19   :  { %v5035_v52 = vld [vmem:[#allocation2 + $0x68] sm:$0xff]  ;;  %99 = vst.msk [vmem:[#allocation2 + $0xa0] sm:$0xff] %vm41_vm1, %v3958_v59 }
  0x1a   :  { %3979 = vmatmul.msk.f32.gmra.mxu0 %vm41_vm1, %v4883_v28  ;;  %4008 = vmatmul.msk.f32.gmra.mxu1 %vm41_vm1, %v4883_v28  ;;  %v5049_v54 = vld [vmem:[#allocation2 + $0x70] sm:$0xff]  ;;  %102 = vst.msk [vmem:[#allocation2 + $0xa8] sm:$0xff] %vm41_vm1, %v3959_v61  ;;  %v3965_v59 = vld [vmem:[%s7740_s0 + $0xc8] sm:$0xff] }
  0x1b   :  { %4037 = vmatmul.msk.f32.gmra.mxu2 %vm41_vm1, %v4871_v26  ;;  %4066 = vmatmul.msk.f32.gmra.mxu3 %vm41_vm1, %v4871_v26  ;;  %v5071_v58 = vld [vmem:[#allocation2 + $0x78] sm:$0xff]  ;;  %105 = vst.msk [vmem:[#allocation2 + $0xb0] sm:$0xff] %vm41_vm1, %v3960_v1 }
  0x1c   :  { %v5085_v60 = vld [vmem:[#allocation2 + $0x80] sm:$0xff]  ;;  %108 = vst.msk [vmem:[#allocation2 + $0xb8] sm:$0xff] %vm41_vm1, %v3961_v9 }
  0x1d   :  { %v5099_v0 = vld [vmem:[#allocation2 + $0x88] sm:$0xff]  ;;  %111 = vst.msk [vmem:[#allocation2 + $0xc0] sm:$0xff] %vm41_vm1, %v3962_v19 }
  0x1e   :  { %v5117_v8 = vld [vmem:[#allocation2 + $0x90] sm:$0xff]  ;;  %114 = vst.msk [vmem:[#allocation2 + $0xc8] sm:$0xff] %vm41_vm1, %v3963_v29 }
  0x1f   :  { %v5135_v16 = vld [vmem:[#allocation2 + $0x98] sm:$0xff]  ;;  %117 = vst.msk [vmem:[#allocation2 + $0xd0] sm:$0xff] %vm41_vm1, %v3964_v43  ;;  %v4159_v43 = vld [vmem:[%s7739_s1 + $0xc8] sm:$0xff] }
  0x20   :  { %v5159_v27 = vld [vmem:[#allocation2 + $0xa0] sm:$0xff]  ;;  %120 = vst.msk [vmem:[#allocation2 + $0xd8] sm:$0xff] %vm41_vm1, %v3965_v59 }
  0x21   :  { %v5177_v41 = vld [vmem:[#allocation2 + $0xa8] sm:$0xff] }
  0x22   :  { %3980 = vmatmul.msk.f32.gmra.mxu0 %vm41_vm1, %v4897_v30  ;;  %4009 = vmatmul.msk.f32.gmra.mxu1 %vm41_vm1, %v4897_v30  ;;  %v5201_v57 = vld [vmem:[#allocation2 + $0xb0] sm:$0xff] }
  0x23   :  { %4038 = vmatmul.msk.f32.gmra.mxu2 %vm41_vm1, %v4883_v28  ;;  %4067 = vmatmul.msk.f32.gmra.mxu3 %vm41_vm1, %v4883_v28 }
  0x24   :  { %v5237_v18 = vld [vmem:[#allocation2 + $0xc0] sm:$0xff] }
  0x26   :  { %v5277_v59 = vld [vmem:[#allocation2 + $0xd0] sm:$0xff] }
  0x2a   :  { %3981 = vmatmul.msk.f32.gmra.mxu0 %vm41_vm1, %v4917_v34  ;;  %4010 = vmatmul.msk.f32.gmra.mxu1 %vm41_vm1, %v4917_v34 }
  0x2b   :  { %4039 = vmatmul.msk.f32.gmra.mxu2 %vm41_vm1, %v4897_v30  ;;  %4068 = vmatmul.msk.f32.gmra.mxu3 %vm41_vm1, %v4897_v30 }
  0x32   :  { %3982 = vmatmul.msk.f32.gmra.mxu0 %vm41_vm1, %v4931_v36  ;;  %4011 = vmatmul.msk.f32.gmra.mxu1 %vm41_vm1, %v4931_v36 }
  0x33   :  { %4040 = vmatmul.msk.f32.gmra.mxu2 %vm41_vm1, %v4917_v34  ;;  %4069 = vmatmul.msk.f32.gmra.mxu3 %vm41_vm1, %v4917_v34 }
  0x3a   :  { %3983 = vmatmul.msk.f32.gmra.mxu0 %vm41_vm1, %v4945_v38  ;;  %4012 = vmatmul.msk.f32.gmra.mxu1 %vm41_vm1, %v4945_v38 }
  0x3b   :  { %4041 = vmatmul.msk.f32.gmra.mxu2 %vm41_vm1, %v4931_v36  ;;  %4070 = vmatmul.msk.f32.gmra.mxu3 %vm41_vm1, %v4931_v36 }
  0x42   :  { %3984 = vmatmul.msk.f32.gmra.mxu0 %vm41_vm1, %v4959_v40  ;;  %4013 = vmatmul.msk.f32.gmra.mxu1 %vm41_vm1, %v4959_v40 }
  0x43   :  { %4042 = vmatmul.msk.f32.gmra.mxu2 %vm41_vm1, %v4945_v38  ;;  %4071 = vmatmul.msk.f32.gmra.mxu3 %vm41_vm1, %v4945_v38 }
  0x4a   :  { %3985 = vmatmul.msk.f32.gmra.mxu0 %vm41_vm1, %v4973_v42  ;;  %4014 = vmatmul.msk.f32.gmra.mxu1 %vm41_vm1, %v4973_v42 }
  0x4b   :  { %4043 = vmatmul.msk.f32.gmra.mxu2 %vm41_vm1, %v4959_v40  ;;  %4072 = vmatmul.msk.f32.gmra.mxu3 %vm41_vm1, %v4959_v40 }
  0x52   :  { %3986 = vmatmul.msk.f32.gmra.mxu0 %vm41_vm1, %v4987_v44  ;;  %4015 = vmatmul.msk.f32.gmra.mxu1 %vm41_vm1, %v4987_v44 }
  0x53   :  { %4044 = vmatmul.msk.f32.gmra.mxu2 %vm41_vm1, %v4973_v42  ;;  %4073 = vmatmul.msk.f32.gmra.mxu3 %vm41_vm1, %v4973_v42 }
  0x5a   :  { %3987 = vmatmul.msk.f32.gmra.mxu0 %vm41_vm1, %v5001_v46  ;;  %4016 = vmatmul.msk.f32.gmra.mxu1 %vm41_vm1, %v5001_v46 }
  0x5b   :  { %4045 = vmatmul.msk.f32.gmra.mxu2 %vm41_vm1, %v4987_v44  ;;  %4074 = vmatmul.msk.f32.gmra.mxu3 %vm41_vm1, %v4987_v44 }
  0x62   :  { %3988 = vmatmul.msk.f32.gmra.mxu0 %vm41_vm1, %v5021_v50  ;;  %4017 = vmatmul.msk.f32.gmra.mxu1 %vm41_vm1, %v5021_v50 }
  0x63   :  { %4046 = vmatmul.msk.f32.gmra.mxu2 %vm41_vm1, %v5001_v46  ;;  %4075 = vmatmul.msk.f32.gmra.mxu3 %vm41_vm1, %v5001_v46 }
  0x6a   :  { %3989 = vmatmul.msk.f32.gmra.mxu0 %vm41_vm1, %v5035_v52  ;;  %4018 = vmatmul.msk.f32.gmra.mxu1 %vm41_vm1, %v5035_v52 }
  0x6b   :  { %4047 = vmatmul.msk.f32.gmra.mxu2 %vm41_vm1, %v5021_v50  ;;  %4076 = vmatmul.msk.f32.gmra.mxu3 %vm41_vm1, %v5021_v50 }
  0x72   :  { %3990 = vmatmul.msk.f32.gmra.mxu0 %vm41_vm1, %v5049_v54  ;;  %4019 = vmatmul.msk.f32.gmra.mxu1 %vm41_vm1, %v5049_v54 }
  0x73   :  { %4048 = vmatmul.msk.f32.gmra.mxu2 %vm41_vm1, %v5035_v52  ;;  %4077 = vmatmul.msk.f32.gmra.mxu3 %vm41_vm1, %v5035_v52 }
  0x7a   :  { %3991 = vmatmul.msk.f32.gmra.mxu0 %vm41_vm1, %v5071_v58  ;;  %4020 = vmatmul.msk.f32.gmra.mxu1 %vm41_vm1, %v5071_v58 }
  0x7b   :  { %4049 = vmatmul.msk.f32.gmra.mxu2 %vm41_vm1, %v5049_v54  ;;  %4078 = vmatmul.msk.f32.gmra.mxu3 %vm41_vm1, %v5049_v54 }
  0x82   :  { %3992 = vmatmul.msk.f32.gmra.mxu0 %vm41_vm1, %v5085_v60  ;;  %4021 = vmatmul.msk.f32.gmra.mxu1 %vm41_vm1, %v5085_v60 }
  0x83   :  { %4050 = vmatmul.msk.f32.gmra.mxu2 %vm41_vm1, %v5071_v58  ;;  %4079 = vmatmul.msk.f32.gmra.mxu3 %vm41_vm1, %v5071_v58 }
  0x87   :  { %v283_v62 = vpop.f32.mrf.mxu0  ;;  %v384_v63 = vpop.f32.mrf.mxu1 }
  0x8a   :  { %3993 = vmatmul.msk.f32.gmra.mxu0 %vm41_vm1, %v5099_v0  ;;  %4022 = vmatmul.msk.f32.gmra.mxu1 %vm41_vm1, %v5099_v0 }
  0x8b   :  { %4051 = vmatmul.msk.f32.gmra.mxu2 %vm41_vm1, %v5085_v60  ;;  %4080 = vmatmul.msk.f32.gmra.mxu3 %vm41_vm1, %v5085_v60 }
  0x8e   :  { %v494_v2 = vpop.f32.mrf.mxu2  ;;  %v595_v3 = vpop.f32.mrf.mxu3 }
  0x8f   :  { %v5113_v4 = vadd.f32 %v494_v2, %v283_v62  ;;  %v5115_v5 = vadd.f32 %v595_v3, %v384_v63  ;;  %v286_v6 = vpop.f32.mrf.mxu0  ;;  %v387_v7 = vpop.f32.mrf.mxu1 }
  0x92   :  { %3994 = vmatmul.msk.f32.gmra.mxu0 %vm41_vm1, %v5117_v8  ;;  %4023 = vmatmul.msk.f32.gmra.mxu1 %vm41_vm1, %v5117_v8 }
  0x93   :  { %4052 = vmatmul.msk.f32.gmra.mxu2 %vm41_vm1, %v5099_v0  ;;  %4081 = vmatmul.msk.f32.gmra.mxu3 %vm41_vm1, %v5099_v0 }
  0x96   :  { %v497_v10 = vpop.f32.mrf.mxu2  ;;  %v598_v11 = vpop.f32.mrf.mxu3 }
  0x97   :  { %v5131_v12 = vadd.f32 %v497_v10, %v286_v6  ;;  %v5133_v13 = vadd.f32 %v598_v11, %v387_v7  ;;  %v289_v14 = vpop.f32.mrf.mxu0  ;;  %v390_v15 = vpop.f32.mrf.mxu1  ;;  %v5219_v6 = vld [vmem:[#allocation2 + $0xb8] sm:$0xff]  ;;  %v3966_v7 = vld [vmem:[%s7740_s0 + $0xd0] sm:$0xff] }
  0x98   :  { %123 = vst.msk [vmem:[#allocation2 + $0xe0] sm:$0xff] %vm41_vm1, %v3966_v7 }
  0x9a   :  { %3995 = vmatmul.msk.f32.gmra.mxu0 %vm41_vm1, %v5135_v16  ;;  %4024 = vmatmul.msk.f32.gmra.mxu1 %vm41_vm1, %v5135_v16 }
  0x9b   :  { %4053 = vmatmul.msk.f32.gmra.mxu2 %vm41_vm1, %v5117_v8  ;;  %4082 = vmatmul.msk.f32.gmra.mxu3 %vm41_vm1, %v5117_v8 }
  0x9e   :  { %v500_v20 = vpop.f32.mrf.mxu2  ;;  %v601_v21 = vpop.f32.mrf.mxu3 }
  0x9f   :  { %v5155_v22 = vadd.f32 %v500_v20, %v289_v14  ;;  %v5157_v23 = vadd.f32 %v601_v21, %v390_v15  ;;  %v292_v24 = vpop.f32.mrf.mxu0  ;;  %v393_v25 = vpop.f32.mrf.mxu1 }
  0xa2   :  { %3996 = vmatmul.msk.f32.gmra.mxu0 %vm41_vm1, %v5159_v27  ;;  %4025 = vmatmul.msk.f32.gmra.mxu1 %vm41_vm1, %v5159_v27 }
  0xa3   :  { %4054 = vmatmul.msk.f32.gmra.mxu2 %vm41_vm1, %v5135_v16  ;;  %4083 = vmatmul.msk.f32.gmra.mxu3 %vm41_vm1, %v5135_v16 }
  0xa6   :  { %v503_v31 = vpop.f32.mrf.mxu2  ;;  %v604_v32 = vpop.f32.mrf.mxu3 }
  0xa7   :  { %v5173_v33 = vadd.f32 %v503_v31, %v292_v24  ;;  %v5175_v35 = vadd.f32 %v604_v32, %v393_v25  ;;  %v295_v37 = vpop.f32.mrf.mxu0  ;;  %v396_v39 = vpop.f32.mrf.mxu1  ;;  %v5251_v31 = vld [vmem:[#allocation2 + $0xc8] sm:$0xff]  ;;  %v4160_v32 = vld [vmem:[%s7739_s1 + $0xd0] sm:$0xff] }
  0xa8   :  { %1205 = vmatpush.msrb.mxu2 %v4160_v32 }
  0xaa   :  { %3997 = vmatmul.msk.f32.gmra.mxu0 %vm41_vm1, %v5177_v41  ;;  %4026 = vmatmul.msk.f32.gmra.mxu1 %vm41_vm1, %v5177_v41 }
  0xab   :  { %4055 = vmatmul.msk.f32.gmra.mxu2 %vm41_vm1, %v5159_v27  ;;  %4084 = vmatmul.msk.f32.gmra.mxu3 %vm41_vm1, %v5159_v27 }
  0xae   :  { %v506_v48 = vpop.f32.mrf.mxu2  ;;  %v607_v49 = vpop.f32.mrf.mxu3 }
  0xaf   :  { %v5197_v51 = vadd.f32 %v506_v48, %v295_v37  ;;  %v5199_v53 = vadd.f32 %v607_v49, %v396_v39  ;;  %v298_v55 = vpop.f32.mrf.mxu0  ;;  %v399_v56 = vpop.f32.mrf.mxu1  ;;  %v4161_v37 = vld [vmem:[%s7739_s1 + $0xd8] sm:$0xff]  ;;  %v4158_v39 = vld [vmem:[%s7739_s1 + $0xc0] sm:$0xff] }
  0xb0   :  { %1306 = vmatpush.msrb.mxu3 %v4161_v37  ;;  %1206 = vmatpush.msrb.mxu2 %v4158_v39  ;;  %v5313_v39 = vld [vmem:[#allocation2 + $0xe0] sm:$0xff] }
  0xb2   :  { %3998 = vmatmul.msk.f32.gmra.mxu0 %vm41_vm1, %v5201_v57  ;;  %4027 = vmatmul.msk.f32.gmra.mxu1 %vm41_vm1, %v5201_v57 }
  0xb3   :  { %4056 = vmatmul.msk.f32.gmra.mxu2 %vm41_vm1, %v5177_v41  ;;  %4085 = vmatmul.msk.f32.gmra.mxu3 %vm41_vm1, %v5177_v41 }
  0xb4   :  { %1307 = vmatpush.msrb.mxu3 %v4159_v43 }
  0xb6   :  { %v509_v61 = vpop.f32.mrf.mxu2  ;;  %v610_v62 = vpop.f32.mrf.mxu3 }
  0xb7   :  { %v5215_v63 = vadd.f32 %v509_v61, %v298_v55  ;;  %v5217_v1 = vadd.f32 %v610_v62, %v399_v56  ;;  %v301_v2 = vpop.f32.mrf.mxu0  ;;  %v402_v3 = vpop.f32.mrf.mxu1  ;;  %v4230_v61 = vld [vmem:[%s7739_s1 + $0x130] sm:$0xf]  ;;  %v4231_v62 = vld [vmem:[%s7739_s1 + $0x138] sm:$0xf] }
  0xb8   :  { %4232 = vmatpush.msk.msra.mxu0 %vm259_vm0, %v4230_v61  ;;  %4261 = vmatpush.msk.msra.mxu1 %vm259_vm0, %v4231_v62 }
  0xba   :  { %3999 = vmatmul.msk.f32.gmra.mxu0 %vm41_vm1, %v5219_v6  ;;  %4028 = vmatmul.msk.f32.gmra.mxu1 %vm41_vm1, %v5219_v6 }
  0xbb   :  { %4057 = vmatmul.msk.f32.gmra.mxu2 %vm41_vm1, %v5201_v57  ;;  %4086 = vmatmul.msk.f32.gmra.mxu3 %vm41_vm1, %v5201_v57 }
  0xbe   :  { %v512_v9 = vpop.f32.mrf.mxu2  ;;  %v613_v10 = vpop.f32.mrf.mxu3 }
  0xbf   :  { %v5233_v11 = vadd.f32 %v512_v9, %v301_v2  ;;  %v5235_v14 = vadd.f32 %v613_v10, %v402_v3  ;;  %v304_v15 = vpop.f32.mrf.mxu0  ;;  %v405_v17 = vpop.f32.mrf.mxu1 }
  0xc2   :  { %4000 = vmatmul.msk.f32.gmra.mxu0 %vm41_vm1, %v5237_v18  ;;  %4029 = vmatmul.msk.f32.gmra.mxu1 %vm41_vm1, %v5237_v18 }
  0xc3   :  { %4058 = vmatmul.msk.f32.gmra.mxu2 %vm41_vm1, %v5219_v6  ;;  %4087 = vmatmul.msk.f32.gmra.mxu3 %vm41_vm1, %v5219_v6 }
  0xc6   :  { %v515_v19 = vpop.f32.mrf.mxu2  ;;  %v616_v20 = vpop.f32.mrf.mxu3 }
  0xc7   :  { %v5247_v21 = vadd.f32 %v515_v19, %v304_v15  ;;  %v5249_v24 = vadd.f32 %v616_v20, %v405_v17  ;;  %v307_v25 = vpop.f32.mrf.mxu0  ;;  %v408_v29 = vpop.f32.mrf.mxu1  ;;  %v5299_v17 = vld [vmem:[#allocation2 + $0xd8] sm:$0xff] }
  0xca   :  { %4001 = vmatmul.msk.f32.gmra.mxu0 %vm41_vm1, %v5251_v31  ;;  %4030 = vmatmul.msk.f32.gmra.mxu1 %vm41_vm1, %v5251_v31 }
  0xcb   :  { %4059 = vmatmul.msk.f32.gmra.mxu2 %vm41_vm1, %v5237_v18  ;;  %4088 = vmatmul.msk.f32.gmra.mxu3 %vm41_vm1, %v5237_v18 }
  0xce   :  { %v518_v45 = vpop.f32.mrf.mxu2  ;;  %v619_v47 = vpop.f32.mrf.mxu3 }
  0xcf   :  { %v5273_v48 = vadd.f32 %v518_v45, %v307_v25  ;;  %v5275_v49 = vadd.f32 %v619_v47, %v408_v29  ;;  %v310_v55 = vpop.f32.mrf.mxu0  ;;  %v411_v56 = vpop.f32.mrf.mxu1 }
  0xd2   :  { %4002 = vmatmul.msk.f32.gmra.mxu0 %vm41_vm1, %v5277_v59  ;;  %4031 = vmatmul.msk.f32.gmra.mxu1 %vm41_vm1, %v5277_v59 }
  0xd3   :  { %4060 = vmatmul.msk.f32.gmra.mxu2 %vm41_vm1, %v5251_v31  ;;  %4089 = vmatmul.msk.f32.gmra.mxu3 %vm41_vm1, %v5251_v31 }
  0xd6   :  { %v521_v2 = vpop.f32.mrf.mxu2  ;;  %v622_v3 = vpop.f32.mrf.mxu3 }
  0xd7   :  { %v5295_v7 = vadd.f32 %v521_v2, %v310_v55  ;;  %v5297_v9 = vadd.f32 %v622_v3, %v411_v56  ;;  %v313_v10 = vpop.f32.mrf.mxu0  ;;  %v414_v15 = vpop.f32.mrf.mxu1 }
  0xda   :  { %4003 = vmatmul.msk.f32.gmra.mxu0 %vm41_vm1, %v5299_v17  ;;  %4032 = vmatmul.msk.f32.gmra.mxu1 %vm41_vm1, %v5299_v17 }
  0xdb   :  { %4061 = vmatmul.msk.f32.gmra.mxu2 %vm41_vm1, %v5277_v59  ;;  %4090 = vmatmul.msk.f32.gmra.mxu3 %vm41_vm1, %v5277_v59 }
  0xde   :  { %v524_v19 = vpop.f32.mrf.mxu2  ;;  %v625_v20 = vpop.f32.mrf.mxu3 }
  0xdf   :  { %v5309_v25 = vadd.f32 %v524_v19, %v313_v10  ;;  %v5311_v29 = vadd.f32 %v625_v20, %v414_v15  ;;  %v316_v32 = vpop.f32.mrf.mxu0  ;;  %v417_v37 = vpop.f32.mrf.mxu1 }
  0xe2   :  { %4004 = vmatmul.msk.f32.gmra.mxu0 %vm41_vm1, %v5313_v39  ;;  %4033 = vmatmul.msk.f32.gmra.mxu1 %vm41_vm1, %v5313_v39 }
  0xe3   :  { %4062 = vmatmul.msk.f32.gmra.mxu2 %vm41_vm1, %v5299_v17  ;;  %4091 = vmatmul.msk.f32.gmra.mxu3 %vm41_vm1, %v5299_v17 }
  0xe6   :  { %v527_v43 = vpop.f32.mrf.mxu2  ;;  %v628_v45 = vpop.f32.mrf.mxu3 }
  0xe7   :  { %v5323_v47 = vadd.f32 %v527_v43, %v316_v32  ;;  %v5325_v55 = vadd.f32 %v628_v45, %v417_v37  ;;  %v319_v56 = vpop.f32.mrf.mxu0  ;;  %v420_v61 = vpop.f32.mrf.mxu1 }
  0xe9   :  { %7754 = vst [vmem:[#allocation4_spill] sm:$0xff] %v5323_v47 }
  0xea   :  { %7755 = vst [vmem:[#allocation5_spill] sm:$0xff] %v5325_v55  ;;  %4101 = vmatmul.msk.f32.vlgmr.msrb.gmra.mxu0 %vm41_vm1, %v4871_v26  ;;  %4130 = vmatmul.msk.f32.vlgmr.msrb.gmra.mxu1 %vm41_vm1, %v4871_v26 }
  0xeb   :  { %4167 = vmatmul.msk.f32.vlgmr.msrb.gmra.mxu2 %vm41_vm1, %v4883_v28  ;;  %4196 = vmatmul.msk.f32.vlgmr.msrb.gmra.mxu3 %vm41_vm1, %v4883_v28 }
  0xee   :  { %v530_v62 = vpop.f32.mrf.mxu2  ;;  %v631_v2 = vpop.f32.mrf.mxu3 }
  0xef   :  { %v5335_v3 = vadd.f32 %v530_v62, %v319_v56  ;;  %v5337_v10 = vadd.f32 %v631_v2, %v420_v61  ;;  %v322_v15 = vpop.f32.mrf.mxu0  ;;  %v423_v19 = vpop.f32.mrf.mxu1 }
  0xf1   :  { %7756 = vst [vmem:[#allocation6_spill] sm:$0xff] %v5335_v3 }
  0xf2   :  { %7757 = vst [vmem:[#allocation7_spill] sm:$0xff] %v5337_v10  ;;  %4102 = vmatmul.msk.f32.gmra.mxu0 %vm41_vm1, %v4883_v28  ;;  %4131 = vmatmul.msk.f32.gmra.mxu1 %vm41_vm1, %v4883_v28 }
  0xf3   :  { %4168 = vmatmul.msk.f32.gmra.mxu2 %vm41_vm1, %v4897_v30  ;;  %4197 = vmatmul.msk.f32.gmra.mxu3 %vm41_vm1, %v4897_v30 }
  0xf6   :  { %v533_v26 = vpop.f32.mrf.mxu2  ;;  %v634_v20 = vpop.f32.mrf.mxu3 }
  0xf7   :  { %v5347_v32 = vadd.f32 %v533_v26, %v322_v15  ;;  %v5349_v37 = vadd.f32 %v634_v20, %v423_v19  ;;  %v325_v43 = vpop.f32.mrf.mxu0  ;;  %v426_v45 = vpop.f32.mrf.mxu1 }
  0xf9   :  { %7758 = vst [vmem:[#allocation8_spill] sm:$0xff] %v5347_v32 }
  0xfa   :  { %7759 = vst [vmem:[#allocation9_spill] sm:$0xff] %v5349_v37  ;;  %4103 = vmatmul.msk.f32.gmra.mxu0 %vm41_vm1, %v4897_v30  ;;  %4132 = vmatmul.msk.f32.gmra.mxu1 %vm41_vm1, %v4897_v30 }
  0xfb   :  { %4169 = vmatmul.msk.f32.gmra.mxu2 %vm41_vm1, %v4917_v34  ;;  %4198 = vmatmul.msk.f32.gmra.mxu3 %vm41_vm1, %v4917_v34 }
  0xfe   :  { %v536_v28 = vpop.f32.mrf.mxu2  ;;  %v637_v56 = vpop.f32.mrf.mxu3 }
  0xff   :  { %v5359_v61 = vadd.f32 %v536_v28, %v325_v43  ;;  %v5361_v62 = vadd.f32 %v637_v56, %v426_v45  ;;  %v328_v2 = vpop.f32.mrf.mxu0  ;;  %v429_v15 = vpop.f32.mrf.mxu1  ;;  %v4228_v28 = vld [vmem:[%s7739_s1 + $0x120] sm:$0xff] }
 0x100   :  { %1589 = vmatpush.msra.mxu0 %v4228_v28 }
 0x101   :  { %7760 = vst [vmem:[#allocation10_spill] sm:$0xff] %v5359_v61 }
 0x102   :  { %7761 = vst [vmem:[#allocation11_spill] sm:$0xff] %v5361_v62  ;;  %4104 = vmatmul.msk.f32.gmra.mxu0 %vm41_vm1, %v4917_v34  ;;  %4133 = vmatmul.msk.f32.gmra.mxu1 %vm41_vm1, %v4917_v34  ;;  %v4229_v34 = vld [vmem:[%s7739_s1 + $0x128] sm:$0xff] }
 0x103   :  { %4170 = vmatmul.msk.f32.gmra.mxu2 %vm41_vm1, %v4931_v36  ;;  %4199 = vmatmul.msk.f32.gmra.mxu3 %vm41_vm1, %v4931_v36 }
 0x104   :  { %1690 = vmatpush.msra.mxu1 %v4229_v34 }
 0x106   :  { %v539_v30 = vpop.f32.mrf.mxu2  ;;  %v640_v19 = vpop.f32.mrf.mxu3 }
 0x107   :  { %v5371_v26 = vadd.f32 %v539_v30, %v328_v2  ;;  %v5373_v20 = vadd.f32 %v640_v19, %v429_v15  ;;  %v331_v43 = vpop.f32.mrf.mxu0  ;;  %v432_v45 = vpop.f32.mrf.mxu1 }
 0x109   :  { %7762 = vst [vmem:[#allocation12_spill] sm:$0xff] %v5371_v26 }
 0x10a   :  { %7763 = vst [vmem:[#allocation13_spill] sm:$0xff] %v5373_v20  ;;  %4105 = vmatmul.msk.f32.gmra.mxu0 %vm41_vm1, %v4931_v36  ;;  %4134 = vmatmul.msk.f32.gmra.mxu1 %vm41_vm1, %v4931_v36  ;;  %v1453_v20 = vld [vmem:[#allocation2 + $0x40] sm:$0xff] }
 0x10b   :  { %4171 = vmatmul.msk.f32.gmra.mxu2 %vm41_vm1, %v4945_v38  ;;  %4200 = vmatmul.msk.f32.gmra.mxu3 %vm41_vm1, %v4945_v38 }
 0x10e   :  { %v542_v56 = vpop.f32.mrf.mxu2  ;;  %v643_v2 = vpop.f32.mrf.mxu3 }
 0x10f   :  { %v5389_v15 = vadd.f32 %v542_v56, %v331_v43  ;;  %v5391_v30 = vadd.f32 %v643_v2, %v432_v45  ;;  %v334_v19 = vpop.f32.mrf.mxu0  ;;  %v435_v28 = vpop.f32.mrf.mxu1 }
 0x111   :  { %7764 = vst [vmem:[#allocation14_spill] sm:$0xff] %v5389_v15 }
 0x112   :  { %7765 = vst [vmem:[#allocation15_spill] sm:$0xff] %v5391_v30  ;;  %4106 = vmatmul.msk.f32.gmra.mxu0 %vm41_vm1, %v4945_v38  ;;  %4135 = vmatmul.msk.f32.gmra.mxu1 %vm41_vm1, %v4945_v38 }
 0x113   :  { %4172 = vmatmul.msk.f32.gmra.mxu2 %vm41_vm1, %v4959_v40  ;;  %4201 = vmatmul.msk.f32.gmra.mxu3 %vm41_vm1, %v4959_v40 }
 0x116   :  { %v545_v36 = vpop.f32.mrf.mxu2  ;;  %v646_v34 = vpop.f32.mrf.mxu3 }
 0x117   :  { %v5401_v43 = vadd.f32 %v545_v36, %v334_v19  ;;  %v5403_v45 = vadd.f32 %v646_v34, %v435_v28  ;;  %v337_v56 = vpop.f32.mrf.mxu0  ;;  %v438_v2 = vpop.f32.mrf.mxu1 }
 0x119   :  { %7766 = vst [vmem:[#allocation16_spill] sm:$0xff] %v5401_v43 }
 0x11a   :  { %7767 = vst [vmem:[#allocation17_spill] sm:$0xff] %v5403_v45  ;;  %4107 = vmatmul.msk.f32.gmra.mxu0 %vm41_vm1, %v4959_v40  ;;  %4136 = vmatmul.msk.f32.gmra.mxu1 %vm41_vm1, %v4959_v40 }
 0x11b   :  { %4173 = vmatmul.msk.f32.gmra.mxu2 %vm41_vm1, %v4973_v42  ;;  %4202 = vmatmul.msk.f32.gmra.mxu3 %vm41_vm1, %v4973_v42 }
 0x11e   :  { %v548_v38 = vpop.f32.mrf.mxu2  ;;  %v649_v30 = vpop.f32.mrf.mxu3 }
 0x11f   :  { %v5413_v19 = vadd.f32 %v548_v38, %v337_v56  ;;  %v5415_v28 = vadd.f32 %v649_v30, %v438_v2  ;;  %v340_v36 = vpop.f32.mrf.mxu0  ;;  %v441_v34 = vpop.f32.mrf.mxu1 }
 0x121   :  { %7768 = vst [vmem:[#allocation18_spill] sm:$0xff] %v5413_v19  ;;  %v1452_v19 = vld [vmem:[#allocation2 + $0x38] sm:$0xff] }
 0x122   :  { %7769 = vst [vmem:[#allocation19_spill] sm:$0xff] %v5415_v28  ;;  %4108 = vmatmul.msk.f32.gmra.mxu0 %vm41_vm1, %v4973_v42  ;;  %4137 = vmatmul.msk.f32.gmra.mxu1 %vm41_vm1, %v4973_v42 }
 0x123   :  { %4174 = vmatmul.msk.f32.gmra.mxu2 %vm41_vm1, %v4987_v44  ;;  %4203 = vmatmul.msk.f32.gmra.mxu3 %vm41_vm1, %v4987_v44 }
 0x126   :  { %v551_v40 = vpop.f32.mrf.mxu2  ;;  %v652_v45 = vpop.f32.mrf.mxu3 }
 0x127   :  { %v5425_v56 = vadd.f32 %v551_v40, %v340_v36  ;;  %v5427_v30 = vadd.f32 %v652_v45, %v441_v34  ;;  %v343_v2 = vpop.f32.mrf.mxu0  ;;  %v444_v38 = vpop.f32.mrf.mxu1 }
 0x129   :  { %7770 = vst [vmem:[#allocation20_spill] sm:$0xff] %v5425_v56 }
 0x12a   :  { %7771 = vst [vmem:[#allocation21_spill] sm:$0xff] %v5427_v30  ;;  %4109 = vmatmul.msk.f32.gmra.mxu0 %vm41_vm1, %v4987_v44  ;;  %4138 = vmatmul.msk.f32.gmra.mxu1 %vm41_vm1, %v4987_v44 }
 0x12b   :  { %4175 = vmatmul.msk.f32.gmra.mxu2 %vm41_vm1, %v5001_v46  ;;  %4204 = vmatmul.msk.f32.gmra.mxu3 %vm41_vm1, %v5001_v46 }
 0x12e   :  { %v554_v42 = vpop.f32.mrf.mxu2  ;;  %v655_v28 = vpop.f32.mrf.mxu3 }
 0x12f   :  { %v5437_v36 = vadd.f32 %v554_v42, %v343_v2  ;;  %v5439_v45 = vadd.f32 %v655_v28, %v444_v38  ;;  %v346_v34 = vpop.f32.mrf.mxu0  ;;  %v447_v40 = vpop.f32.mrf.mxu1 }
 0x131   :  { %7772 = vst [vmem:[#allocation22_spill] sm:$0xff] %v5437_v36  ;;  %v1451_v36 = vld [vmem:[#allocation2 + $0x30] sm:$0xff] }
 0x132   :  { %7773 = vst [vmem:[#allocation23_spill] sm:$0xff] %v5439_v45  ;;  %4110 = vmatmul.msk.f32.gmra.mxu0 %vm41_vm1, %v5001_v46  ;;  %4139 = vmatmul.msk.f32.gmra.mxu1 %vm41_vm1, %v5001_v46 }
 0x133   :  { %4176 = vmatmul.msk.f32.gmra.mxu2 %vm41_vm1, %v5021_v50  ;;  %4205 = vmatmul.msk.f32.gmra.mxu3 %vm41_vm1, %v5021_v50 }
 0x136   :  { %v557_v44 = vpop.f32.mrf.mxu2  ;;  %v658_v30 = vpop.f32.mrf.mxu3 }
 0x137   :  { %v5449_v2 = vadd.f32 %v557_v44, %v346_v34  ;;  %v5451_v28 = vadd.f32 %v658_v30, %v447_v40  ;;  %v349_v38 = vpop.f32.mrf.mxu0  ;;  %v450_v42 = vpop.f32.mrf.mxu1 }
 0x139   :  { %7774 = vst [vmem:[#allocation24_spill] sm:$0xff] %v5449_v2 }
 0x13a   :  { %7775 = vst [vmem:[#allocation25_spill] sm:$0xff] %v5451_v28  ;;  %4111 = vmatmul.msk.f32.gmra.mxu0 %vm41_vm1, %v5021_v50  ;;  %4140 = vmatmul.msk.f32.gmra.mxu1 %vm41_vm1, %v5021_v50  ;;  %v4226_v28 = vld [vmem:[%s7739_s1 + $0x110] sm:$0xff]  ;;  %v4227_v50 = vld [vmem:[%s7739_s1 + $0x118] sm:$0xff] }
 0x13b   :  { %4177 = vmatmul.msk.f32.gmra.mxu2 %vm41_vm1, %v5035_v52  ;;  %4206 = vmatmul.msk.f32.gmra.mxu3 %vm41_vm1, %v5035_v52 }
 0x13c   :  { %1590 = vmatpush.msra.mxu0 %v4226_v28  ;;  %1691 = vmatpush.msra.mxu1 %v4227_v50 }
 0x13e   :  { %v560_v46 = vpop.f32.mrf.mxu2  ;;  %v661_v45 = vpop.f32.mrf.mxu3 }
 0x13f   :  { %v5461_v34 = vadd.f32 %v560_v46, %v349_v38  ;;  %v5463_v30 = vadd.f32 %v661_v45, %v450_v42  ;;  %v352_v40 = vpop.f32.mrf.mxu0  ;;  %v453_v44 = vpop.f32.mrf.mxu1 }
 0x141   :  { %7776 = vst [vmem:[#allocation26_spill] sm:$0xff] %v5461_v34  ;;  %v1958_v34 = vld [vmem:[%s7741_s3 + $0x30] sm:$0xff] }
 0x142   :  { %7777 = vst [vmem:[#allocation27_spill] sm:$0xff] %v5463_v30  ;;  %4112 = vmatmul.msk.f32.gmra.mxu0 %vm41_vm1, %v5035_v52  ;;  %4141 = vmatmul.msk.f32.gmra.mxu1 %vm41_vm1, %v5035_v52 }
 0x143   :  { %4178 = vmatmul.msk.f32.gmra.mxu2 %vm41_vm1, %v5049_v54  ;;  %4207 = vmatmul.msk.f32.gmra.mxu3 %vm41_vm1, %v5049_v54 }
 0x146   :  { %v563_v45 = vpop.f32.mrf.mxu2  ;;  %v664_v38 = vpop.f32.mrf.mxu3 }
 0x147   :  { %v5479_v42 = vadd.f32 %v563_v45, %v352_v40  ;;  %v5481_v46 = vadd.f32 %v664_v38, %v453_v44  ;;  %v355_v28 = vpop.f32.mrf.mxu0  ;;  %v456_v50 = vpop.f32.mrf.mxu1 }
 0x149   :  { %7778 = vst [vmem:[#allocation28_spill] sm:$0xff] %v5479_v42  ;;  %v1450_v42 = vld [vmem:[#allocation2 + $0x28] sm:$0xff] }
 0x14a   :  { %7779 = vst [vmem:[#allocation29_spill] sm:$0xff] %v5481_v46  ;;  %4113 = vmatmul.msk.f32.gmra.mxu0 %vm41_vm1, %v5049_v54  ;;  %4142 = vmatmul.msk.f32.gmra.mxu1 %vm41_vm1, %v5049_v54  ;;  %v1967_v54 = vld [vmem:[%s7741_s3 + $0x78] sm:$0xff] }
 0x14b   :  { %4179 = vmatmul.msk.f32.gmra.mxu2 %vm41_vm1, %v5071_v58  ;;  %4208 = vmatmul.msk.f32.gmra.mxu3 %vm41_vm1, %v5071_v58 }
 0x14c   :  { %2058 = vmatpush.msra.mxu2 %v1967_v54 }
 0x14e   :  { %v566_v52 = vpop.f32.mrf.mxu2  ;;  %v667_v30 = vpop.f32.mrf.mxu3 }
 0x14f   :  { %v5491_v40 = vadd.f32 %v566_v52, %v355_v28  ;;  %v5493_v44 = vadd.f32 %v667_v30, %v456_v50  ;;  %v358_v45 = vpop.f32.mrf.mxu0  ;;  %v459_v38 = vpop.f32.mrf.mxu1  ;;  %v1972_v30 = vld [vmem:[%s7741_s3 + $0xa0] sm:$0xff] }
 0x150   :  { %2170 = vmatpush.msra.mxu3 %v1972_v30 }
 0x151   :  { %7780 = vst [vmem:[#allocation30_spill] sm:$0xff] %v5491_v40 }
 0x152   :  { %7781 = vst [vmem:[#allocation31_spill] sm:$0xff] %v5493_v44  ;;  %4114 = vmatmul.msk.f32.gmra.mxu0 %vm41_vm1, %v5071_v58  ;;  %4143 = vmatmul.msk.f32.gmra.mxu1 %vm41_vm1, %v5071_v58 }
 0x153   :  { %4180 = vmatmul.msk.f32.gmra.mxu2 %vm41_vm1, %v5085_v60  ;;  %4209 = vmatmul.msk.f32.gmra.mxu3 %vm41_vm1, %v5085_v60 }
 0x156   :  { %v569_v28 = vpop.f32.mrf.mxu2  ;;  %v670_v50 = vpop.f32.mrf.mxu3 }
 0x157   :  { %v5509_v52 = vadd.f32 %v569_v28, %v358_v45  ;;  %v5511_v58 = vadd.f32 %v670_v50, %v459_v38  ;;  %v361_v44 = vpop.f32.mrf.mxu0  ;;  %v462_v40 = vpop.f32.mrf.mxu1 }
 0x159   :  { %7782 = vst [vmem:[#allocation32_spill] sm:$0xff] %v5509_v52 }
 0x15a   :  { %7783 = vst [vmem:[#allocation33_spill] sm:$0xff] %v5511_v58  ;;  %4115 = vmatmul.msk.f32.gmra.mxu0 %vm41_vm1, %v5085_v60  ;;  %4144 = vmatmul.msk.f32.gmra.mxu1 %vm41_vm1, %v5085_v60  ;;  %v1966_v58 = vld [vmem:[%s7741_s3 + $0x70] sm:$0xff] }
 0x15b   :  { %4181 = vmatmul.msk.f32.gmra.mxu2 %vm41_vm1, %v5099_v0  ;;  %4210 = vmatmul.msk.f32.gmra.mxu3 %vm41_vm1, %v5099_v0 }
 0x15c   :  { %2059 = vmatpush.msra.mxu2 %v1966_v58 }
 0x15e   :  { %v572_v54 = vpop.f32.mrf.mxu2  ;;  %v673_v30 = vpop.f32.mrf.mxu3 }
 0x15f   :  { %v5521_v45 = vadd.f32 %v572_v54, %v361_v44  ;;  %v5523_v38 = vadd.f32 %v673_v30, %v462_v40  ;;  %v364_v28 = vpop.f32.mrf.mxu0  ;;  %v465_v50 = vpop.f32.mrf.mxu1 }
 0x161   :  { %7784 = vst [vmem:[#allocation34_spill] sm:$0xff] %v5521_v45  ;;  %v1449_v45 = vld [vmem:[#allocation2 + $0x20] sm:$0xff] }
 0x162   :  { %7785 = vst [vmem:[#allocation35_spill] sm:$0xff] %v5523_v38  ;;  %4116 = vmatmul.msk.f32.gmra.mxu0 %vm41_vm1, %v5099_v0  ;;  %4145 = vmatmul.msk.f32.gmra.mxu1 %vm41_vm1, %v5099_v0 }
 0x163   :  { %4182 = vmatmul.msk.f32.gmra.mxu2 %vm41_vm1, %v5117_v8  ;;  %4211 = vmatmul.msk.f32.gmra.mxu3 %vm41_vm1, %v5117_v8 }
 0x166   :  { %v575_v60 = vpop.f32.mrf.mxu2  ;;  %v676_v40 = vpop.f32.mrf.mxu3 }
 0x167   :  { %v5536_v44 = vadd.f32 %v575_v60, %v364_v28  ;;  %v5538_v54 = vadd.f32 %v676_v40, %v465_v50  ;;  %v823_v30 = vpop.f32.mrf.mxu0  ;;  %v924_v58 = vpop.f32.mrf.mxu1 }
 0x168   :  { %v1008_v0 = vadd.f32 %v823_v30, %v5113_v4  ;;  %v1009_v28 = vadd.f32 %v924_v58, %v5115_v5 }
 0x169   :  { %7786 = vst [vmem:[#allocation36_spill] sm:$0xff] %v5536_v44 }
 0x16a   :  { %7787 = vst [vmem:[#allocation37_spill] sm:$0xff] %v5538_v54  ;;  %4117 = vmatmul.msk.f32.gmra.mxu0 %vm41_vm1, %v5117_v8  ;;  %4146 = vmatmul.msk.f32.gmra.mxu1 %vm41_vm1, %v5117_v8  ;;  %v1965_v8 = vld [vmem:[%s7741_s3 + $0x68] sm:$0xff] }
 0x16b   :  { %4183 = vmatmul.msk.f32.gmra.mxu2 %vm41_vm1, %v5135_v16  ;;  %4212 = vmatmul.msk.f32.gmra.mxu3 %vm41_vm1, %v5135_v16 }
 0x16c   :  { %2060 = vmatpush.msra.mxu2 %v1965_v8  ;;  %v4225_v8 = vld [vmem:[%s7739_s1 + $0x108] sm:$0xff] }
 0x16d   :  { %1692 = vmatpush.msra.mxu1 %v4225_v8 }
 0x16e   :  { %v1208_v50 = vpop.f32.mrf.mxu2  ;;  %v1309_v60 = vpop.f32.mrf.mxu3 }
 0x16f   :  { %v5550_v40 = vadd.f32 %v1208_v50, %v1008_v0  ;;  %v5552_v54 = vadd.f32 %v1309_v60, %v1009_v28  ;;  %v826_v44 = vpop.f32.mrf.mxu0  ;;  %v927_v38 = vpop.f32.mrf.mxu1 }
 0x170   :  { %v1010_v4 = vadd.f32 %v826_v44, %v5131_v12  ;;  %v1011_v5 = vadd.f32 %v927_v38, %v5133_v13 }
 0x172   :  { %4118 = vmatmul.msk.f32.gmra.mxu0 %vm41_vm1, %v5135_v16  ;;  %4147 = vmatmul.msk.f32.gmra.mxu1 %vm41_vm1, %v5135_v16  ;;  %v4224_v16 = vld [vmem:[%s7739_s1 + $0x100] sm:$0xff] }
 0x173   :  { %4184 = vmatmul.msk.f32.gmra.mxu2 %vm41_vm1, %v5159_v27  ;;  %4213 = vmatmul.msk.f32.gmra.mxu3 %vm41_vm1, %v5159_v27 }
 0x174   :  { %1591 = vmatpush.msra.mxu0 %v4224_v16  ;;  %v1971_v16 = vld [vmem:[%s7741_s3 + $0x98] sm:$0xff] }
 0x175   :  { %2171 = vmatpush.msra.mxu3 %v1971_v16 }
 0x176   :  { %v1211_v30 = vpop.f32.mrf.mxu2  ;;  %v1312_v58 = vpop.f32.mrf.mxu3 }
 0x177   :  { %v5567_v0 = vadd.f32 %v1211_v30, %v1010_v4  ;;  %v5569_v28 = vadd.f32 %v1312_v58, %v1011_v5  ;;  %v829_v50 = vpop.f32.mrf.mxu0  ;;  %v930_v60 = vpop.f32.mrf.mxu1 }
 0x178   :  { %v1012_v12 = vadd.f32 %v829_v50, %v5155_v22  ;;  %v1013_v13 = vadd.f32 %v930_v60, %v5157_v23 }
 0x17a   :  { %4119 = vmatmul.msk.f32.gmra.mxu0 %vm41_vm1, %v5159_v27  ;;  %4148 = vmatmul.msk.f32.gmra.mxu1 %vm41_vm1, %v5159_v27  ;;  %v1964_v27 = vld [vmem:[%s7741_s3 + $0x60] sm:$0xff] }
 0x17b   :  { %4185 = vmatmul.msk.f32.gmra.mxu2 %vm41_vm1, %v5177_v41  ;;  %4214 = vmatmul.msk.f32.gmra.mxu3 %vm41_vm1, %v5177_v41 }
 0x17c   :  { %2061 = vmatpush.msra.mxu2 %v1964_v27 }
 0x17e   :  { %v1214_v38 = vpop.f32.mrf.mxu2  ;;  %v1315_v44 = vpop.f32.mrf.mxu3 }
 0x17f   :  { %v5587_v4 = vadd.f32 %v1214_v38, %v1012_v12  ;;  %v5589_v5 = vadd.f32 %v1315_v44, %v1013_v13  ;;  %v832_v30 = vpop.f32.mrf.mxu0  ;;  %v933_v58 = vpop.f32.mrf.mxu1 }
 0x180   :  { %v1014_v22 = vadd.f32 %v832_v30, %v5173_v33  ;;  %v1015_v23 = vadd.f32 %v933_v58, %v5175_v35  ;;  %v1963_v33 = vld [vmem:[%s7741_s3 + $0x58] sm:$0xff] }
 0x181   :  { %2062 = vmatpush.msra.mxu2 %v1963_v33  ;;  %v1960_v33 = vld [vmem:[%s7741_s3 + $0x40] sm:$0xff] }
 0x182   :  { %4120 = vmatmul.msk.f32.gmra.mxu0 %vm41_vm1, %v5177_v41  ;;  %4149 = vmatmul.msk.f32.gmra.mxu1 %vm41_vm1, %v5177_v41 }
 0x183   :  { %4186 = vmatmul.msk.f32.gmra.mxu2 %vm41_vm1, %v5201_v57  ;;  %4215 = vmatmul.msk.f32.gmra.mxu3 %vm41_vm1, %v5201_v57 }
 0x186   :  { %v1217_v50 = vpop.f32.mrf.mxu2  ;;  %v1318_v60 = vpop.f32.mrf.mxu3 }
 0x187   :  { %v5607_v8 = vadd.f32 %v1217_v50, %v1014_v22  ;;  %v5609_v12 = vadd.f32 %v1318_v60, %v1015_v23  ;;  %v5611_v13 = vpop.f32.mrf.mxu0  ;;  %v5613_v38 = vpop.f32.mrf.mxu1  ;;  %v1961_v22 = vld [vmem:[%s7741_s3 + $0x48] sm:$0xff]  ;;  %v1970_v50 = vld [vmem:[%s7741_s3 + $0x90] sm:$0xff] }
 0x188   :  { %2172 = vmatpush.msra.mxu3 %v1970_v50 }
 0x18a   :  { %4121 = vmatmul.msk.f32.gmra.mxu0 %vm41_vm1, %v5201_v57  ;;  %4150 = vmatmul.msk.f32.gmra.mxu1 %vm41_vm1, %v5201_v57  ;;  %v3967_v57 = vld [vmem:[%s7740_s0 + $0xd8] sm:$0xff] }
 0x18b   :  { %4187 = vmatmul.msk.f32.gmra.mxu2 %vm41_vm1, %v5219_v6  ;;  %4216 = vmatmul.msk.f32.gmra.mxu3 %vm41_vm1, %v5219_v6  ;;  %126 = vst.msk [vmem:[#allocation2 + $0xe8] sm:$0xff] %vm41_vm1, %v3967_v57 }
 0x18e   :  { %v5764_v43 = vpop.f32.mrf.mxu2  ;;  %v5766_v15 = vpop.f32.mrf.mxu3 }
 0x18f   :  { %v5626_v35 = vpop.f32.mrf.mxu0  ;;  %v5628_v41 = vpop.f32.mrf.mxu1 }
 0x192   :  { %4122 = vmatmul.msk.f32.gmra.mxu0 %vm41_vm1, %v5219_v6  ;;  %4151 = vmatmul.msk.f32.gmra.mxu1 %vm41_vm1, %v5219_v6  ;;  %v1962_v6 = vld [vmem:[%s7741_s3 + $0x50] sm:$0xff]  ;;  %v5706_v57 = vld [vmem:[#allocation2 + $0xe8] sm:$0xff] }
 0x193   :  { %4188 = vmatmul.msk.f32.gmra.mxu2 %vm41_vm1, %v5237_v18  ;;  %4217 = vmatmul.msk.f32.gmra.mxu3 %vm41_vm1, %v5237_v18 }
 0x194   :  { %2063 = vmatpush.msra.mxu2 %v1962_v6 }
 0x196   :  { %2064 = vmatpush.msra.mxu2 %v1961_v22  ;;  %v5720_v22 = vld [vmem:[#allocation2 + $0xf0] sm:$0xff] }
 0x197   :  { %v5642_v44 = vpop.f32.mrf.mxu0  ;;  %v5644_v30 = vpop.f32.mrf.mxu1  ;;  %7790 = vst [vmem:[#allocation40_spill] sm:$0xff] %v5720_v22 }
 0x198   :  { %2065 = vmatpush.msra.mxu2 %v1960_v33 }
 0x19a   :  { %4123 = vmatmul.msk.f32.gmra.mxu0 %vm41_vm1, %v5237_v18  ;;  %4152 = vmatmul.msk.f32.gmra.mxu1 %vm41_vm1, %v5237_v18 }
 0x19b   :  { %4189 = vmatmul.msk.f32.gmra.mxu2 %vm41_vm1, %v5251_v31  ;;  %4218 = vmatmul.msk.f32.gmra.mxu3 %vm41_vm1, %v5251_v31 }
 0x19f   :  { %v5657_v58 = vpop.f32.mrf.mxu0  ;;  %v5659_v27 = vpop.f32.mrf.mxu1 }
 0x1a2   :  { %4124 = vmatmul.msk.f32.gmra.mxu0 %vm41_vm1, %v5251_v31  ;;  %4153 = vmatmul.msk.f32.gmra.mxu1 %vm41_vm1, %v5251_v31 }
 0x1a3   :  { %4190 = vmatmul.msk.f32.gmra.mxu2 %vm41_vm1, %v5277_v59  ;;  %4219 = vmatmul.msk.f32.gmra.mxu3 %vm41_vm1, %v5277_v59 }
 0x1a7   :  { %v5669_v18 = vpop.f32.mrf.mxu0  ;;  %v5671_v16 = vpop.f32.mrf.mxu1 }
 0x1aa   :  { %4125 = vmatmul.msk.f32.gmra.mxu0 %vm41_vm1, %v5277_v59  ;;  %4154 = vmatmul.msk.f32.gmra.mxu1 %vm41_vm1, %v5277_v59 }
 0x1ab   :  { %4191 = vmatmul.msk.f32.gmra.mxu2 %vm41_vm1, %v5299_v17  ;;  %4220 = vmatmul.msk.f32.gmra.mxu3 %vm41_vm1, %v5299_v17 }
 0x1af   :  { %v5684_v31 = vpop.f32.mrf.mxu0  ;;  %v5686_v23 = vpop.f32.mrf.mxu1 }
 0x1b2   :  { %4126 = vmatmul.msk.f32.gmra.mxu0 %vm41_vm1, %v5299_v17  ;;  %4155 = vmatmul.msk.f32.gmra.mxu1 %vm41_vm1, %v5299_v17 }
 0x1b3   :  { %4192 = vmatmul.msk.f32.gmra.mxu2 %vm41_vm1, %v5313_v39  ;;  %4221 = vmatmul.msk.f32.gmra.mxu3 %vm41_vm1, %v5313_v39 }
 0x1b7   :  { %v5699_v59 = vpop.f32.mrf.mxu0  ;;  %v5701_v60 = vpop.f32.mrf.mxu1 }
 0x1ba   :  { %4127 = vmatmul.msk.f32.gmra.mxu0 %vm41_vm1, %v5313_v39  ;;  %4156 = vmatmul.msk.f32.gmra.mxu1 %vm41_vm1, %v5313_v39  ;;  %v1959_v39 = vld [vmem:[%s7741_s3 + $0x38] sm:$0xff] }
 0x1bb   :  { %4193 = vmatmul.msk.f32.gmra.mxu2 %vm41_vm1, %v5706_v57  ;;  %4222 = vmatmul.msk.f32.gmra.mxu3 %vm41_vm1, %v5706_v57 }
 0x1bc   :  { %2066 = vmatpush.msra.mxu2 %v1959_v39 }
 0x1be   :  { %2067 = vmatpush.msra.mxu2 %v1958_v34 }
 0x1bf   :  { %v5716_v17 = vpop.f32.mrf.mxu0  ;;  %v5718_v6 = vpop.f32.mrf.mxu1 }
 0x1c0   :  { %7788 = vst [vmem:[#allocation38_spill] sm:$0xff] %v5716_v17 }
 0x1c1   :  { %7789 = vst [vmem:[#allocation39_spill] sm:$0xff] %v5718_v6 }
 0x1c2   :  { %4128 = vmatmul.msk.f32.gmra.mxu0 %vm41_vm1, %v5706_v57  ;;  %4157 = vmatmul.msk.f32.gmra.mxu1 %vm41_vm1, %v5706_v57 }
 0x1c3   :  { %4194 = vmatmul.msk.f32.gmra.mxu2 %vm41_vm1, %v5720_v22  ;;  %4223 = vmatmul.msk.f32.gmra.mxu3 %vm41_vm1, %v5720_v22 }
 0x1c7   :  { %v5733_v50 = vpop.f32.mrf.mxu0  ;;  %v5735_v33 = vpop.f32.mrf.mxu1 }
 0x1c8   :  { %7791 = vst [vmem:[#allocation41_spill] sm:$0xff] %v5733_v50  ;;  %v1461_v50 = vld [vmem:[#allocation2 + $0x80] sm:$0xff] }
 0x1c9   :  { %7792 = vst [vmem:[#allocation42_spill] sm:$0xff] %v5735_v33  ;;  %v1459_v33 = vld [vmem:[#allocation2 + $0x70] sm:$0xff] }
 0x1ca   :  { %4233 = vmatmul.msk.f32.vlgmr.msra.gmra.mxu0 %vm41_vm1, %v1449_v45  ;;  %4262 = vmatmul.msk.f32.vlgmr.msra.gmra.mxu1 %vm41_vm1, %v1449_v45  ;;  %v1969_v45 = vld [vmem:[%s7741_s3 + $0x88] sm:$0xff] }
 0x1cb   :  { %2173 = vmatpush.msra.mxu3 %v1969_v45 }
 0x1cf   :  { %v5739_v52 = vpop.f32.mrf.mxu0  ;;  %v5741_v46 = vpop.f32.mrf.mxu1 }
 0x1d0   :  { %7793 = vst [vmem:[#allocation43_spill] sm:$0xff] %v5739_v52 }
 0x1d1   :  { %7794 = vst [vmem:[#allocation44_spill] sm:$0xff] %v5741_v46  ;;  %v1457_v46 = vld [vmem:[#allocation2 + $0x60] sm:$0xff] }
 0x1d2   :  { %4234 = vmatmul.msk.f32.gmra.mxu0 %vm41_vm1, %v1450_v42  ;;  %4263 = vmatmul.msk.f32.gmra.mxu1 %vm41_vm1, %v1450_v42  ;;  %v1957_v42 = vld [vmem:[%s7741_s3 + $0x28] sm:$0xff] }
 0x1d3   :  { %2068 = vmatpush.msra.mxu2 %v1957_v42  ;;  %v5778_v42 = vpop.f32.mrf.mxu3 }
 0x1d7   :  { %v5748_v39 = vpop.f32.mrf.mxu0  ;;  %v5750_v2 = vpop.f32.mrf.mxu1 }
 0x1d8   :  { %7795 = vst [vmem:[#allocation45_spill] sm:$0xff] %v5748_v39  ;;  %v1456_v39 = vld [vmem:[#allocation2 + $0x58] sm:$0xff] }
 0x1d9   :  { %7796 = vst [vmem:[#allocation46_spill] sm:$0xff] %v5750_v2  ;;  %v1454_v2 = vld [vmem:[#allocation2 + $0x48] sm:$0xff] }
 0x1da   :  { %4235 = vmatmul.msk.f32.gmra.mxu0 %vm41_vm1, %v1451_v36  ;;  %4264 = vmatmul.msk.f32.gmra.mxu1 %vm41_vm1, %v1451_v36 }
 0x1df   :  { %v5757_v56 = vpop.f32.mrf.mxu0  ;;  %v5759_v34 = vpop.f32.mrf.mxu1 }
 0x1e0   :  { %7797 = vst [vmem:[#allocation47_spill] sm:$0xff] %v5757_v56 }
 0x1e1   :  { %7798 = vst [vmem:[#allocation48_spill] sm:$0xff] %v5759_v34  ;;  %v5776_v34 = vpop.f32.mrf.mxu2 }
 0x1e2   :  { %4236 = vmatmul.msk.f32.gmra.mxu0 %vm41_vm1, %v1452_v19  ;;  %4265 = vmatmul.msk.f32.gmra.mxu1 %vm41_vm1, %v1452_v19  ;;  %v1956_v19 = vld [vmem:[%s7741_s3 + $0x20] sm:$0xff] }
 0x1e3   :  { %2069 = vmatpush.msra.mxu2 %v1956_v19  ;;  %v1955_v19 = vld [vmem:[%s7741_s3 + $0x18] sm:$0xff] }
 0x1e5   :  { %2070 = vmatpush.msra.mxu2 %v1955_v19  ;;  %v1968_v19 = vld [vmem:[%s7741_s3 + $0x80] sm:$0xff] }
 0x1e6   :  { %2174 = vmatpush.msra.mxu3 %v1968_v19 }
 0x1e7   :  { %v5770_v36 = vpop.f32.mrf.mxu0  ;;  %v5772_v45 = vpop.f32.mrf.mxu1 }
 0x1e8   :  { %7799 = vst [vmem:[#allocation49_spill] sm:$0xff] %v5770_v36 }
 0x1e9   :  { %7800 = vst [vmem:[#allocation50_spill] sm:$0xff] %v5772_v45  ;;  %v5789_v45 = vpop.f32.mrf.mxu2 }
 0x1ea   :  { %4237 = vmatmul.msk.f32.gmra.mxu0 %vm41_vm1, %v1453_v20  ;;  %4266 = vmatmul.msk.f32.gmra.mxu1 %vm41_vm1, %v1453_v20  ;;  %v5791_v20 = vpop.f32.mrf.mxu3 }
 0x1ef   :  { %v5780_v56 = vpop.f32.mrf.mxu0  ;;  %v5782_v26 = vpop.f32.mrf.mxu1 }
 0x1f0   :  { %7801 = vst [vmem:[#allocation51_spill] sm:$0xff] %v5780_v56  ;;  %v1455_v56 = vld [vmem:[#allocation2 + $0x50] sm:$0xff] }
 0x1f1   :  { %7802 = vst [vmem:[#allocation52_spill] sm:$0xff] %v5782_v26  ;;  %v5806_v61 = vpop.f32.mrf.mxu2 }
 0x1f2   :  { %4238 = vmatmul.msk.f32.gmra.mxu0 %vm41_vm1, %v1454_v2  ;;  %4267 = vmatmul.msk.f32.gmra.mxu1 %vm41_vm1, %v1454_v2 }
 0x1f7   :  { %v5793_v36 = vpop.f32.mrf.mxu0  ;;  %v5795_v62 = vpop.f32.mrf.mxu1 }
 0x1f8   :  { %7803 = vst [vmem:[#allocation53_spill] sm:$0xff] %v5793_v36  ;;  %v5808_v36 = vpop.f32.mrf.mxu3 }
 0x1f9   :  { %7804 = vst [vmem:[#allocation54_spill] sm:$0xff] %v5795_v62 }
 0x1fa   :  { %4239 = vmatmul.msk.f32.gmra.mxu0 %vm41_vm1, %v1455_v56  ;;  %4268 = vmatmul.msk.f32.gmra.mxu1 %vm41_vm1, %v1455_v56 }
 0x1ff   :  { %v5802_v26 = vpop.f32.mrf.mxu0  ;;  %v5804_v2 = vpop.f32.mrf.mxu1 }
 0x200   :  { %7805 = vst [vmem:[#allocation55_spill] sm:$0xff] %v5802_v26  ;;  %v5822_v26 = vpop.f32.mrf.mxu2  ;;  %v5824_v37 = vpop.f32.mrf.mxu3 }
 0x201   :  { %7806 = vst [vmem:[#allocation56_spill] sm:$0xff] %v5804_v2  ;;  %v1954_v2 = vld [vmem:[%s7741_s3 + $0x10] sm:$0xff] }
 0x202   :  { %4240 = vmatmul.msk.f32.gmra.mxu0 %vm41_vm1, %v1456_v39  ;;  %4269 = vmatmul.msk.f32.gmra.mxu1 %vm41_vm1, %v1456_v39 }
 0x203   :  { %2071 = vmatpush.msra.mxu2 %v1954_v2 }
 0x207   :  { %v5812_v62 = vpop.f32.mrf.mxu0  ;;  %v5814_v56 = vpop.f32.mrf.mxu1 }
 0x208   :  { %7807 = vst [vmem:[#allocation57_spill] sm:$0xff] %v5812_v62  ;;  %v1458_v62 = vld [vmem:[#allocation2 + $0x68] sm:$0xff]  ;;  %v5834_v52 = vpop.f32.mrf.mxu2  ;;  %v5836_v2 = vpop.f32.mrf.mxu3 }
 0x209   :  { %7808 = vst [vmem:[#allocation58_spill] sm:$0xff] %v5814_v56 }
 0x20a   :  { %4241 = vmatmul.msk.f32.gmra.mxu0 %vm41_vm1, %v1457_v46  ;;  %4270 = vmatmul.msk.f32.gmra.mxu1 %vm41_vm1, %v1457_v46  ;;  %v1953_v46 = vld [vmem:[%s7741_s3 + $0x8] sm:$0xff] }
 0x20b   :  { %2072 = vmatpush.msra.mxu2 %v1953_v46 }
 0x20f   :  { %v5828_v39 = vpop.f32.mrf.mxu0  ;;  %v5830_v56 = vpop.f32.mrf.mxu1 }
 0x210   :  { %7809 = vst [vmem:[#allocation59_spill] sm:$0xff] %v5828_v39 }
 0x211   :  { %7810 = vst [vmem:[#allocation60_spill] sm:$0xff] %v5830_v56  ;;  %v5847_v56 = vpop.f32.mrf.mxu2 }
 0x212   :  { %4242 = vmatmul.msk.f32.gmra.mxu0 %vm41_vm1, %v1458_v62  ;;  %4271 = vmatmul.msk.f32.gmra.mxu1 %vm41_vm1, %v1458_v62  ;;  %v5849_v62 = vpop.f32.mrf.mxu3 }
 0x213   :  { %7813 = vst [vmem:[#allocation63_spill] sm:$0xff] %v5849_v62  ;;  %v1466_v62 = vld [vmem:[#allocation2 + $0xa8] sm:$0xff] }
 0x217   :  { %v5838_v19 = vpop.f32.mrf.mxu0  ;;  %v5840_v32 = vpop.f32.mrf.mxu1 }
 0x218   :  { %7811 = vst [vmem:[#allocation61_spill] sm:$0xff] %v5838_v19  ;;  %v1460_v19 = vld [vmem:[#allocation2 + $0x78] sm:$0xff] }
 0x219   :  { %7812 = vst [vmem:[#allocation62_spill] sm:$0xff] %v5840_v32  ;;  %v5864_v3 = vpop.f32.mrf.mxu2 }
 0x21a   :  { %4243 = vmatmul.msk.f32.gmra.mxu0 %vm41_vm1, %v1459_v33  ;;  %4272 = vmatmul.msk.f32.gmra.mxu1 %vm41_vm1, %v1459_v33  ;;  %v1952_v33 = vld [vmem:[%s7741_s3] sm:$0xff]  ;;  %7818 = vst [vmem:[#allocation68_spill] sm:$0xff] %v5864_v3  ;;  %v5866_v6 = vpop.f32.mrf.mxu3 }
 0x21b   :  { %7819 = vst [vmem:[#allocation69_spill] sm:$0xff] %v5866_v6  ;;  %2073 = vmatpush.msra.mxu2 %v1952_v33  ;;  %v1463_v6 = vld [vmem:[#allocation2 + $0x90] sm:$0xff] }
 0x21f   :  { %v5851_v39 = vpop.f32.mrf.mxu0  ;;  %v5853_v10 = vpop.f32.mrf.mxu1 }
 0x220   :  { %7814 = vst [vmem:[#allocation64_spill] sm:$0xff] %v5851_v39 }
 0x221   :  { %7815 = vst [vmem:[#allocation65_spill] sm:$0xff] %v5853_v10 }
 0x222   :  { %4244 = vmatmul.msk.f32.gmra.mxu0 %vm41_vm1, %v1460_v19  ;;  %4273 = vmatmul.msk.f32.gmra.mxu1 %vm41_vm1, %v1460_v19  ;;  %v5876_v39 = vpop.f32.mrf.mxu3 }
 0x223   :  { %7823 = vst [vmem:[#allocation73_spill] sm:$0xff] %v5876_v39 }
 0x227   :  { %v5857_v32 = vpop.f32.mrf.mxu0  ;;  %v5859_v46 = vpop.f32.mrf.mxu1 }
 0x228   :  { %7816 = vst [vmem:[#allocation66_spill] sm:$0xff] %v5857_v32  ;;  %v1462_v32 = vld [vmem:[#allocation2 + $0x88] sm:$0xff] }
 0x229   :  { %7817 = vst [vmem:[#allocation67_spill] sm:$0xff] %v5859_v46  ;;  %v5874_v46 = vpop.f32.mrf.mxu2 }
 0x22a   :  { %4245 = vmatmul.msk.f32.gmra.mxu0 %vm41_vm1, %v1461_v50  ;;  %4274 = vmatmul.msk.f32.gmra.mxu1 %vm41_vm1, %v1461_v50  ;;  %7822 = vst [vmem:[#allocation72_spill] sm:$0xff] %v5874_v46  ;;  %v1464_v46 = vld [vmem:[#allocation2 + $0x98] sm:$0xff] }
 0x22f   :  { %v5870_v10 = vpop.f32.mrf.mxu0  ;;  %v5872_v19 = vpop.f32.mrf.mxu1 }
 0x230   :  { %7820 = vst [vmem:[#allocation70_spill] sm:$0xff] %v5870_v10 }
 0x231   :  { %7821 = vst [vmem:[#allocation71_spill] sm:$0xff] %v5872_v19  ;;  %v5886_v50 = vpop.f32.mrf.mxu2  ;;  %v5888_v19 = vpop.f32.mrf.mxu3 }
 0x232   :  { %4246 = vmatmul.msk.f32.gmra.mxu0 %vm41_vm1, %v1462_v32  ;;  %4275 = vmatmul.msk.f32.gmra.mxu1 %vm41_vm1, %v1462_v32  ;;  %7826 = vst [vmem:[#allocation76_spill] sm:$0xff] %v5886_v50  ;;  %v1834_v32 = vld [vmem:[%s7742_s2] sm:$0x3] }
 0x233   :  { %7827 = vst [vmem:[#allocation77_spill] sm:$0xff] %v5888_v19  ;;  %v1465_v50 = vld [vmem:[#allocation2 + $0xa0] sm:$0xff] }
 0x237   :  { %v5880_v3 = vpop.f32.mrf.mxu0  ;;  %v5882_v33 = vpop.f32.mrf.mxu1 }
 0x238   :  { %7824 = vst [vmem:[#allocation74_spill] sm:$0xff] %v5880_v3  ;;  %v5909_v3 = vperm.slane %v1834_v32, 1 }
 0x239   :  { %7825 = vst [vmem:[#allocation75_spill] sm:$0xff] %v5882_v33  ;;  %v5903_v33 = vpop.f32.mrf.mxu2 }
 0x23a   :  { %4247 = vmatmul.msk.f32.gmra.mxu0 %vm41_vm1, %v1463_v6  ;;  %4276 = vmatmul.msk.f32.gmra.mxu1 %vm41_vm1, %v1463_v6  ;;  %v4339_v6 = vld [vmem:[%s7743_s4 + $0x158] sm:$0xf]  ;;  %7830 = vst [vmem:[#allocation80_spill] sm:$0xff] %v5903_v33 }
 0x23b   :  { %4351 = vmatpush.msk.msrb.mxu1 %vm259_vm0, %v4339_v6 }
 0x23f   :  { %v5890_v10 = vpop.f32.mrf.mxu0  ;;  %v5892_v39 = vpop.f32.mrf.mxu1 }
 0x240   :  { %7828 = vst [vmem:[#allocation78_spill] sm:$0xff] %v5890_v10  ;;  %v5905_v10 = vpop.f32.mrf.mxu3 }
 0x241   :  { %7829 = vst [vmem:[#allocation79_spill] sm:$0xff] %v5892_v39  ;;  %v5907_v39 = vperm.slane %v1834_v32, 0 }
 0x242   :  { %4248 = vmatmul.msk.f32.gmra.mxu0 %vm41_vm1, %v1464_v46  ;;  %4277 = vmatmul.msk.f32.gmra.mxu1 %vm41_vm1, %v1464_v46  ;;  %7831 = vst [vmem:[#allocation81_spill] sm:$0xff] %v5905_v10 }
 0x247   :  { %v1593_v19 = vpop.f32.mrf.mxu0  ;;  %v1694_v46 = vpop.f32.mrf.mxu1 }
 0x248   :  { %v1778_v55 = vadd.f32 %v1593_v19, %v5550_v40  ;;  %v1779_v17 = vadd.f32 %v1694_v46, %v5552_v54  ;;  %v5918_v40 = vpop.f32.mrf.mxu2  ;;  %v5920_v54 = vpop.f32.mrf.mxu3 }
 0x24a   :  { %v1840_v47 = vadd.f32 %v5907_v39, %v1778_v55  ;;  %v1841_v22 = vadd.f32 %v5909_v3, %v1779_v17  ;;  %4249 = vmatmul.msk.f32.gmra.mxu0 %vm41_vm1, %v1465_v50  ;;  %4278 = vmatmul.msk.f32.gmra.mxu1 %vm41_vm1, %v1465_v50 }
 0x24c   :  { %v1896_v6 = vmax.f32 %v1840_v47, 0.0  ;;  %v1897_v10 = vmax.f32 %v1841_v22, 0.0  ;;  %v4338_v22 = vld [vmem:[%s7743_s4 + $0x150] sm:$0xf] }
 0x24d   :  { %4340 = vmatpush.msk.msrb.mxu0 %vm259_vm0, %v4338_v22 }
 0x24e   :  { %2074 = vmatmul.f32.vlgmr.msra.gmra.mxu2 %v1896_v6  ;;  %4290 = vmatmul.msk.f32.vlgmr.msra.gmra.mxu3 %vm1973_vm2, %v1897_v10 }
 0x24f   :  { %v1596_v32 = vpop.f32.mrf.mxu0  ;;  %v1697_v33 = vpop.f32.mrf.mxu1 }
 0x250   :  { %v1780_v55 = vadd.f32 %v1596_v32, %v5567_v0  ;;  %v1781_v17 = vadd.f32 %v1697_v33, %v5569_v28  ;;  %v1467_v33 = vld [vmem:[#allocation2 + $0xb0] sm:$0xff]  ;;  %v5935_v32 = vpop.f32.mrf.mxu2 }
 0x252   :  { %v1842_v19 = vadd.f32 %v5907_v39, %v1780_v55  ;;  %v1843_v50 = vadd.f32 %v5909_v3, %v1781_v17  ;;  %4250 = vmatmul.msk.f32.gmra.mxu0 %vm41_vm1, %v1466_v62  ;;  %4279 = vmatmul.msk.f32.gmra.mxu1 %vm41_vm1, %v1466_v62  ;;  %v5937_v62 = vpop.f32.mrf.mxu3 }
 0x254   :  { %v1899_v47 = vmax.f32 %v1843_v50, 0.0  ;;  %v1898_v10 = vmax.f32 %v1842_v19, 0.0 }
 0x256   :  { %2077 = vmatmul.f32.gmra.mxu2 %v1898_v10  ;;  %4291 = vmatmul.msk.f32.gmra.mxu3 %vm1973_vm2, %v1899_v47  ;;  %v1468_v10 = vld [vmem:[#allocation2 + $0xb8] sm:$0xff] }
 0x257   :  { %v1599_v0 = vpop.f32.mrf.mxu0  ;;  %v1700_v28 = vpop.f32.mrf.mxu1 }
 0x258   :  { %v1782_v46 = vadd.f32 %v1599_v0, %v5587_v4  ;;  %v1783_v6 = vadd.f32 %v1700_v28, %v5589_v5  ;;  %v4337_v4 = vld [vmem:[%s7743_s4 + $0x148] sm:$0xff] }
 0x259   :  { %2448 = vmatpush.msrb.mxu1 %v4337_v4 }
 0x25a   :  { %v1844_v55 = vadd.f32 %v5907_v39, %v1782_v46  ;;  %v1845_v17 = vadd.f32 %v5909_v3, %v1783_v6  ;;  %4251 = vmatmul.msk.f32.gmra.mxu0 %vm41_vm1, %v1467_v33  ;;  %4280 = vmatmul.msk.f32.gmra.mxu1 %vm41_vm1, %v1467_v33  ;;  %v1016_v46 = vadd.f32 %v5611_v13, %v5197_v51 }
 0x25b   :  { %v1017_v6 = vadd.f32 %v5613_v38, %v5199_v53 }
 0x25c   :  { %v1901_v19 = vmax.f32 %v1845_v17, 0.0  ;;  %v1900_v50 = vmax.f32 %v1844_v55, 0.0  ;;  %v5957_v55 = vpop.f32.mrf.mxu2  ;;  %v5959_v17 = vpop.f32.mrf.mxu3 }
 0x25e   :  { %2080 = vmatmul.f32.gmra.mxu2 %v1900_v50  ;;  %4292 = vmatmul.msk.f32.gmra.mxu3 %vm1973_vm2, %v1901_v19  ;;  %v1401_v19 = vadd.f32 %v5764_v43, %v1016_v46  ;;  %v1402_v50 = vadd.f32 %v5766_v15, %v1017_v6  ;;  %v1018_v43 = vadd.f32 %v5626_v35, %v5215_v63  ;;  %v4335_v63 = vld [vmem:[%s7743_s4 + $0x138] sm:$0xff] }
 0x25f   :  { %v1602_v5 = vpop.f32.mrf.mxu0  ;;  %v1703_v47 = vpop.f32.mrf.mxu1  ;;  %v1019_v15 = vadd.f32 %v5628_v41, %v5217_v1  ;;  %v1470_v41 = vld [vmem:[#allocation2 + $0xc8] sm:$0xff]  ;;  %2449 = vmatpush.msrb.mxu1 %v4335_v63 }
 0x260   :  { %v1784_v22 = vadd.f32 %v1602_v5, %v5607_v8  ;;  %v1785_v0 = vadd.f32 %v1703_v47, %v5609_v12  ;;  %v1469_v47 = vld [vmem:[#allocation2 + $0xc0] sm:$0xff] }
 0x262   :  { %v1846_v28 = vadd.f32 %v5907_v39, %v1784_v22  ;;  %v1847_v33 = vadd.f32 %v5909_v3, %v1785_v0  ;;  %4252 = vmatmul.msk.f32.gmra.mxu0 %vm41_vm1, %v1468_v10  ;;  %4281 = vmatmul.msk.f32.gmra.mxu1 %vm41_vm1, %v1468_v10  ;;  %v4336_v0 = vld [vmem:[%s7743_s4 + $0x140] sm:$0xff] }
 0x263   :  { %2401 = vmatpush.msrb.mxu0 %v4336_v0  ;;  %v4334_v0 = vld [vmem:[%s7743_s4 + $0x130] sm:$0xff] }
 0x264   :  { %v1903_v8 = vmax.f32 %v1847_v33, 0.0  ;;  %v1902_v12 = vmax.f32 %v1846_v28, 0.0  ;;  %v1403_v28 = vadd.f32 %v5776_v34, %v1018_v43  ;;  %v1404_v33 = vadd.f32 %v5778_v42, %v1019_v15  ;;  %v5977_v46 = vpop.f32.mrf.mxu2  ;;  %v5979_v6 = vpop.f32.mrf.mxu3 }
 0x265   :  { %2402 = vmatpush.msrb.mxu0 %v4334_v0 }
 0x266   :  { %2083 = vmatmul.f32.gmra.mxu2 %v1902_v12  ;;  %4293 = vmatmul.msk.f32.gmra.mxu3 %vm1973_vm2, %v1903_v8 }
 0x267   :  { %v1605_v4 = vpop.f32.mrf.mxu0  ;;  %v1706_v5 = vpop.f32.mrf.mxu1 }
 0x268   :  { %v1786_v51 = vadd.f32 %v1605_v4, %v1401_v19  ;;  %v1787_v13 = vadd.f32 %v1706_v5, %v1402_v50  ;;  %v1020_v19 = vadd.f32 %v5642_v44, %v5233_v11  ;;  %v1021_v50 = vadd.f32 %v5644_v30, %v5235_v14 }
 0x26a   :  { %v1848_v53 = vadd.f32 %v5907_v39, %v1786_v51  ;;  %v1849_v38 = vadd.f32 %v5909_v3, %v1787_v13  ;;  %4253 = vmatmul.msk.f32.gmra.mxu0 %vm41_vm1, %v1469_v47  ;;  %4282 = vmatmul.msk.f32.gmra.mxu1 %vm41_vm1, %v1469_v47  ;;  %v1405_v47 = vadd.f32 %v5789_v45, %v1020_v19 }
 0x26b   :  { %v1406_v51 = vadd.f32 %v5791_v20, %v1021_v50  ;;  %v1022_v45 = vadd.f32 %v5657_v58, %v5247_v21  ;;  %v1023_v20 = vadd.f32 %v5659_v27, %v5249_v24  ;;  %v1472_v21 = vld [vmem:[#allocation2 + $0xd8] sm:$0xff] }
 0x26c   :  { %v1905_v10 = vmax.f32 %v1849_v38, 0.0  ;;  %v1904_v22 = vmax.f32 %v1848_v53, 0.0  ;;  %v1471_v38 = vld [vmem:[#allocation2 + $0xd0] sm:$0xff]  ;;  %v5996_v43 = vpop.f32.mrf.mxu2  ;;  %v5998_v15 = vpop.f32.mrf.mxu3 }
 0x26e   :  { %2086 = vmatmul.f32.gmra.mxu2 %v1904_v22  ;;  %4294 = vmatmul.msk.f32.gmra.mxu3 %vm1973_vm2, %v1905_v10 }
 0x26f   :  { %v1608_v1 = vpop.f32.mrf.mxu0  ;;  %v1709_v35 = vpop.f32.mrf.mxu1 }
 0x270   :  { %v1788_v8 = vadd.f32 %v1608_v1, %v1403_v28  ;;  %v1789_v12 = vadd.f32 %v1709_v35, %v1404_v33  ;;  %v1407_v28 = vadd.f32 %v5806_v61, %v1022_v45  ;;  %v1408_v33 = vadd.f32 %v5808_v36, %v1023_v20 }
 0x271   :  { %v1024_v61 = vadd.f32 %v5669_v18, %v5273_v48  ;;  %v1025_v36 = vadd.f32 %v5671_v16, %v5275_v49  ;;  %v1473_v48 = vld [vmem:[#allocation2 + $0xe0] sm:$0xff] }
 0x272   :  { %v1850_v34 = vadd.f32 %v5907_v39, %v1788_v8  ;;  %v1851_v42 = vadd.f32 %v5909_v3, %v1789_v12  ;;  %4254 = vmatmul.msk.f32.gmra.mxu0 %vm41_vm1, %v1470_v41  ;;  %4283 = vmatmul.msk.f32.gmra.mxu1 %vm41_vm1, %v1470_v41 }
 0x273   :  { %v1409_v19 = vadd.f32 %v5822_v26, %v1024_v61  ;;  %v1410_v50 = vadd.f32 %v5824_v37, %v1025_v36  ;;  %v1026_v26 = vadd.f32 %v5684_v31, %v5295_v7  ;;  %v1027_v37 = vadd.f32 %v5686_v23, %v5297_v9  ;;  %v7837_v61 = vld [vmem:[#allocation39_spill] sm:$0xff] }
 0x274   :  { %v1907_v4 = vmax.f32 %v1851_v42, 0.0  ;;  %v1906_v5 = vmax.f32 %v1850_v34, 0.0  ;;  %v6014_v24 = vpop.f32.mrf.mxu2  ;;  %v6016_v27 = vpop.f32.mrf.mxu3  ;;  %v4333_v42 = vld [vmem:[%s7743_s4 + $0x128] sm:$0xff] }
 0x275   :  { %2450 = vmatpush.msrb.mxu1 %v4333_v42  ;;  %v4331_v42 = vld [vmem:[%s7743_s4 + $0x118] sm:$0xff] }
 0x276   :  { %2089 = vmatmul.f32.gmra.mxu2 %v1906_v5  ;;  %4295 = vmatmul.msk.f32.gmra.mxu3 %vm1973_vm2, %v1907_v4 }
 0x277   :  { %v1611_v13 = vpop.f32.mrf.mxu0  ;;  %v1712_v53 = vpop.f32.mrf.mxu1  ;;  %2451 = vmatpush.msrb.mxu1 %v4331_v42  ;;  %v7850_v42 = vld [vmem:[#allocation76_spill] sm:$0xff] }
 0x278   :  { %v1790_v11 = vadd.f32 %v1611_v13, %v1405_v47  ;;  %v1791_v44 = vadd.f32 %v1712_v53, %v1406_v51 }
 0x27a   :  { %v1852_v14 = vadd.f32 %v5907_v39, %v1790_v11  ;;  %v1853_v30 = vadd.f32 %v5909_v3, %v1791_v44  ;;  %4255 = vmatmul.msk.f32.gmra.mxu0 %vm41_vm1, %v1471_v38  ;;  %4284 = vmatmul.msk.f32.gmra.mxu1 %vm41_vm1, %v1471_v38  ;;  %v2334_v11 = vld [vmem:[%s7743_s4 + $0xa8] sm:$0xf]  ;;  %v1411_v44 = vadd.f32 %v5834_v52, %v1026_v26 }
 0x27b   :  { %4373 = vmatpush.msk.msrb.mxu3 %vm259_vm0, %v2334_v11  ;;  %v1028_v52 = vadd.f32 %v5699_v59, %v5309_v25 }
 0x27c   :  { %v1909_v10 = vmax.f32 %v1853_v30, 0.0  ;;  %v1908_v22 = vmax.f32 %v1852_v14, 0.0  ;;  %v6040_v51 = vpop.f32.mrf.mxu2  ;;  %v6042_v13 = vpop.f32.mrf.mxu3  ;;  %v1412_v14 = vadd.f32 %v5836_v2, %v1027_v37  ;;  %v1029_v2 = vadd.f32 %v5701_v60, %v5311_v29 }
 0x27d   :  { %v1413_v0 = vadd.f32 %v5847_v56, %v1028_v52  ;;  %v7834_v56 = vld [vmem:[#allocation4_spill] sm:$0xff]  ;;  %v2332_v52 = vld [vmem:[%s7743_s4 + $0x98] sm:$0xff] }
 0x27e   :  { %2092 = vmatmul.f32.gmra.mxu2 %v1908_v22  ;;  %4296 = vmatmul.msk.f32.gmra.mxu3 %vm1973_vm2, %v1909_v10  ;;  %v4332_v22 = vld [vmem:[%s7743_s4 + $0x120] sm:$0xff] }
 0x27f   :  { %v1614_v63 = vpop.f32.mrf.mxu0  ;;  %v1715_v1 = vpop.f32.mrf.mxu1  ;;  %2403 = vmatpush.msrb.mxu0 %v4332_v22  ;;  %2551 = vmatpush.msrb.mxu3 %v2332_v52  ;;  %v7845_v22 = vld [vmem:[#allocation73_spill] sm:$0xff]  ;;  %v7856_v52 = vld [vmem:[#allocation80_spill] sm:$0xff] }
 0x280   :  { %v1792_v58 = vadd.f32 %v1614_v63, %v1407_v28  ;;  %v1793_v35 = vadd.f32 %v1715_v1, %v1408_v33  ;;  %v7832_v28 = vld [vmem:[#allocation63_spill] sm:$0xff] }
 0x281   :  { %v1414_v33 = vadd.f32 %v7832_v28, %v1029_v2  ;;  %v4330_v2 = vld [vmem:[%s7743_s4 + $0x110] sm:$0xff] }
 0x282   :  { %v1854_v41 = vadd.f32 %v5907_v39, %v1792_v58  ;;  %v1855_v8 = vadd.f32 %v5909_v3, %v1793_v35  ;;  %4256 = vmatmul.msk.f32.gmra.mxu0 %vm41_vm1, %v1472_v21  ;;  %4285 = vmatmul.msk.f32.gmra.mxu1 %vm41_vm1, %v1472_v21  ;;  %v7833_v58 = vld [vmem:[#allocation40_spill] sm:$0xff]  ;;  %v7835_v35 = vld [vmem:[#allocation38_spill] sm:$0xff] }
 0x283   :  { %2404 = vmatpush.msrb.mxu0 %v4330_v2 }
 0x284   :  { %v1911_v12 = vmax.f32 %v1855_v8, 0.0  ;;  %v1910_v34 = vmax.f32 %v1854_v41, 0.0  ;;  %v6066_v63 = vpop.f32.mrf.mxu2  ;;  %v1030_v41 = vadd.f32 %v7835_v35, %v7834_v56  ;;  %v7836_v8 = vld [vmem:[#allocation5_spill] sm:$0xff]  ;;  %v7847_v56 = vld [vmem:[#allocation43_spill] sm:$0xff] }
 0x285   :  { %v1031_v36 = vadd.f32 %v7837_v61, %v7836_v8  ;;  %v7849_v8 = vld [vmem:[#allocation44_spill] sm:$0xff] }
 0x286   :  { %2095 = vmatmul.f32.gmra.mxu2 %v1910_v34  ;;  %4297 = vmatmul.msk.f32.gmra.mxu3 %vm1973_vm2, %v1911_v12 }
 0x287   :  { %v1617_v4 = vpop.f32.mrf.mxu0  ;;  %v1718_v5 = vpop.f32.mrf.mxu1 }
 0x288   :  { %v1794_v18 = vadd.f32 %v1617_v4, %v1409_v19  ;;  %v1795_v47 = vadd.f32 %v1718_v5, %v1410_v50  ;;  %v2333_v19 = vld [vmem:[%s7743_s4 + $0xa0] sm:$0xf]  ;;  %v7838_v50 = vld [vmem:[#allocation68_spill] sm:$0xff]  ;;  %v7839_v5 = vld [vmem:[#allocation69_spill] sm:$0xff] }
 0x289   :  { %4362 = vmatpush.msk.msrb.mxu2 %vm259_vm0, %v2333_v19  ;;  %v1415_v4 = vadd.f32 %v7838_v50, %v1030_v41  ;;  %v7848_v41 = vld [vmem:[#allocation9_spill] sm:$0xff] }
 0x28a   :  { %v1856_v49 = vadd.f32 %v5907_v39, %v1794_v18  ;;  %v1857_v16 = vadd.f32 %v5909_v3, %v1795_v47  ;;  %4257 = vmatmul.msk.f32.gmra.mxu0 %vm41_vm1, %v1473_v48  ;;  %4286 = vmatmul.msk.f32.gmra.mxu1 %vm41_vm1, %v1473_v48  ;;  %v1416_v48 = vadd.f32 %v7839_v5, %v1031_v36  ;;  %v7851_v50 = vld [vmem:[#allocation77_spill] sm:$0xff] }
 0x28b   :  { %v1035_v61 = vadd.f32 %v7849_v8, %v7848_v41  ;;  %v7861_v41 = vld [vmem:[#allocation48_spill] sm:$0xff] }
 0x28c   :  { %v1913_v53 = vmax.f32 %v1857_v16, 0.0  ;;  %v1912_v38 = vmax.f32 %v1856_v49, 0.0  ;;  %v1476_v49 = vld [vmem:[#allocation2 + $0xf8] sm:$0xff]  ;;  %v6091_v16 = vpop.f32.mrf.mxu2 }
 0x28e   :  { %2098 = vmatmul.f32.gmra.mxu2 %v1912_v38  ;;  %4298 = vmatmul.msk.f32.gmra.mxu3 %vm1973_vm2, %v1913_v53 }
 0x28f   :  { %v1620_v7 = vpop.f32.mrf.mxu0  ;;  %v1721_v9 = vpop.f32.mrf.mxu1 }
 0x290   :  { %v1796_v31 = vadd.f32 %v1620_v7, %v1411_v44  ;;  %v1797_v23 = vadd.f32 %v1721_v9, %v1412_v14  ;;  %v7840_v44 = vld [vmem:[#allocation6_spill] sm:$0xff]  ;;  %v7841_v14 = vld [vmem:[#allocation41_spill] sm:$0xff]  ;;  %v7842_v9 = vld [vmem:[#allocation7_spill] sm:$0xff] }
 0x291   :  { %v1032_v7 = vadd.f32 %v7841_v14, %v7840_v44  ;;  %v7854_v44 = vld [vmem:[#allocation11_spill] sm:$0xff]  ;;  %v7855_v14 = vld [vmem:[#allocation46_spill] sm:$0xff] }
 0x292   :  { %v1858_v30 = vadd.f32 %v5907_v39, %v1796_v31  ;;  %v1859_v45 = vadd.f32 %v5909_v3, %v1797_v23  ;;  %4258 = vmatmul.msk.f32.gmra.mxu0 %vm41_vm1, %v5706_v57  ;;  %4287 = vmatmul.msk.f32.gmra.mxu1 %vm41_vm1, %v5706_v57  ;;  %v6068_v57 = vpop.f32.mrf.mxu3  ;;  %v7843_v31 = vld [vmem:[#allocation42_spill] sm:$0xff] }
 0x293   :  { %v1033_v23 = vadd.f32 %v7843_v31, %v7842_v9 }
 0x294   :  { %v1915_v20 = vmax.f32 %v1859_v45, 0.0  ;;  %v1914_v10 = vmax.f32 %v1858_v30, 0.0 }
 0x296   :  { %2101 = vmatmul.f32.gmra.mxu2 %v1914_v10  ;;  %4299 = vmatmul.msk.f32.gmra.mxu3 %vm1973_vm2, %v1915_v20  ;;  %v7844_v20 = vld [vmem:[#allocation72_spill] sm:$0xff] }
 0x297   :  { %v1623_v25 = vpop.f32.mrf.mxu0  ;;  %v1724_v29 = vpop.f32.mrf.mxu1  ;;  %v1417_v10 = vadd.f32 %v7844_v20, %v1032_v7  ;;  %v1037_v7 = vadd.f32 %v7855_v14, %v7854_v44  ;;  %v7857_v20 = vld [vmem:[#allocation81_spill] sm:$0xff] }
 0x298   :  { %v1798_v59 = vadd.f32 %v1623_v25, %v1413_v0  ;;  %v1799_v60 = vadd.f32 %v1724_v29, %v1414_v33  ;;  %v1418_v0 = vadd.f32 %v7845_v22, %v1033_v23  ;;  %v2330_v22 = vld [vmem:[%s7743_s4 + $0x88] sm:$0xff] }
 0x299   :  { %2552 = vmatpush.msrb.mxu3 %v2330_v22 }
 0x29a   :  { %v1860_v1 = vadd.f32 %v5907_v39, %v1798_v59  ;;  %v1861_v21 = vadd.f32 %v5909_v3, %v1799_v60  ;;  %4259 = vmatmul.msk.f32.gmra.mxu0 %vm41_vm1, %v7833_v58  ;;  %4288 = vmatmul.msk.f32.gmra.mxu1 %vm41_vm1, %v7833_v58  ;;  %v6093_v26 = vpop.f32.mrf.mxu3  ;;  %v6112_v59 = vpop.f32.mrf.mxu2  ;;  %v7846_v58 = vld [vmem:[#allocation8_spill] sm:$0xff] }
 0x29b   :  { %v1034_v35 = vadd.f32 %v7847_v56, %v7846_v58  ;;  %v7859_v58 = vld [vmem:[#allocation47_spill] sm:$0xff] }
 0x29c   :  { %v1917_v12 = vmax.f32 %v1861_v21, 0.0  ;;  %v1916_v34 = vmax.f32 %v1860_v1, 0.0 }
 0x29d   :  { %v1419_v19 = vadd.f32 %v7850_v42, %v1034_v35  ;;  %v7860_v35 = vld [vmem:[#allocation13_spill] sm:$0xff] }
 0x29e   :  { %2104 = vmatmul.f32.gmra.mxu2 %v1916_v34  ;;  %4300 = vmatmul.msk.f32.gmra.mxu3 %vm1973_vm2, %v1917_v12  ;;  %v4329_v34 = vld [vmem:[%s7743_s4 + $0x108] sm:$0xff]  ;;  %v1039_v8 = vadd.f32 %v7861_v41, %v7860_v35 }
 0x29f   :  { %v1626_v18 = vpop.f32.mrf.mxu0  ;;  %v1727_v47 = vpop.f32.mrf.mxu1  ;;  %2452 = vmatpush.msrb.mxu1 %v4329_v34 }
 0x2a0   :  { %v1800_v37 = vadd.f32 %v1626_v18, %v1415_v4  ;;  %v1801_v53 = vadd.f32 %v1727_v47, %v1416_v48  ;;  %v1420_v4 = vadd.f32 %v7851_v50, %v1035_v61  ;;  %v1424_v42 = vadd.f32 %v5920_v54, %v1039_v8  ;;  %v7865_v54 = vld [vmem:[#allocation50_spill] sm:$0xff] }
 0x2a2   :  { %v1862_v38 = vadd.f32 %v5907_v39, %v1800_v37  ;;  %v1863_v11 = vadd.f32 %v5909_v3, %v1801_v53  ;;  %4260 = vmatmul.msk.f32.gmra.mxu0 %vm41_vm1, %v1476_v49  ;;  %4289 = vmatmul.msk.f32.gmra.mxu1 %vm41_vm1, %v1476_v49  ;;  %v6114_v60 = vpop.f32.mrf.mxu3  ;;  %v7852_v53 = vld [vmem:[#allocation10_spill] sm:$0xff]  ;;  %v6134_v9 = vpop.f32.mrf.mxu2 }
 0x2a4   :  { %v1919_v30 = vmax.f32 %v1863_v11, 0.0  ;;  %v1918_v45 = vmax.f32 %v1862_v38, 0.0  ;;  %v7853_v38 = vld [vmem:[#allocation45_spill] sm:$0xff] }
 0x2a5   :  { %v1036_v11 = vadd.f32 %v7853_v38, %v7852_v53  ;;  %v7863_v53 = vld [vmem:[#allocation49_spill] sm:$0xff]  ;;  %v7864_v38 = vld [vmem:[#allocation15_spill] sm:$0xff] }
 0x2a6   :  { %2107 = vmatmul.f32.gmra.mxu2 %v1918_v45  ;;  %4301 = vmatmul.msk.f32.gmra.mxu3 %vm1973_vm2, %v1919_v30  ;;  %v2331_v45 = vld [vmem:[%s7743_s4 + $0x90] sm:$0xff] }
 0x2a7   :  { %v1629_v28 = vpop.f32.mrf.mxu0  ;;  %v1730_v33 = vpop.f32.mrf.mxu1  ;;  %2504 = vmatpush.msrb.mxu2 %v2331_v45  ;;  %v1421_v2 = vadd.f32 %v7856_v52, %v1036_v11  ;;  %v1041_v11 = vadd.f32 %v7865_v54, %v7864_v38  ;;  %v7872_v38 = vld [vmem:[#allocation19_spill] sm:$0xff]  ;;  %v7873_v54 = vld [vmem:[#allocation54_spill] sm:$0xff] }
 0x2a8   :  { %v1802_v25 = vadd.f32 %v1629_v28, %v1417_v10  ;;  %v1803_v29 = vadd.f32 %v1730_v33, %v1418_v0  ;;  %v1422_v10 = vadd.f32 %v7857_v20, %v1037_v7  ;;  %v4327_v7 = vld [vmem:[%s7743_s4 + $0xf8] sm:$0xff] }
 0x2a9   :  { %2453 = vmatpush.msrb.mxu1 %v4327_v7  ;;  %v1426_v45 = vadd.f32 %v5937_v62, %v1041_v11  ;;  %v7869_v62 = vld [vmem:[#allocation52_spill] sm:$0xff]  ;;  %v1045_v11 = vadd.f32 %v7873_v54, %v7872_v38  ;;  %v4320_v7 = vld [vmem:[%s7743_s4 + $0xc0] sm:$0xff] }
 0x2aa   :  { %v1864_v1 = vadd.f32 %v5907_v39, %v1802_v25  ;;  %v1865_v21 = vadd.f32 %v5909_v3, %v1803_v29  ;;  %v6136_v31 = vpop.f32.mrf.mxu3  ;;  %v7881_v38 = vld [vmem:[#allocation58_spill] sm:$0xff] }
 0x2ac   :  { %v1921_v36 = vmax.f32 %v1865_v21, 0.0  ;;  %v1920_v12 = vmax.f32 %v1864_v1, 0.0  ;;  %v7858_v21 = vld [vmem:[#allocation12_spill] sm:$0xff] }
 0x2ad   :  { %v1038_v56 = vadd.f32 %v7859_v58, %v7858_v21 }
 0x2ae   :  { %2110 = vmatmul.f32.gmra.mxu2 %v1920_v12  ;;  %4302 = vmatmul.msk.f32.gmra.mxu3 %vm1973_vm2, %v1921_v36  ;;  %v4328_v12 = vld [vmem:[%s7743_s4 + $0x100] sm:$0xff] }
 0x2af   :  { %v1632_v5 = vpop.f32.mrf.mxu0  ;;  %v1733_v48 = vpop.f32.mrf.mxu1  ;;  %2405 = vmatpush.msrb.mxu0 %v4328_v12  ;;  %v1423_v34 = vadd.f32 %v5918_v40, %v1038_v56 }
 0x2b0   :  { %v1804_v18 = vadd.f32 %v1632_v5, %v1419_v19  ;;  %v1805_v47 = vadd.f32 %v1733_v48, %v1420_v4  ;;  %v6158_v19 = vpop.f32.mrf.mxu2 }
 0x2b2   :  { %v1866_v49 = vadd.f32 %v5907_v39, %v1804_v18  ;;  %v1867_v37 = vadd.f32 %v5909_v3, %v1805_v47  ;;  %v6160_v50 = vpop.f32.mrf.mxu3 }
 0x2b4   :  { %v1923_v23 = vmax.f32 %v1867_v37, 0.0  ;;  %v1922_v30 = vmax.f32 %v1866_v49, 0.0  ;;  %v7862_v37 = vld [vmem:[#allocation14_spill] sm:$0xff] }
 0x2b5   :  { %v1040_v40 = vadd.f32 %v7863_v53, %v7862_v37  ;;  %v7870_v37 = vld [vmem:[#allocation18_spill] sm:$0xff]  ;;  %v7871_v53 = vld [vmem:[#allocation53_spill] sm:$0xff] }
 0x2b6   :  { %2113 = vmatmul.f32.gmra.mxu2 %v1922_v30  ;;  %4303 = vmatmul.msk.f32.gmra.mxu3 %vm1973_vm2, %v1923_v23  ;;  %v2329_v23 = vld [vmem:[%s7743_s4 + $0x80] sm:$0xff] }
 0x2b7   :  { %v1635_v0 = vpop.f32.mrf.mxu0  ;;  %v1736_v28 = vpop.f32.mrf.mxu1  ;;  %2505 = vmatpush.msrb.mxu2 %v2329_v23  ;;  %v1425_v30 = vadd.f32 %v5935_v32, %v1040_v40  ;;  %v1044_v40 = vadd.f32 %v7871_v53, %v7870_v37  ;;  %v4321_v23 = vld [vmem:[%s7743_s4 + $0xc8] sm:$0xff]  ;;  %v7878_v53 = vld [vmem:[#allocation22_spill] sm:$0xff] }
 0x2b8   :  { %v1806_v33 = vadd.f32 %v1635_v0, %v1421_v2  ;;  %v1807_v25 = vadd.f32 %v1736_v28, %v1422_v10  ;;  %v6178_v22 = vpop.f32.mrf.mxu2 }
 0x2ba   :  { %v1868_v29 = vadd.f32 %v5907_v39, %v1806_v33  ;;  %v1869_v1 = vadd.f32 %v5909_v3, %v1807_v25  ;;  %v6180_v0 = vpop.f32.mrf.mxu3  ;;  %v7866_v25 = vld [vmem:[#allocation16_spill] sm:$0xff] }
 0x2bc   :  { %v1925_v61 = vmax.f32 %v1869_v1, 0.0  ;;  %v1924_v36 = vmax.f32 %v1868_v29, 0.0  ;;  %v7867_v29 = vld [vmem:[#allocation51_spill] sm:$0xff]  ;;  %v7868_v1 = vld [vmem:[#allocation17_spill] sm:$0xff] }
 0x2bd   :  { %v1042_v32 = vadd.f32 %v7867_v29, %v7866_v25  ;;  %v1043_v21 = vadd.f32 %v7869_v62, %v7868_v1  ;;  %v7874_v62 = vld [vmem:[#allocation20_spill] sm:$0xff] }
 0x2be   :  { %2116 = vmatmul.f32.gmra.mxu2 %v1924_v36  ;;  %4304 = vmatmul.msk.f32.gmra.mxu3 %vm1973_vm2, %v1925_v61  ;;  %v4326_v36 = vld [vmem:[%s7743_s4 + $0xf0] sm:$0xff] }
 0x2bf   :  { %v1638_v4 = vpop.f32.mrf.mxu0  ;;  %v1739_v5 = vpop.f32.mrf.mxu1  ;;  %v1427_v35 = vadd.f32 %v5957_v55, %v1042_v32  ;;  %v1428_v41 = vadd.f32 %v5959_v17, %v1043_v21  ;;  %2406 = vmatpush.msrb.mxu0 %v4326_v36  ;;  %v4324_v17 = vld [vmem:[%s7743_s4 + $0xe0] sm:$0xff]  ;;  %v7875_v21 = vld [vmem:[#allocation55_spill] sm:$0xff] }
 0x2c0   :  { %v1808_v48 = vadd.f32 %v1638_v4, %v1423_v34  ;;  %v1809_v18 = vadd.f32 %v1739_v5, %v1424_v42  ;;  %v2328_v42 = vld [vmem:[%s7743_s4 + $0x78] sm:$0xff]  ;;  %v4325_v5 = vld [vmem:[%s7743_s4 + $0xe8] sm:$0xff] }
 0x2c1   :  { %2553 = vmatpush.msrb.mxu3 %v2328_v42  ;;  %2407 = vmatpush.msrb.mxu0 %v4324_v17 }
 0x2c2   :  { %v1870_v47 = vadd.f32 %v5907_v39, %v1808_v48  ;;  %v1871_v49 = vadd.f32 %v5909_v3, %v1809_v18  ;;  %2454 = vmatpush.msrb.mxu1 %v4325_v5 }
 0x2c4   :  { %v1927_v44 = vmax.f32 %v1871_v49, 0.0  ;;  %v1926_v14 = vmax.f32 %v1870_v47, 0.0  ;;  %v4322_v47 = vld [vmem:[%s7743_s4 + $0xd0] sm:$0xff]  ;;  %v4323_v49 = vld [vmem:[%s7743_s4 + $0xd8] sm:$0xff] }
 0x2c5   :  { %2408 = vmatpush.msrb.mxu0 %v4322_v47  ;;  %2455 = vmatpush.msrb.mxu1 %v4323_v49 }
 0x2c6   :  { %2119 = vmatmul.f32.gmra.mxu2 %v1926_v14  ;;  %4305 = vmatmul.msk.f32.gmra.mxu3 %vm1973_vm2, %v1927_v44 }
 0x2c7   :  { %v1641_v52 = vpop.f32.mrf.mxu0  ;;  %v1742_v2 = vpop.f32.mrf.mxu1  ;;  %2409 = vmatpush.msrb.mxu0 %v4320_v7  ;;  %2456 = vmatpush.msrb.mxu1 %v4321_v23 }
 0x2c8   :  { %v1810_v20 = vadd.f32 %v1641_v52, %v1425_v30  ;;  %v1811_v10 = vadd.f32 %v1742_v2, %v1426_v45  ;;  %v1429_v30 = vadd.f32 %v5977_v46, %v1044_v40  ;;  %v1430_v45 = vadd.f32 %v5979_v6, %v1045_v11 }
 0x2ca   :  { %v1872_v28 = vadd.f32 %v5907_v39, %v1810_v20  ;;  %v1873_v33 = vadd.f32 %v5909_v3, %v1811_v10  ;;  %v4318_v20 = vld [vmem:[%s7743_s4 + $0xb0] sm:$0xff]  ;;  %v4319_v10 = vld [vmem:[%s7743_s4 + $0xb8] sm:$0xff] }
 0x2cb   :  { %2410 = vmatpush.msrb.mxu0 %v4318_v20  ;;  %2457 = vmatpush.msrb.mxu1 %v4319_v10 }
 0x2cc   :  { %v1929_v58 = vmax.f32 %v1873_v33, 0.0  ;;  %v1928_v56 = vmax.f32 %v1872_v28, 0.0 }
 0x2ce   :  { %2122 = vmatmul.f32.gmra.mxu2 %v1928_v56  ;;  %4306 = vmatmul.msk.f32.gmra.mxu3 %vm1973_vm2, %v1929_v58  ;;  %v1046_v58 = vadd.f32 %v7875_v21, %v7874_v62  ;;  %v7876_v56 = vld [vmem:[#allocation21_spill] sm:$0xff] }
 0x2cf   :  { %v1644_v8 = vpop.f32.mrf.mxu0  ;;  %v1745_v61 = vpop.f32.mrf.mxu1 }
 0x2d0   :  { %v1812_v12 = vadd.f32 %v1644_v8, %v1427_v35  ;;  %v1813_v34 = vadd.f32 %v1745_v61, %v1428_v41  ;;  %v7877_v35 = vld [vmem:[#allocation56_spill] sm:$0xff] }
 0x2d1   :  { %v2075_v4 = vpop.f32.mrf.mxu2  ;;  %v2176_v55 = vpop.f32.mrf.mxu3  ;;  %v1047_v41 = vadd.f32 %v7877_v35, %v7876_v56 }
 0x2d2   :  { %v1874_v48 = vadd.f32 %v5907_v39, %v1812_v12  ;;  %v1875_v18 = vadd.f32 %v5909_v3, %v1813_v34  ;;  %v2177_v6 = vadd.f32 %v2176_v55, %v2075_v4  ;;  %v2327_v12 = vld [vmem:[%s7743_s4 + $0x70] sm:$0xff]  ;;  %v1431_v34 = vadd.f32 %v5996_v43, %v1046_v58  ;;  %v7879_v43 = vld [vmem:[#allocation57_spill] sm:$0xff] }
 0x2d3   :  { %2506 = vmatpush.msrb.mxu2 %v2327_v12  ;;  %v1432_v42 = vadd.f32 %v5998_v15, %v1047_v41  ;;  %v1048_v40 = vadd.f32 %v7879_v43, %v7878_v53  ;;  %v7880_v15 = vld [vmem:[#allocation23_spill] sm:$0xff]  ;;  %v2324_v53 = vld [vmem:[%s7743_s4 + $0x58] sm:$0xff] }
 0x2d4   :  { %v1931_v44 = vmax.f32 %v1875_v18, 0.0  ;;  %v1930_v14 = vmax.f32 %v1874_v48, 0.0  ;;  %v1049_v54 = vadd.f32 %v7881_v38, %v7880_v15 }
 0x2d5   :  { %v1433_v7 = vadd.f32 %v6014_v24, %v1048_v40 }
 0x2d6   :  { %2125 = vmatmul.f32.gmra.mxu2 %v1930_v14  ;;  %4307 = vmatmul.msk.f32.gmra.mxu3 %vm1973_vm2, %v1931_v44  ;;  %v2326_v14 = vld [vmem:[%s7743_s4 + $0x68] sm:$0xff]  ;;  %v1434_v23 = vadd.f32 %v6016_v27, %v1049_v54  ;;  %v7885_v27 = vld [vmem:[#allocation60_spill] sm:$0xff] }
 0x2d7   :  { %v1647_v52 = vpop.f32.mrf.mxu0  ;;  %v1748_v2 = vpop.f32.mrf.mxu1  ;;  %2554 = vmatpush.msrb.mxu3 %v2326_v14 }
 0x2d8   :  { %v1814_v28 = vadd.f32 %v1647_v52, %v1429_v30  ;;  %v1815_v33 = vadd.f32 %v1748_v2, %v1430_v45 }
 0x2d9   :  { %v2078_v46 = vpop.f32.mrf.mxu2  ;;  %v2179_v25 = vpop.f32.mrf.mxu3  ;;  %2555 = vmatpush.msrb.mxu3 %v2324_v53  ;;  %v2317_v53 = vld [vmem:[%s7743_s4 + $0x20] sm:$0xff] }
 0x2da   :  { %v1876_v29 = vadd.f32 %v5907_v39, %v1814_v28  ;;  %v1877_v32 = vadd.f32 %v5909_v3, %v1815_v33  ;;  %v2180_v1 = vadd.f32 %v2179_v25, %v2078_v46 }
 0x2dc   :  { %v1933_v8 = vmax.f32 %v1877_v32, 0.0  ;;  %v2260_v61 = vadd.f32 %v2180_v1, %v2177_v6  ;;  %v1932_v36 = vmax.f32 %v1876_v29, 0.0  ;;  %v7882_v6 = vld [vmem:[#allocation24_spill] sm:$0xff]  ;;  %v7883_v29 = vld [vmem:[#allocation59_spill] sm:$0xff]  ;;  %v7884_v32 = vld [vmem:[#allocation25_spill] sm:$0xff] }
 0x2dd   :  { %v1050_v24 = vadd.f32 %v7883_v29, %v7882_v6  ;;  %v1051_v1 = vadd.f32 %v7885_v27, %v7884_v32 }
 0x2de   :  { %v2261_v4 = vmul.f32 0.5, %v2260_v61  ;;  %2128 = vmatmul.f32.gmra.mxu2 %v1932_v36  ;;  %4308 = vmatmul.msk.f32.gmra.mxu3 %vm1973_vm2, %v1933_v8 }
 0x2df   :  { %v1650_v55 = vpop.f32.mrf.mxu0  ;;  %v1751_v17 = vpop.f32.mrf.mxu1  ;;  %v1435_v56 = vadd.f32 %v6040_v51, %v1050_v24  ;;  %v1436_v35 = vadd.f32 %v6042_v13, %v1051_v1 }
 0x2e0   :  { %2263 = vst.msk [vmem:[#allocation3] sm:$0xff] %vm2262_vm3, %v2261_v4  ;;  %v1816_v5 = vadd.f32 %v1650_v55, %v1431_v34  ;;  %v1817_v48 = vadd.f32 %v1751_v17, %v1432_v42  ;;  %v2325_v34 = vld [vmem:[%s7743_s4 + $0x60] sm:$0xff]  ;;  %v7887_v17 = vld [vmem:[#allocation61_spill] sm:$0xff] }
 0x2e1   :  { %v2081_v18 = vpop.f32.mrf.mxu2  ;;  %v2182_v47 = vpop.f32.mrf.mxu3  ;;  %2507 = vmatpush.msrb.mxu2 %v2325_v34  ;;  %v7886_v55 = vld [vmem:[#allocation26_spill] sm:$0xff] }
 0x2e2   :  { %v1878_v49 = vadd.f32 %v5907_v39, %v1816_v5  ;;  %v1879_v37 = vadd.f32 %v5909_v3, %v1817_v48  ;;  %v2183_v28 = vadd.f32 %v2182_v47, %v2081_v18  ;;  %v1052_v5 = vadd.f32 %v7887_v17, %v7886_v55  ;;  %v7888_v48 = vld [vmem:[#allocation27_spill] sm:$0xff]  ;;  %v7889_v18 = vld [vmem:[#allocation62_spill] sm:$0xff]  ;;  %v2319_v17 = vld [vmem:[%s7743_s4 + $0x30] sm:$0xff] }
 0x2e3   :  { %v1053_v47 = vadd.f32 %v7889_v18, %v7888_v48 }
 0x2e4   :  { %v1935_v11 = vmax.f32 %v1879_v37, 0.0  ;;  %v1934_v44 = vmax.f32 %v1878_v49, 0.0  ;;  %v1437_v43 = vadd.f32 %v6066_v63, %v1052_v5  ;;  %v2320_v5 = vld [vmem:[%s7743_s4 + $0x38] sm:$0xff] }
 0x2e5   :  { %v1438_v40 = vadd.f32 %v6068_v57, %v1053_v47 }
 0x2e6   :  { %2131 = vmatmul.f32.gmra.mxu2 %v1934_v44  ;;  %4309 = vmatmul.msk.f32.gmra.mxu3 %vm1973_vm2, %v1935_v11 }
 0x2e7   :  { %v1653_v30 = vpop.f32.mrf.mxu0  ;;  %v1754_v45 = vpop.f32.mrf.mxu1 }
 0x2e8   :  { %v1818_v52 = vadd.f32 %v1653_v30, %v1433_v7  ;;  %v1819_v2 = vadd.f32 %v1754_v45, %v1434_v23  ;;  %v7890_v45 = vld [vmem:[#allocation28_spill] sm:$0xff] }
 0x2e9   :  { %v2084_v20 = vpop.f32.mrf.mxu2  ;;  %v2185_v10 = vpop.f32.mrf.mxu3 }
 0x2ea   :  { %v1880_v33 = vadd.f32 %v5907_v39, %v1818_v52  ;;  %v1881_v46 = vadd.f32 %v5909_v3, %v1819_v2  ;;  %v2186_v25 = vadd.f32 %v2185_v10, %v2084_v20  ;;  %v7891_v52 = vld [vmem:[#allocation64_spill] sm:$0xff]  ;;  %v7892_v20 = vld [vmem:[#allocation29_spill] sm:$0xff] }
 0x2eb   :  { %v1054_v2 = vadd.f32 %v7891_v52, %v7890_v45  ;;  %v7893_v10 = vld [vmem:[#allocation65_spill] sm:$0xff] }
 0x2ec   :  { %v1937_v62 = vmax.f32 %v1881_v46, 0.0  ;;  %v2264_v21 = vadd.f32 %v2186_v25, %v2183_v28  ;;  %v1936_v58 = vmax.f32 %v1880_v33, 0.0  ;;  %v1055_v28 = vadd.f32 %v7893_v10, %v7892_v20  ;;  %v2313_v10 = vld [vmem:[%s7743_s4] sm:$0xff] }
 0x2ed   :  { %v1439_v6 = vadd.f32 %v6091_v16, %v1054_v2  ;;  %v2323_v16 = vld [vmem:[%s7743_s4 + $0x50] sm:$0xff] }
 0x2ee   :  { %v2265_v41 = vmul.f32 0.5, %v2264_v21  ;;  %2134 = vmatmul.f32.gmra.mxu2 %v1936_v58  ;;  %4310 = vmatmul.msk.f32.gmra.mxu3 %vm1973_vm2, %v1937_v62  ;;  %v1440_v29 = vadd.f32 %v6093_v26, %v1055_v28  ;;  %v7894_v26 = vld [vmem:[#allocation30_spill] sm:$0xff]  ;;  %v2314_v28 = vld [vmem:[%s7743_s4 + $0x8] sm:$0xff] }
 0x2ef   :  { %v1656_v8 = vpop.f32.mrf.mxu0  ;;  %v1757_v61 = vpop.f32.mrf.mxu1  ;;  %2508 = vmatpush.msrb.mxu2 %v2323_v16 }
 0x2f0   :  { %2266 = vst.msk [vmem:[#allocation3 + $0x8] sm:$0xff] %vm2262_vm3, %v2265_v41  ;;  %v1820_v36 = vadd.f32 %v1656_v8, %v1435_v56  ;;  %v1821_v12 = vadd.f32 %v1757_v61, %v1436_v35  ;;  %v7895_v41 = vld [vmem:[#allocation66_spill] sm:$0xff]  ;;  %v7896_v61 = vld [vmem:[#allocation31_spill] sm:$0xff] }
 0x2f1   :  { %v2087_v42 = vpop.f32.mrf.mxu2  ;;  %v2188_v4 = vpop.f32.mrf.mxu3  ;;  %v1056_v8 = vadd.f32 %v7895_v41, %v7894_v26 }
 0x2f2   :  { %v1882_v51 = vadd.f32 %v5907_v39, %v1820_v36  ;;  %v1883_v13 = vadd.f32 %v5909_v3, %v1821_v12  ;;  %v2189_v63 = vadd.f32 %v2188_v4, %v2087_v42  ;;  %v7897_v36 = vld [vmem:[#allocation67_spill] sm:$0xff]  ;;  %v2321_v4 = vld [vmem:[%s7743_s4 + $0x40] sm:$0xff] }
 0x2f3   :  { %v1057_v12 = vadd.f32 %v7897_v36, %v7896_v61  ;;  %2509 = vmatpush.msrb.mxu2 %v2321_v4 }
 0x2f4   :  { %v1939_v49 = vmax.f32 %v1883_v13, 0.0  ;;  %v1938_v37 = vmax.f32 %v1882_v51, 0.0  ;;  %v2322_v51 = vld [vmem:[%s7743_s4 + $0x48] sm:$0xff]  ;;  %v1441_v13 = vadd.f32 %v6112_v59, %v1056_v8 }
 0x2f5   :  { %2556 = vmatpush.msrb.mxu3 %v2322_v51  ;;  %v1442_v55 = vadd.f32 %v6114_v60, %v1057_v12  ;;  %2510 = vmatpush.msrb.mxu2 %v2319_v17 }
 0x2f6   :  { %2137 = vmatmul.f32.gmra.mxu2 %v1938_v37  ;;  %4311 = vmatmul.msk.f32.gmra.mxu3 %vm1973_vm2, %v1939_v49 }
 0x2f7   :  { %v1659_v15 = vpop.f32.mrf.mxu0  ;;  %v1760_v38 = vpop.f32.mrf.mxu1  ;;  %v6280_v54 = vld [vmem:[#allocation3 + $0x8] sm:$0xff]  ;;  %2557 = vmatpush.msrb.mxu3 %v2320_v5  ;;  %2511 = vmatpush.msrb.mxu2 %v2317_v53  ;;  %v7906_v5 = vld [vmem:[#allocation36_spill] sm:$0xff] }
 0x2f8   :  { %v1822_v11 = vadd.f32 %v1659_v15, %v1437_v43  ;;  %v1823_v44 = vadd.f32 %v1760_v38, %v1438_v40  ;;  %4341 = vmatmul.msk.f32.vlgmr.msrb.gmra.mxu0 %vm2262_vm3, %v6280_v54  ;;  %4352 = vmatmul.msk.f32.vlgmr.msrb.gmra.mxu1 %vm2262_vm3, %v6280_v54  ;;  %v2318_v43 = vld [vmem:[%s7743_s4 + $0x28] sm:$0xff] }
 0x2f9   :  { %v2090_v14 = vpop.f32.mrf.mxu2  ;;  %v2191_v7 = vpop.f32.mrf.mxu3  ;;  %2558 = vmatpush.msrb.mxu3 %v2318_v43 }
 0x2fa   :  { %v1884_v57 = vadd.f32 %v5907_v39, %v1822_v11  ;;  %v1885_v23 = vadd.f32 %v5909_v3, %v1823_v44  ;;  %v2192_v30 = vadd.f32 %v2191_v7, %v2090_v14  ;;  %v7898_v44 = vld [vmem:[#allocation32_spill] sm:$0xff]  ;;  %v7899_v14 = vld [vmem:[#allocation70_spill] sm:$0xff] }
 0x2fb   :  { %v1058_v7 = vadd.f32 %v7899_v14, %v7898_v44 }
 0x2fc   :  { %v1941_v33 = vmax.f32 %v1885_v23, 0.0  ;;  %v2267_v46 = vadd.f32 %v2192_v30, %v2189_v63  ;;  %v1940_v25 = vmax.f32 %v1884_v57, 0.0  ;;  %v2315_v63 = vld [vmem:[%s7743_s4 + $0x10] sm:$0xff]  ;;  %v2316_v57 = vld [vmem:[%s7743_s4 + $0x18] sm:$0xff]  ;;  %v7901_v30 = vld [vmem:[#allocation71_spill] sm:$0xff] }
 0x2fd   :  { %v7900_v23 = vld [vmem:[#allocation33_spill] sm:$0xff]  ;;  %2559 = vmatpush.msrb.mxu3 %v2316_v57  ;;  %2512 = vmatpush.msrb.mxu2 %v2315_v63 }
 0x2fe   :  { %v2268_v24 = vmul.f32 0.5, %v2267_v46  ;;  %2140 = vmatmul.f32.gmra.mxu2 %v1940_v25  ;;  %4312 = vmatmul.msk.f32.gmra.mxu3 %vm1973_vm2, %v1941_v33  ;;  %v1059_v45 = vadd.f32 %v7901_v30, %v7900_v23  ;;  %v1443_v33 = vadd.f32 %v6134_v9, %v1058_v7 }
 0x2ff   :  { %v1662_v32 = vpop.f32.mrf.mxu0  ;;  %v1763_v27 = vpop.f32.mrf.mxu1  ;;  %2513 = vmatpush.msrb.mxu2 %v2313_v10  ;;  %2560 = vmatpush.msrb.mxu3 %v2314_v28  ;;  %v2303_v28 = vld [vmem:[#allocation3] sm:$0xff] }
 0x300   :  { %2269 = vst.msk [vmem:[#allocation3 + $0x10] sm:$0xff] %vm2262_vm3, %v2268_v24  ;;  %v1824_v1 = vadd.f32 %v1662_v32, %v1439_v6  ;;  %v1825_v62 = vadd.f32 %v1763_v27, %v1440_v29  ;;  %v1444_v46 = vadd.f32 %v6136_v31, %v1059_v45  ;;  %v7903_v31 = vld [vmem:[#allocation74_spill] sm:$0xff] }
 0x301   :  { %v2093_v21 = vpop.f32.mrf.mxu2  ;;  %v2194_v58 = vpop.f32.mrf.mxu3 }
 0x302   :  { %v1886_v56 = vadd.f32 %v5907_v39, %v1824_v1  ;;  %v1887_v35 = vadd.f32 %v5909_v3, %v1825_v62  ;;  %v2195_v40 = vadd.f32 %v2194_v58, %v2093_v21  ;;  %v7902_v21 = vld [vmem:[#allocation34_spill] sm:$0xff] }
 0x303   :  { %v1060_v58 = vadd.f32 %v7903_v31, %v7902_v21 }
 0x304   :  { %v1943_v34 = vmax.f32 %v1887_v35, 0.0  ;;  %v1942_v42 = vmax.f32 %v1886_v56, 0.0  ;;  %v7904_v56 = vld [vmem:[#allocation35_spill] sm:$0xff] }
 0x305   :  { %v7905_v35 = vld [vmem:[#allocation75_spill] sm:$0xff]  ;;  %v1445_v8 = vadd.f32 %v6158_v19, %v1060_v58  ;;  %v4399_v58 = vld [vmem:[%s7743_s4 + $0x1d8] sm:$0xff] }
 0x306   :  { %2143 = vmatmul.f32.gmra.mxu2 %v1942_v42  ;;  %4313 = vmatmul.msk.f32.gmra.mxu3 %vm1973_vm2, %v1943_v34  ;;  %v1061_v16 = vadd.f32 %v7905_v35, %v7904_v56 }
 0x307   :  { %v1665_v48 = vpop.f32.mrf.mxu0  ;;  %v1766_v18 = vpop.f32.mrf.mxu1  ;;  %v6320_v47 = vld [vmem:[#allocation3 + $0x10] sm:$0xff] }
 0x308   :  { %v1826_v59 = vadd.f32 %v1665_v48, %v1441_v13  ;;  %v1827_v49 = vadd.f32 %v1766_v18, %v1442_v55  ;;  %4342 = vmatmul.msk.f32.gmra.mxu0 %vm2262_vm3, %v6320_v47  ;;  %4353 = vmatmul.msk.f32.gmra.mxu1 %vm2262_vm3, %v6320_v47  ;;  %v1446_v61 = vadd.f32 %v6160_v50, %v1061_v16  ;;  %v7907_v48 = vld [vmem:[#allocation78_spill] sm:$0xff] }
 0x309   :  { %v2096_v60 = vpop.f32.mrf.mxu2  ;;  %v2197_v37 = vpop.f32.mrf.mxu3  ;;  %v1062_v18 = vadd.f32 %v7907_v48, %v7906_v5  ;;  %v4400_v16 = vld [vmem:[%s7743_s4 + $0x1e0] sm:$0xff]  ;;  %v4445_v5 = vld [vmem:[%s7743_s4 + $0x298] sm:$0xff] }
 0x30a   :  { %v1888_v15 = vadd.f32 %v5907_v39, %v1826_v59  ;;  %v1889_v38 = vadd.f32 %v5909_v3, %v1827_v49  ;;  %v2198_v11 = vadd.f32 %v2197_v37, %v2096_v60  ;;  %v7908_v59 = vld [vmem:[#allocation37_spill] sm:$0xff]  ;;  %v7909_v49 = vld [vmem:[#allocation79_spill] sm:$0xff] }
 0x30b   :  { %v1063_v60 = vadd.f32 %v7909_v49, %v7908_v59  ;;  %v4395_v48 = vld [vmem:[%s7743_s4 + $0x1b8] sm:$0xff] }
 0x30c   :  { %v1945_v52 = vmax.f32 %v1889_v38, 0.0  ;;  %v2270_v2 = vadd.f32 %v2198_v11, %v2195_v40  ;;  %v1944_v20 = vmax.f32 %v1888_v15, 0.0  ;;  %v1447_v40 = vadd.f32 %v6178_v22, %v1062_v18  ;;  %v4405_v22 = vld [vmem:[%s7743_s4 + $0x208] sm:$0xf]  ;;  %v4396_v18 = vld [vmem:[%s7743_s4 + $0x1c0] sm:$0xff] }
 0x30d   :  { %v1448_v15 = vadd.f32 %v6180_v0, %v1063_v60  ;;  %4417 = vmatpush.msk.msra.mxu1 %vm259_vm0, %v4405_v22  ;;  %v4442_v60 = vld [vmem:[%s7743_s4 + $0x280] sm:$0xff] }
 0x30e   :  { %v2271_v25 = vmul.f32 0.5, %v2270_v2  ;;  %2146 = vmatmul.f32.gmra.mxu2 %v1944_v20  ;;  %4314 = vmatmul.msk.f32.gmra.mxu3 %vm1973_vm2, %v1945_v52 }
 0x30f   :  { %v1668_v6 = vpop.f32.mrf.mxu0  ;;  %v1769_v29 = vpop.f32.mrf.mxu1 }
 0x310   :  { %2272 = vst.msk [vmem:[#allocation3 + $0x18] sm:$0xff] %vm2262_vm3, %v2271_v25  ;;  %v1828_v24 = vadd.f32 %v1668_v6, %v1443_v33  ;;  %v1829_v32 = vadd.f32 %v1769_v29, %v1444_v46  ;;  %v4403_v46 = vld [vmem:[%s7743_s4 + $0x1f8] sm:$0xff]  ;;  %v4404_v29 = vld [vmem:[%s7743_s4 + $0x200] sm:$0xf] }
 0x311   :  { %v2099_v27 = vpop.f32.mrf.mxu2  ;;  %v2200_v1 = vpop.f32.mrf.mxu3  ;;  %2714 = vmatpush.msra.mxu1 %v4403_v46  ;;  %4406 = vmatpush.msk.msra.mxu0 %vm259_vm0, %v4404_v29  ;;  %v4392_v46 = vld [vmem:[%s7743_s4 + $0x1a0] sm:$0xff] }
 0x312   :  { %v1890_v62 = vadd.f32 %v5907_v39, %v1828_v24  ;;  %v1891_v9 = vadd.f32 %v5909_v3, %v1829_v32  ;;  %v2201_v19 = vadd.f32 %v2200_v1, %v2099_v27  ;;  %v4401_v24 = vld [vmem:[%s7743_s4 + $0x1e8] sm:$0xff] }
 0x313   :  { %2715 = vmatpush.msra.mxu1 %v4401_v24 }
 0x314   :  { %v1947_v26 = vmax.f32 %v1891_v9, 0.0  ;;  %v1946_v41 = vmax.f32 %v1890_v62, 0.0 }
 0x315   :  { %2716 = vmatpush.msra.mxu1 %v4399_v58  ;;  %v4388_v58 = vld [vmem:[%s7743_s4 + $0x180] sm:$0xff] }
 0x316   :  { %2149 = vmatmul.f32.gmra.mxu2 %v1946_v41  ;;  %4315 = vmatmul.msk.f32.gmra.mxu3 %vm1973_vm2, %v1947_v26  ;;  %v4397_v26 = vld [vmem:[%s7743_s4 + $0x1c8] sm:$0xff] }
 0x317   :  { %v1671_v36 = vpop.f32.mrf.mxu0  ;;  %v1772_v12 = vpop.f32.mrf.mxu1  ;;  %v6363_v34 = vld [vmem:[#allocation3 + $0x18] sm:$0xff]  ;;  %2717 = vmatpush.msra.mxu1 %v4397_v26  ;;  %v4385_v26 = vld [vmem:[%s7743_s4 + $0x168] sm:$0xff] }
 0x318   :  { %v1830_v42 = vadd.f32 %v1671_v36, %v1445_v8  ;;  %v1831_v4 = vadd.f32 %v1772_v12, %v1446_v61  ;;  %4343 = vmatmul.msk.f32.gmra.mxu0 %vm2262_vm3, %v6363_v34  ;;  %4354 = vmatmul.msk.f32.gmra.mxu1 %vm2262_vm3, %v6363_v34  ;;  %v4398_v8 = vld [vmem:[%s7743_s4 + $0x1d0] sm:$0xff] }
 0x319   :  { %v2102_v51 = vpop.f32.mrf.mxu2  ;;  %v2203_v13 = vpop.f32.mrf.mxu3  ;;  %2718 = vmatpush.msra.mxu1 %v4395_v48 }
 0x31a   :  { %v1892_v50 = vadd.f32 %v5907_v39, %v1830_v42  ;;  %v1893_v55 = vadd.f32 %v5909_v3, %v1831_v4  ;;  %v2204_v17 = vadd.f32 %v2203_v13, %v2102_v51  ;;  %v4448_v4 = vld [vmem:[%s7743_s4 + $0x2b0] sm:$0xf]  ;;  %v4449_v51 = vld [vmem:[%s7743_s4 + $0x2b8] sm:$0xf] }
 0x31b   :  { %4450 = vmatpush.msk.msra.mxu2 %vm259_vm0, %v4448_v4  ;;  %4461 = vmatpush.msk.msra.mxu3 %vm259_vm0, %v4449_v51 }
 0x31c   :  { %v1949_v37 = vmax.f32 %v1893_v55, 0.0  ;;  %v2273_v53 = vadd.f32 %v2204_v17, %v2201_v19  ;;  %v1948_v43 = vmax.f32 %v1892_v50, 0.0  ;;  %v4446_v19 = vld [vmem:[%s7743_s4 + $0x2a0] sm:$0xff]  ;;  %v4447_v50 = vld [vmem:[%s7743_s4 + $0x2a8] sm:$0xff]  ;;  %v4444_v17 = vld [vmem:[%s7743_s4 + $0x290] sm:$0xff] }
 0x31d   :  { %2850 = vmatpush.msra.mxu2 %v4446_v19  ;;  %2897 = vmatpush.msra.mxu3 %v4447_v50 }
 0x31e   :  { %v2274_v38 = vmul.f32 0.5, %v2273_v53  ;;  %2152 = vmatmul.f32.gmra.mxu2 %v1948_v43  ;;  %4316 = vmatmul.msk.f32.gmra.mxu3 %vm1973_vm2, %v1949_v37  ;;  %v4443_v37 = vld [vmem:[%s7743_s4 + $0x288] sm:$0xff]  ;;  %v4440_v43 = vld [vmem:[%s7743_s4 + $0x270] sm:$0xff] }
 0x31f   :  { %v1674_v11 = vpop.f32.mrf.mxu0  ;;  %v1775_v44 = vpop.f32.mrf.mxu1  ;;  %2851 = vmatpush.msra.mxu2 %v4444_v17  ;;  %2898 = vmatpush.msra.mxu3 %v4445_v5  ;;  %v4393_v53 = vld [vmem:[%s7743_s4 + $0x1a8] sm:$0xff]  ;;  %v4491_v17 = vld [vmem:[%s7743_s4 + $0x358] sm:$0xff] }
 0x320   :  { %2275 = vst.msk [vmem:[#allocation3 + $0x20] sm:$0xff] %vm2262_vm3, %v2274_v38  ;;  %v1832_v14 = vadd.f32 %v1674_v11, %v1447_v40  ;;  %v1833_v7 = vadd.f32 %v1775_v44, %v1448_v15  ;;  %2719 = vmatpush.msra.mxu1 %v4393_v53  ;;  %v4441_v40 = vld [vmem:[%s7743_s4 + $0x278] sm:$0xff]  ;;  %v4438_v15 = vld [vmem:[%s7743_s4 + $0x260] sm:$0xff]  ;;  %v4439_v38 = vld [vmem:[%s7743_s4 + $0x268] sm:$0xff] }
 0x321   :  { %v2105_v63 = vpop.f32.mrf.mxu2  ;;  %v2206_v57 = vpop.f32.mrf.mxu3  ;;  %2852 = vmatpush.msra.mxu2 %v4442_v60  ;;  %2899 = vmatpush.msra.mxu3 %v4443_v37  ;;  %v4394_v11 = vld [vmem:[%s7743_s4 + $0x1b0] sm:$0xff] }
 0x322   :  { %v1894_v23 = vadd.f32 %v5907_v39, %v1832_v14  ;;  %v1895_v30 = vadd.f32 %v5909_v3, %v1833_v7  ;;  %v2207_v2 = vadd.f32 %v2206_v57, %v2105_v63  ;;  %v4436_v14 = vld [vmem:[%s7743_s4 + $0x250] sm:$0xff]  ;;  %v4437_v7 = vld [vmem:[%s7743_s4 + $0x258] sm:$0xff] }
 0x323   :  { %2853 = vmatpush.msra.mxu2 %v4440_v43  ;;  %2900 = vmatpush.msra.mxu3 %v4441_v40 }
 0x324   :  { %v1951_v0 = vmax.f32 %v1895_v30, 0.0  ;;  %v1950_v45 = vmax.f32 %v1894_v23, 0.0  ;;  %v4391_v23 = vld [vmem:[%s7743_s4 + $0x198] sm:$0xff]  ;;  %v4434_v30 = vld [vmem:[%s7743_s4 + $0x240] sm:$0xff] }
 0x325   :  { %2854 = vmatpush.msra.mxu2 %v4438_v15  ;;  %2901 = vmatpush.msra.mxu3 %v4439_v38  ;;  %v4490_v38 = vld [vmem:[%s7743_s4 + $0x350] sm:$0xff] }
 0x326   :  { %2155 = vmatmul.f32.gmra.mxu2 %v1950_v45  ;;  %4317 = vmatmul.msk.f32.gmra.mxu3 %vm1973_vm2, %v1951_v0  ;;  %v4435_v45 = vld [vmem:[%s7743_s4 + $0x248] sm:$0xff] }
 0x327   :  { %v6386_v52 = vld [vmem:[#allocation3 + $0x20] sm:$0xff]  ;;  %2855 = vmatpush.msra.mxu2 %v4436_v14  ;;  %2720 = vmatpush.msra.mxu1 %v4391_v23 }
 0x328   :  { %4344 = vmatmul.msk.f32.gmra.mxu0 %vm2262_vm3, %v6386_v52  ;;  %4355 = vmatmul.msk.f32.gmra.mxu1 %vm2262_vm3, %v6386_v52 }
 0x329   :  { %v2108_v3 = vpop.f32.mrf.mxu2  ;;  %v2209_v39 = vpop.f32.mrf.mxu3  ;;  %2902 = vmatpush.msra.mxu3 %v4437_v7  ;;  %2856 = vmatpush.msra.mxu2 %v4434_v30  ;;  %v4486_v30 = vld [vmem:[%s7743_s4 + $0x330] sm:$0xff] }
 0x32a   :  { %v2210_v20 = vadd.f32 %v2209_v39, %v2108_v3  ;;  %v4432_v39 = vld [vmem:[%s7743_s4 + $0x230] sm:$0xff] }
 0x32b   :  { %2903 = vmatpush.msra.mxu3 %v4435_v45  ;;  %2857 = vmatpush.msra.mxu2 %v4432_v39  ;;  %v4483_v45 = vld [vmem:[%s7743_s4 + $0x318] sm:$0xff] }
 0x32c   :  { %v2276_v10 = vadd.f32 %v2210_v20, %v2207_v2  ;;  %v4433_v2 = vld [vmem:[%s7743_s4 + $0x238] sm:$0xff] }
 0x32d   :  { %2904 = vmatpush.msra.mxu3 %v4433_v2 }
 0x32e   :  { %v2277_v33 = vmul.f32 0.5, %v2276_v10  ;;  %4363 = vmatmul.msk.f32.vlgmr.msrb.gmra.mxu2 %vm2262_vm3, %v2303_v28  ;;  %4374 = vmatmul.msk.f32.vlgmr.msrb.gmra.mxu3 %vm2262_vm3, %v2303_v28  ;;  %v4430_v10 = vld [vmem:[%s7743_s4 + $0x220] sm:$0xff]  ;;  %v4431_v28 = vld [vmem:[%s7743_s4 + $0x228] sm:$0xff] }
 0x32f   :  { %2858 = vmatpush.msra.mxu2 %v4430_v10  ;;  %2905 = vmatpush.msra.mxu3 %v4431_v28  ;;  %v4481_v10 = vld [vmem:[%s7743_s4 + $0x308] sm:$0xff]  ;;  %v4482_v28 = vld [vmem:[%s7743_s4 + $0x310] sm:$0xff] }
 0x330   :  { %2278 = vst.msk [vmem:[#allocation3 + $0x28] sm:$0xff] %vm2262_vm3, %v2277_v33  ;;  %v4428_v33 = vld [vmem:[%s7743_s4 + $0x210] sm:$0xff] }
 0x331   :  { %v2111_v25 = vpop.f32.mrf.mxu2  ;;  %v2212_v6 = vpop.f32.mrf.mxu3  ;;  %2859 = vmatpush.msra.mxu2 %v4428_v33 }
 0x332   :  { %v2213_v62 = vadd.f32 %v2212_v6, %v2111_v25  ;;  %v4429_v25 = vld [vmem:[%s7743_s4 + $0x218] sm:$0xff]  ;;  %v4389_v6 = vld [vmem:[%s7743_s4 + $0x188] sm:$0xff] }
 0x333   :  { %2721 = vmatpush.msra.mxu1 %v4389_v6  ;;  %2906 = vmatpush.msra.mxu3 %v4429_v25  ;;  %v4479_v25 = vld [vmem:[%s7743_s4 + $0x2f8] sm:$0xff] }
 0x336   :  { %4364 = vmatmul.msk.f32.gmra.mxu2 %vm2262_vm3, %v6280_v54  ;;  %4375 = vmatmul.msk.f32.gmra.mxu3 %vm2262_vm3, %v6280_v54  ;;  %v4402_v54 = vld [vmem:[%s7743_s4 + $0x1f0] sm:$0xff] }
 0x337   :  { %v6409_v32 = vld [vmem:[#allocation3 + $0x28] sm:$0xff]  ;;  %2667 = vmatpush.msra.mxu0 %v4402_v54 }
 0x338   :  { %4345 = vmatmul.msk.f32.gmra.mxu0 %vm2262_vm3, %v6409_v32  ;;  %4356 = vmatmul.msk.f32.gmra.mxu1 %vm2262_vm3, %v6409_v32 }
 0x339   :  { %v2114_v27 = vpop.f32.mrf.mxu2  ;;  %v2215_v1 = vpop.f32.mrf.mxu3  ;;  %2668 = vmatpush.msra.mxu0 %v4400_v16 }
 0x33a   :  { %v2216_v9 = vadd.f32 %v2215_v1, %v2114_v27  ;;  %v4390_v27 = vld [vmem:[%s7743_s4 + $0x190] sm:$0xff]  ;;  %v4387_v1 = vld [vmem:[%s7743_s4 + $0x178] sm:$0xff] }
 0x33b   :  { %2669 = vmatpush.msra.mxu0 %v4398_v8  ;;  %2722 = vmatpush.msra.mxu1 %v4387_v1  ;;  %v4384_v8 = vld [vmem:[%s7743_s4 + $0x160] sm:$0xff] }
 0x33c   :  { %v2279_v21 = vadd.f32 %v2216_v9, %v2213_v62 }
 0x33d   :  { %2670 = vmatpush.msra.mxu0 %v4396_v18  ;;  %2723 = vmatpush.msra.mxu1 %v4385_v26  ;;  %v4492_v18 = vld [vmem:[%s7743_s4 + $0x360] sm:$0xf] }
 0x33e   :  { %v2280_v31 = vmul.f32 0.5, %v2279_v21  ;;  %4365 = vmatmul.msk.f32.gmra.mxu2 %vm2262_vm3, %v6320_v47  ;;  %4376 = vmatmul.msk.f32.gmra.mxu3 %vm2262_vm3, %v6320_v47  ;;  %v4472_v26 = vld [vmem:[%s7743_s4 + $0x2c0] sm:$0xff] }
 0x33f   :  { %2671 = vmatpush.msra.mxu0 %v4394_v11  ;;  %v4487_v11 = vld [vmem:[%s7743_s4 + $0x338] sm:$0xff] }
 0x340   :  { %2281 = vst.msk [vmem:[#allocation3 + $0x30] sm:$0xff] %vm2262_vm3, %v2280_v31 }
 0x341   :  { %v2117_v56 = vpop.f32.mrf.mxu2  ;;  %v2218_v35 = vpop.f32.mrf.mxu3  ;;  %2672 = vmatpush.msra.mxu0 %v4392_v46 }
 0x342   :  { %v2219_v12 = vadd.f32 %v2218_v35, %v2117_v56  ;;  %v4386_v35 = vld [vmem:[%s7743_s4 + $0x170] sm:$0xff] }
 0x343   :  { %2673 = vmatpush.msra.mxu0 %v4390_v27 }
 0x345   :  { %2674 = vmatpush.msra.mxu0 %v4388_v58 }
 0x346   :  { %4366 = vmatmul.msk.f32.gmra.mxu2 %vm2262_vm3, %v6363_v34  ;;  %4377 = vmatmul.msk.f32.gmra.mxu3 %vm2262_vm3, %v6363_v34 }
 0x347   :  { %v6436_v41 = vld [vmem:[#allocation3 + $0x30] sm:$0xff]  ;;  %2675 = vmatpush.msra.mxu0 %v4386_v35 }
 0x348   :  { %4346 = vmatmul.msk.f32.gmra.mxu0 %vm2262_vm3, %v6436_v41  ;;  %4357 = vmatmul.msk.f32.gmra.mxu1 %vm2262_vm3, %v6436_v41  ;;  %v4474_v35 = vld [vmem:[%s7743_s4 + $0x2d0] sm:$0xff] }
 0x349   :  { %v2120_v61 = vpop.f32.mrf.mxu2  ;;  %v2221_v36 = vpop.f32.mrf.mxu3  ;;  %2676 = vmatpush.msra.mxu0 %v4384_v8 }
 0x34a   :  { %v2222_v42 = vadd.f32 %v2221_v36, %v2120_v61 }
 0x34b   :  { %4494 = vmatpush.msk.msrb.mxu0 %vm259_vm0, %v4492_v18 }
 0x34c   :  { %v2282_v13 = vadd.f32 %v2222_v42, %v2219_v12  ;;  %v4493_v12 = vld [vmem:[%s7743_s4 + $0x368] sm:$0xf] }
 0x34d   :  { %4505 = vmatpush.msk.msrb.mxu1 %vm259_vm0, %v4493_v12  ;;  %3033 = vmatpush.msrb.mxu0 %v4490_v38 }
 0x34e   :  { %v2283_v55 = vmul.f32 0.5, %v2282_v13  ;;  %4367 = vmatmul.msk.f32.gmra.mxu2 %vm2262_vm3, %v6386_v52  ;;  %4378 = vmatmul.msk.f32.gmra.mxu3 %vm2262_vm3, %v6386_v52 }
 0x34f   :  { %3080 = vmatpush.msrb.mxu1 %v4491_v17 }
 0x350   :  { %2284 = vst.msk [vmem:[#allocation3 + $0x38] sm:$0xff] %vm2262_vm3, %v2283_v55 }
 0x351   :  { %v2123_v59 = vpop.f32.mrf.mxu2  ;;  %v2224_v49 = vpop.f32.mrf.mxu3 }
 0x352   :  { %v2225_v22 = vadd.f32 %v2224_v49, %v2123_v59  ;;  %v4489_v59 = vld [vmem:[%s7743_s4 + $0x348] sm:$0xff] }
 0x353   :  { %3081 = vmatpush.msrb.mxu1 %v4489_v59 }
 0x355   :  { %3082 = vmatpush.msrb.mxu1 %v4487_v11 }
 0x356   :  { %4368 = vmatmul.msk.f32.gmra.mxu2 %vm2262_vm3, %v6409_v32  ;;  %4379 = vmatmul.msk.f32.gmra.mxu3 %vm2262_vm3, %v6409_v32 }
 0x357   :  { %v6504_v44 = vld [vmem:[#allocation3 + $0x38] sm:$0xff] }
 0x358   :  { %4347 = vmatmul.msk.f32.gmra.mxu0 %vm2262_vm3, %v6504_v44  ;;  %4358 = vmatmul.msk.f32.gmra.mxu1 %vm2262_vm3, %v6504_v44 }
 0x359   :  { %v2126_v63 = vpop.f32.mrf.mxu2  ;;  %v2227_v57 = vpop.f32.mrf.mxu3 }
 0x35a   :  { %v2228_v0 = vadd.f32 %v2227_v57, %v2126_v63  ;;  %v4485_v63 = vld [vmem:[%s7743_s4 + $0x328] sm:$0xff] }
 0x35b   :  { %3083 = vmatpush.msrb.mxu1 %v4485_v63 }
 0x35c   :  { %v2285_v3 = vadd.f32 %v2228_v0, %v2225_v22 }
 0x35d   :  { %3084 = vmatpush.msrb.mxu1 %v4483_v45 }
 0x35e   :  { %v2286_v20 = vmul.f32 0.5, %v2285_v3  ;;  %4369 = vmatmul.msk.f32.gmra.mxu2 %vm2262_vm3, %v6436_v41  ;;  %4380 = vmatmul.msk.f32.gmra.mxu3 %vm2262_vm3, %v6436_v41 }
 0x35f   :  { %3085 = vmatpush.msrb.mxu1 %v4481_v10  ;;  %v4528_v10 = vld [vmem:[%s7744_s6 + $0x100] sm:$0xff] }
 0x360   :  { %2287 = vst.msk [vmem:[#allocation3 + $0x40] sm:$0xff] %vm2262_vm3, %v2286_v20  ;;  %v4484_v20 = vld [vmem:[%s7743_s4 + $0x320] sm:$0xff] }
 0x361   :  { %v2129_v29 = vpop.f32.mrf.mxu2  ;;  %v2230_v24 = vpop.f32.mrf.mxu3  ;;  %3086 = vmatpush.msrb.mxu1 %v4479_v25  ;;  %v4525_v25 = vld [vmem:[%s7744_s6 + $0xe8] sm:$0xff] }
 0x362   :  { %v2231_v31 = vadd.f32 %v2230_v24, %v2129_v29  ;;  %v4480_v24 = vld [vmem:[%s7743_s4 + $0x300] sm:$0xff] }
 0x366   :  { %4370 = vmatmul.msk.f32.gmra.mxu2 %vm2262_vm3, %v6504_v44  ;;  %4381 = vmatmul.msk.f32.gmra.mxu3 %vm2262_vm3, %v6504_v44 }
 0x367   :  { %v6564_v62 = vld [vmem:[#allocation3 + $0x40] sm:$0xff] }
 0x368   :  { %4348 = vmatmul.msk.f32.gmra.mxu0 %vm2262_vm3, %v6564_v62  ;;  %4359 = vmatmul.msk.f32.gmra.mxu1 %vm2262_vm3, %v6564_v62 }
 0x369   :  { %v2132_v9 = vpop.f32.mrf.mxu2  ;;  %v2233_v21 = vpop.f32.mrf.mxu3 }
 0x36a   :  { %v2234_v54 = vadd.f32 %v2233_v21, %v2132_v9  ;;  %v4477_v9 = vld [vmem:[%s7743_s4 + $0x2e8] sm:$0xff] }
 0x36b   :  { %3087 = vmatpush.msrb.mxu1 %v4477_v9  ;;  %v4523_v9 = vld [vmem:[%s7744_s6 + $0xd8] sm:$0xff] }
 0x36c   :  { %v2288_v56 = vadd.f32 %v2234_v54, %v2231_v31  ;;  %v4478_v31 = vld [vmem:[%s7743_s4 + $0x2f0] sm:$0xff]  ;;  %v4475_v54 = vld [vmem:[%s7743_s4 + $0x2d8] sm:$0xff] }
 0x36d   :  { %3088 = vmatpush.msrb.mxu1 %v4475_v54  ;;  %v4521_v54 = vld [vmem:[%s7744_s6 + $0xc8] sm:$0xff] }
 0x36e   :  { %v2289_v16 = vmul.f32 0.5, %v2288_v56  ;;  %4371 = vmatmul.msk.f32.gmra.mxu2 %vm2262_vm3, %v6564_v62  ;;  %4382 = vmatmul.msk.f32.gmra.mxu3 %vm2262_vm3, %v6564_v62  ;;  %v4476_v56 = vld [vmem:[%s7743_s4 + $0x2e0] sm:$0xff] }
 0x370   :  { %2290 = vst.msk [vmem:[#allocation3 + $0x48] sm:$0xff] %vm2262_vm3, %v2289_v16  ;;  %v4473_v16 = vld [vmem:[%s7743_s4 + $0x2c8] sm:$0xff] }
 0x371   :  { %v2135_v61 = vpop.f32.mrf.mxu2  ;;  %v2236_v36 = vpop.f32.mrf.mxu3  ;;  %3089 = vmatpush.msrb.mxu1 %v4473_v16 }
 0x372   :  { %v2237_v13 = vadd.f32 %v2236_v36, %v2135_v61 }
 0x375   :  { %v6735_v8 = vpop.f32.mrf.mxu0  ;;  %v6737_v61 = vpop.f32.mrf.mxu1 }
 0x377   :  { %v6591_v42 = vld [vmem:[#allocation3 + $0x48] sm:$0xff] }
 0x378   :  { %4349 = vmatmul.msk.f32.gmra.mxu0 %vm2262_vm3, %v6591_v42  ;;  %4360 = vmatmul.msk.f32.gmra.mxu1 %vm2262_vm3, %v6591_v42 }
 0x379   :  { %4372 = vmatmul.msk.f32.gmra.mxu2 %vm2262_vm3, %v6591_v42  ;;  %4383 = vmatmul.msk.f32.gmra.mxu3 %vm2262_vm3, %v6591_v42  ;;  %v2138_v4 = vpop.f32.mrf.mxu2  ;;  %v2239_v51 = vpop.f32.mrf.mxu3 }
 0x37a   :  { %v2240_v19 = vadd.f32 %v2239_v51, %v2138_v4 }
 0x37c   :  { %v2291_v50 = vadd.f32 %v2240_v19, %v2237_v13 }
 0x37e   :  { %v2292_v55 = vmul.f32 0.5, %v2291_v50 }
 0x380   :  { %2293 = vst.msk [vmem:[#allocation3 + $0x50] sm:$0xff] %vm2262_vm3, %v2292_v55 }
 0x381   :  { %4451 = vmatmul.msk.f32.vlgmr.msra.gmra.mxu2 %vm2262_vm3, %v6363_v34  ;;  %4462 = vmatmul.msk.f32.vlgmr.msra.gmra.mxu3 %vm2262_vm3, %v6363_v34  ;;  %v2141_v5 = vpop.f32.mrf.mxu2  ;;  %v2242_v48 = vpop.f32.mrf.mxu3 }
 0x382   :  { %v2243_v53 = vadd.f32 %v2242_v48, %v2141_v5 }
 0x385   :  { %v6751_v4 = vpop.f32.mrf.mxu0  ;;  %v6753_v51 = vpop.f32.mrf.mxu1 }
 0x387   :  { %v6616_v49 = vld [vmem:[#allocation3 + $0x50] sm:$0xff] }
 0x388   :  { %4350 = vmatmul.msk.f32.gmra.mxu0 %vm2262_vm3, %v6616_v49  ;;  %4361 = vmatmul.msk.f32.gmra.mxu1 %vm2262_vm3, %v6616_v49 }
 0x389   :  { %4452 = vmatmul.msk.f32.gmra.mxu2 %vm2262_vm3, %v6386_v52  ;;  %4463 = vmatmul.msk.f32.gmra.mxu3 %vm2262_vm3, %v6386_v52  ;;  %v2144_v60 = vpop.f32.mrf.mxu2  ;;  %v2245_v37 = vpop.f32.mrf.mxu3 }
 0x38a   :  { %v2246_v43 = vadd.f32 %v2245_v37, %v2144_v60 }
 0x38c   :  { %v2294_v40 = vadd.f32 %v2246_v43, %v2243_v53 }
 0x38e   :  { %v2295_v15 = vmul.f32 0.5, %v2294_v40 }
 0x390   :  { %2296 = vst.msk [vmem:[#allocation3 + $0x58] sm:$0xff] %vm2262_vm3, %v2295_v15  ;;  %4407 = vmatmul.msk.f32.vlgmr.msra.gmra.mxu0 %vm2262_vm3, %v6320_v47  ;;  %4418 = vmatmul.msk.f32.vlgmr.msra.gmra.mxu1 %vm2262_vm3, %v6320_v47  ;;  %v4488_v47 = vld [vmem:[%s7743_s4 + $0x340] sm:$0xff] }
 0x391   :  { %4453 = vmatmul.msk.f32.gmra.mxu2 %vm2262_vm3, %v6409_v32  ;;  %4464 = vmatmul.msk.f32.gmra.mxu3 %vm2262_vm3, %v6409_v32  ;;  %v2147_v14 = vpop.f32.mrf.mxu2  ;;  %v2248_v7 = vpop.f32.mrf.mxu3 }
 0x392   :  { %3034 = vmatpush.msrb.mxu0 %v4488_v47  ;;  %v2249_v22 = vadd.f32 %v2248_v7, %v2147_v14 }
 0x394   :  { %3035 = vmatpush.msrb.mxu0 %v4486_v30 }
 0x395   :  { %v6767_v50 = vpop.f32.mrf.mxu0  ;;  %v6769_v55 = vpop.f32.mrf.mxu1 }
 0x396   :  { %3036 = vmatpush.msrb.mxu0 %v4484_v20 }
 0x397   :  { %v6743_v36 = vld [vmem:[#allocation3 + $0x58] sm:$0xff] }
 0x398   :  { %4408 = vmatmul.msk.f32.gmra.mxu0 %vm2262_vm3, %v6363_v34  ;;  %4419 = vmatmul.msk.f32.gmra.mxu1 %vm2262_vm3, %v6363_v34 }
 0x399   :  { %4454 = vmatmul.msk.f32.gmra.mxu2 %vm2262_vm3, %v6436_v41  ;;  %4465 = vmatmul.msk.f32.gmra.mxu3 %vm2262_vm3, %v6436_v41  ;;  %v2150_v57 = vpop.f32.mrf.mxu2  ;;  %v2251_v23 = vpop.f32.mrf.mxu3 }
 0x39a   :  { %v2252_v0 = vadd.f32 %v2251_v23, %v2150_v57  ;;  %3037 = vmatpush.msrb.mxu0 %v4482_v28  ;;  %v4535_v57 = vld [vmem:[%s7744_s6 + $0x138] sm:$0xff]  ;;  %v4534_v28 = vld [vmem:[%s7744_s6 + $0x130] sm:$0xff] }
 0x39b   :  { %3264 = vmatpush.msrb.mxu3 %v4535_v57  ;;  %v4517_v57 = vld [vmem:[%s7744_s6 + $0xa8] sm:$0xff] }
 0x39c   :  { %v2297_v34 = vadd.f32 %v2252_v0, %v2249_v22  ;;  %3038 = vmatpush.msrb.mxu0 %v4480_v24 }
 0x39d   :  { %3265 = vmatpush.msrb.mxu3 %v4534_v28  ;;  %v3202_v28 = vld [vmem:[%s7744_s6 + $0x78] sm:$0xff] }
 0x39e   :  { %v2298_v3 = vmul.f32 0.5, %v2297_v34  ;;  %3039 = vmatpush.msrb.mxu0 %v4478_v31  ;;  %v4531_v34 = vld [vmem:[%s7744_s6 + $0x118] sm:$0xff]  ;;  %v4522_v31 = vld [vmem:[%s7744_s6 + $0xd0] sm:$0xff] }
 0x39f   :  { %3232 = vmatpush.msrb.mxu2 %v4531_v34 }
 0x3a0   :  { %2299 = vst.msk [vmem:[#allocation3 + $0x60] sm:$0xff] %vm2262_vm3, %v2298_v3  ;;  %4409 = vmatmul.msk.f32.gmra.mxu0 %vm2262_vm3, %v6386_v52  ;;  %4420 = vmatmul.msk.f32.gmra.mxu1 %vm2262_vm3, %v6386_v52  ;;  %v4530_v3 = vld [vmem:[%s7744_s6 + $0x110] sm:$0xff] }
 0x3a1   :  { %4455 = vmatmul.msk.f32.gmra.mxu2 %vm2262_vm3, %v6504_v44  ;;  %4466 = vmatmul.msk.f32.gmra.mxu3 %vm2262_vm3, %v6504_v44  ;;  %v2153_v39 = vpop.f32.mrf.mxu2  ;;  %v2254_v2 = vpop.f32.mrf.mxu3 }
 0x3a2   :  { %v2255_v6 = vadd.f32 %v2254_v2, %v2153_v39  ;;  %3040 = vmatpush.msrb.mxu0 %v4476_v56  ;;  %3233 = vmatpush.msrb.mxu2 %v4530_v3  ;;  %v4516_v3 = vld [vmem:[%s7744_s6 + $0xa0] sm:$0xff] }
 0x3a4   :  { %3041 = vmatpush.msrb.mxu0 %v4474_v35 }
 0x3a5   :  { %v6777_v5 = vpop.f32.mrf.mxu0  ;;  %v6779_v48 = vpop.f32.mrf.mxu1 }
 0x3a6   :  { %3042 = vmatpush.msrb.mxu0 %v4472_v26 }
 0x3a7   :  { %v6759_v13 = vld [vmem:[#allocation3 + $0x60] sm:$0xff] }
 0x3a8   :  { %4410 = vmatmul.msk.f32.gmra.mxu0 %vm2262_vm3, %v6409_v32  ;;  %4421 = vmatmul.msk.f32.gmra.mxu1 %vm2262_vm3, %v6409_v32 }
 0x3a9   :  { %4456 = vmatmul.msk.f32.gmra.mxu2 %vm2262_vm3, %v6564_v62  ;;  %4467 = vmatmul.msk.f32.gmra.mxu3 %vm2262_vm3, %v6564_v62  ;;  %v2156_v33 = vpop.f32.mrf.mxu2  ;;  %v2257_v46 = vpop.f32.mrf.mxu3 }
 0x3aa   :  { %v2258_v29 = vadd.f32 %v2257_v46, %v2156_v33  ;;  %v4526_v33 = vld [vmem:[%s7744_s6 + $0xf0] sm:$0xff] }
 0x3ac   :  { %v2300_v27 = vadd.f32 %v2258_v29, %v2255_v6 }
 0x3ae   :  { %v2301_v1 = vmul.f32 0.5, %v2300_v27  ;;  %v4524_v27 = vld [vmem:[%s7744_s6 + $0xe0] sm:$0xff] }
 0x3b0   :  { %2302 = vst.msk [vmem:[#allocation3 + $0x68] sm:$0xff] %vm2262_vm3, %v2301_v1  ;;  %4411 = vmatmul.msk.f32.gmra.mxu0 %vm2262_vm3, %v6436_v41  ;;  %4422 = vmatmul.msk.f32.gmra.mxu1 %vm2262_vm3, %v6436_v41 }
 0x3b1   :  { %4457 = vmatmul.msk.f32.gmra.mxu2 %vm2262_vm3, %v6591_v42  ;;  %4468 = vmatmul.msk.f32.gmra.mxu3 %vm2262_vm3, %v6591_v42  ;;  %v6705_v21 = vpop.f32.mrf.mxu2  ;;  %v6799_v43 = vpop.f32.mrf.mxu3 }
 0x3b5   :  { %v6785_v18 = vpop.f32.mrf.mxu0  ;;  %v6787_v59 = vpop.f32.mrf.mxu1 }
 0x3b8   :  { %4412 = vmatmul.msk.f32.gmra.mxu0 %vm2262_vm3, %v6504_v44  ;;  %4423 = vmatmul.msk.f32.gmra.mxu1 %vm2262_vm3, %v6504_v44 }
 0x3b9   :  { %4458 = vmatmul.msk.f32.gmra.mxu2 %vm2262_vm3, %v6616_v49  ;;  %4469 = vmatmul.msk.f32.gmra.mxu3 %vm2262_vm3, %v6616_v49  ;;  %v6721_v58 = vpop.f32.mrf.mxu2 }
 0x3c0   :  { %4413 = vmatmul.msk.f32.gmra.mxu0 %vm2262_vm3, %v6564_v62  ;;  %4424 = vmatmul.msk.f32.gmra.mxu1 %vm2262_vm3, %v6564_v62 }
 0x3c1   :  { %4459 = vmatmul.msk.f32.gmra.mxu2 %vm2262_vm3, %v6743_v36  ;;  %4470 = vmatmul.msk.f32.gmra.mxu3 %vm2262_vm3, %v6743_v36  ;;  %v6749_v12 = vpop.f32.mrf.mxu2 }
 0x3c2   :  { %v2522_v6 = vadd.f32 %v6749_v12, %v6767_v50  ;;  %v4533_v50 = vld [vmem:[%s7744_s6 + $0x128] sm:$0xff] }
 0x3c3   :  { %3266 = vmatpush.msrb.mxu3 %v4533_v50 }
 0x3c5   :  { %v6795_v37 = vpop.f32.mrf.mxu0  ;;  %v6797_v53 = vpop.f32.mrf.mxu1 }
 0x3c8   :  { %4414 = vmatmul.msk.f32.gmra.mxu0 %vm2262_vm3, %v6591_v42  ;;  %4425 = vmatmul.msk.f32.gmra.mxu1 %vm2262_vm3, %v6591_v42 }
 0x3c9   :  { %4460 = vmatmul.msk.f32.gmra.mxu2 %vm2262_vm3, %v6759_v13  ;;  %4471 = vmatmul.msk.f32.gmra.mxu3 %vm2262_vm3, %v6759_v13  ;;  %v6765_v19 = vpop.f32.mrf.mxu2 }
 0x3ca   :  { %v2525_v56 = vadd.f32 %v6765_v19, %v6777_v5  ;;  %v2967_v19 = vld [vmem:[#allocation3 + $0x68] sm:$0xff]  ;;  %v4518_v5 = vld [vmem:[%s7744_s6 + $0xb0] sm:$0xff] }
 0x3d0   :  { %4415 = vmatmul.msk.f32.gmra.mxu0 %vm2262_vm3, %v6616_v49  ;;  %4426 = vmatmul.msk.f32.gmra.mxu1 %vm2262_vm3, %v6616_v49 }
 0x3d1   :  { %v6775_v17 = vpop.f32.mrf.mxu2 }
 0x3d5   :  { %v6807_v15 = vpop.f32.mrf.mxu0  ;;  %v6809_v38 = vpop.f32.mrf.mxu1 }
 0x3d8   :  { %4416 = vmatmul.msk.f32.gmra.mxu0 %vm2262_vm3, %v6743_v36  ;;  %4427 = vmatmul.msk.f32.gmra.mxu1 %vm2262_vm3, %v6743_v36 }
 0x3d9   :  { %v6789_v60 = vpop.f32.mrf.mxu2 }
 0x3e0   :  { %4495 = vmatmul.msk.f32.vlgmr.msrb.gmra.mxu0 %vm2262_vm3, %v6386_v52  ;;  %4506 = vmatmul.msk.f32.vlgmr.msrb.gmra.mxu1 %vm2262_vm3, %v6386_v52  ;;  %v6815_v52 = vpop.f32.mrf.mxu3 }
 0x3e1   :  { %v6801_v40 = vpop.f32.mrf.mxu2 }
 0x3e5   :  { %v6819_v14 = vpop.f32.mrf.mxu0  ;;  %v6821_v7 = vpop.f32.mrf.mxu1 }
 0x3e8   :  { %4496 = vmatmul.msk.f32.gmra.mxu0 %vm2262_vm3, %v6409_v32  ;;  %4507 = vmatmul.msk.f32.gmra.mxu1 %vm2262_vm3, %v6409_v32  ;;  %v6827_v32 = vpop.f32.mrf.mxu3 }
 0x3e9   :  { %v6817_v11 = vpop.f32.mrf.mxu2 }
 0x3f0   :  { %4497 = vmatmul.msk.f32.gmra.mxu0 %vm2262_vm3, %v6436_v41  ;;  %4508 = vmatmul.msk.f32.gmra.mxu1 %vm2262_vm3, %v6436_v41  ;;  %v6844_v22 = vpop.f32.mrf.mxu3 }
 0x3f1   :  { %v6829_v47 = vpop.f32.mrf.mxu2 }
 0x3f5   :  { %v6831_v63 = vpop.f32.mrf.mxu0  ;;  %v6833_v41 = vpop.f32.mrf.mxu1 }
 0x3f8   :  { %4498 = vmatmul.msk.f32.gmra.mxu0 %vm2262_vm3, %v6504_v44  ;;  %4509 = vmatmul.msk.f32.gmra.mxu1 %vm2262_vm3, %v6504_v44  ;;  %v6862_v39 = vpop.f32.mrf.mxu3 }
 0x3fc   :  { %v2542_v44 = vpop.f32.mrf.mxu2 }
 0x400   :  { %4499 = vmatmul.msk.f32.gmra.mxu0 %vm2262_vm3, %v6564_v62  ;;  %4510 = vmatmul.msk.f32.gmra.mxu1 %vm2262_vm3, %v6564_v62  ;;  %v2577_v46 = vpop.f32.mrf.mxu3 }
 0x405   :  { %v2439_v23 = vpop.f32.mrf.mxu0  ;;  %v6842_v30 = vpop.f32.mrf.mxu1 }
 0x406   :  { %v6846_v0 = vadd.f32 %v2542_v44, %v2439_v23  ;;  %v2528_v44 = vadd.f32 %v6775_v17, %v6785_v18  ;;  %v3201_v17 = vld [vmem:[%s7744_s6 + $0x70] sm:$0xff]  ;;  %v3200_v18 = vld [vmem:[%s7744_s6 + $0x68] sm:$0xff] }
 0x408   :  { %4500 = vmatmul.msk.f32.gmra.mxu0 %vm2262_vm3, %v6591_v42  ;;  %4511 = vmatmul.msk.f32.gmra.mxu1 %vm2262_vm3, %v6591_v42  ;;  %v4529_v42 = vld [vmem:[%s7744_s6 + $0x108] sm:$0xff]  ;;  %v2580_v35 = vpop.f32.mrf.mxu3 }
 0x409   :  { %3234 = vmatpush.msrb.mxu2 %v4529_v42 }
 0x40b   :  { %3235 = vmatpush.msrb.mxu2 %v4528_v10 }
 0x40d   :  { %v6852_v62 = vpop.f32.mrf.mxu0  ;;  %v6854_v45 = vpop.f32.mrf.mxu1 }
 0x410   :  { %4501 = vmatmul.msk.f32.gmra.mxu0 %vm2262_vm3, %v6616_v49  ;;  %4512 = vmatmul.msk.f32.gmra.mxu1 %vm2262_vm3, %v6616_v49  ;;  %v4527_v49 = vld [vmem:[%s7744_s6 + $0xf8] sm:$0xff]  ;;  %v2583_v42 = vpop.f32.mrf.mxu3 }
 0x411   :  { %3236 = vmatpush.msrb.mxu2 %v4527_v49  ;;  %v3199_v49 = vld [vmem:[%s7744_s6 + $0x60] sm:$0xff] }
 0x413   :  { %3237 = vmatpush.msrb.mxu2 %v4526_v33  ;;  %v2531_v33 = vadd.f32 %v6789_v60, %v6795_v37  ;;  %v3197_v60 = vld [vmem:[%s7744_s6 + $0x50] sm:$0xff] }
 0x414   :  { %v4615_v37 = vld [vmem:[%s7744_s6 + $0x390] sm:$0xff] }
 0x415   :  { %v6871_v2 = vpop.f32.mrf.mxu0  ;;  %v6873_v20 = vpop.f32.mrf.mxu1  ;;  %3238 = vmatpush.msrb.mxu2 %v4525_v25  ;;  %v2578_v25 = vadd.f32 %v2577_v46, %v6797_v53  ;;  %v3196_v46 = vld [vmem:[%s7744_s6 + $0x48] sm:$0xff] }
 0x417   :  { %3239 = vmatpush.msrb.mxu2 %v4524_v27 }
 0x418   :  { %4502 = vmatmul.msk.f32.gmra.mxu0 %vm2262_vm3, %v6743_v36  ;;  %4513 = vmatmul.msk.f32.gmra.mxu1 %vm2262_vm3, %v6743_v36  ;;  %v4520_v36 = vld [vmem:[%s7744_s6 + $0xc0] sm:$0xff]  ;;  %v6979_v53 = vpop.f32.mrf.mxu3 }
 0x419   :  { %3240 = vmatpush.msrb.mxu2 %v4523_v9 }
 0x41b   :  { %3241 = vmatpush.msrb.mxu2 %v4522_v31  ;;  %v3198_v31 = vld [vmem:[%s7744_s6 + $0x58] sm:$0xff] }
 0x41d   :  { %v2684_v29 = vpop.f32.mrf.mxu0  ;;  %v6896_v24 = vpop.f32.mrf.mxu1  ;;  %3242 = vmatpush.msrb.mxu2 %v4521_v54  ;;  %v4616_v54 = vld [vmem:[%s7744_s6 + $0x398] sm:$0xff] }
 0x41e   :  { %v6901_v1 = vadd.f32 %v2684_v29, %v2522_v6  ;;  %3534 = vmatpush.msra.mxu1 %v4616_v54 }
 0x41f   :  { %3243 = vmatpush.msrb.mxu2 %v4520_v36  ;;  %v2581_v36 = vadd.f32 %v2580_v35, %v6809_v38  ;;  %v4594_v38 = vld [vmem:[%s7744_s6 + $0x2f0] sm:$0xff]  ;;  %v4532_v35 = vld [vmem:[%s7744_s6 + $0x120] sm:$0xff] }
 0x420   :  { %4503 = vmatmul.msk.f32.gmra.mxu0 %vm2262_vm3, %v6759_v13  ;;  %4514 = vmatmul.msk.f32.gmra.mxu1 %vm2262_vm3, %v6759_v13  ;;  %v4519_v13 = vld [vmem:[%s7744_s6 + $0xb8] sm:$0xff] }
 0x421   :  { %3244 = vmatpush.msrb.mxu2 %v4519_v13  ;;  %3535 = vmatpush.msra.mxu1 %v4615_v37  ;;  %v3204_v37 = vld [vmem:[%s7744_s6 + $0x88] sm:$0xff] }
 0x422   :  { %3267 = vmatpush.msrb.mxu3 %v4532_v35  ;;  %v4588_v35 = vld [vmem:[%s7744_s6 + $0x2c0] sm:$0xff] }
 0x423   :  { %3245 = vmatpush.msrb.mxu2 %v4518_v5 }
 0x425   :  { %v2687_v16 = vpop.f32.mrf.mxu0  ;;  %v6918_v26 = vpop.f32.mrf.mxu1  ;;  %3246 = vmatpush.msrb.mxu2 %v4517_v57  ;;  %v3194_v57 = vld [vmem:[%s7744_s6 + $0x38] sm:$0xff] }
 0x426   :  { %v6923_v12 = vadd.f32 %v2687_v16, %v2525_v56  ;;  %v3195_v56 = vld [vmem:[%s7744_s6 + $0x40] sm:$0xff]  ;;  %v2534_v16 = vadd.f32 %v6801_v40, %v6807_v15  ;;  %v7000_v40 = vpop.f32.mrf.mxu3  ;;  %v3193_v15 = vld [vmem:[%s7744_s6 + $0x30] sm:$0xff] }
 0x427   :  { %3247 = vmatpush.msrb.mxu2 %v4516_v3  ;;  %v3192_v3 = vld [vmem:[%s7744_s6 + $0x28] sm:$0xff] }
 0x428   :  { %4504 = vmatmul.msk.f32.gmra.mxu0 %vm2262_vm3, %v2967_v19  ;;  %4515 = vmatmul.msk.f32.gmra.mxu1 %vm2262_vm3, %v2967_v19 }
 0x429   :  { %3275 = vmatpush.msra.mxu2 %v3202_v28  ;;  %v4593_v28 = vld [vmem:[%s7744_s6 + $0x2e8] sm:$0xff] }
 0x42b   :  { %3276 = vmatpush.msra.mxu2 %v3201_v17  ;;  %v3191_v17 = vld [vmem:[%s7744_s6 + $0x20] sm:$0xff] }
 0x42d   :  { %v2690_v23 = vpop.f32.mrf.mxu0  ;;  %v6941_v34 = vpop.f32.mrf.mxu1  ;;  %3277 = vmatpush.msra.mxu2 %v3200_v18  ;;  %v4592_v18 = vld [vmem:[%s7744_s6 + $0x2e0] sm:$0xff] }
 0x42e   :  { %v6946_v10 = vadd.f32 %v2690_v23, %v2528_v44  ;;  %v4595_v44 = vld [vmem:[%s7744_s6 + $0x2f8] sm:$0xff]  ;;  %v4614_v23 = vld [vmem:[%s7744_s6 + $0x388] sm:$0xff] }
 0x42f   :  { %3278 = vmatpush.msra.mxu2 %v3199_v49  ;;  %3469 = vmatpush.msra.mxu0 %v4595_v44  ;;  %v2537_v49 = vadd.f32 %v6817_v11, %v6819_v14  ;;  %v3190_v11 = vld [vmem:[%s7744_s6 + $0x18] sm:$0xff]  ;;  %v2587_v44 = vadd.f32 %v6979_v53, %v6833_v41  ;;  %v4586_v53 = vld [vmem:[%s7744_s6 + $0x2b0] sm:$0xff] }
 0x430   :  { %3536 = vmatpush.msra.mxu1 %v4614_v23  ;;  %v4591_v14 = vld [vmem:[%s7744_s6 + $0x2d8] sm:$0xff] }
 0x431   :  { %3279 = vmatpush.msra.mxu2 %v3198_v31  ;;  %3470 = vmatpush.msra.mxu0 %v4594_v38  ;;  %v3187_v38 = vld [vmem:[%s7744_s6] sm:$0xff]  ;;  %v4587_v41 = vld [vmem:[%s7744_s6 + $0x2b8] sm:$0xff] }
 0x433   :  { %3280 = vmatpush.msra.mxu2 %v3197_v60  ;;  %3471 = vmatpush.msra.mxu0 %v4593_v28  ;;  %v4590_v60 = vld [vmem:[%s7744_s6 + $0x2d0] sm:$0xff] }
 0x434   :  { %v4611_v28 = vld [vmem:[%s7744_s6 + $0x370] sm:$0xff] }
 0x435   :  { %v2693_v6 = vpop.f32.mrf.mxu0  ;;  %v2740_v29 = vpop.f32.mrf.mxu1  ;;  %3281 = vmatpush.msra.mxu2 %v3196_v46  ;;  %3472 = vmatpush.msra.mxu0 %v4592_v18  ;;  %v2590_v18 = vadd.f32 %v7000_v40, %v6842_v30  ;;  %v4583_v30 = vld [vmem:[%s7744_s6 + $0x298] sm:$0xff]  ;;  %v4582_v40 = vld [vmem:[%s7744_s6 + $0x290] sm:$0xff] }
 0x436   :  { %v6963_v27 = vadd.f32 %v2693_v6, %v2531_v33  ;;  %v6965_v9 = vadd.f32 %v2740_v29, %v2578_v25  ;;  %v2584_v33 = vadd.f32 %v2583_v42, %v6821_v7  ;;  %v3206_v29 = vld [vmem:[%s7744_s6 + $0x98] sm:$0xff]  ;;  %v3205_v7 = vld [vmem:[%s7744_s6 + $0x90] sm:$0xff]  ;;  %v7054_v46 = vpop.f32.mrf.mxu3 }
 0x437   :  { %3282 = vmatpush.msra.mxu2 %v3195_v56  ;;  %3307 = vmatpush.msra.mxu3 %v3206_v29  ;;  %v3189_v42 = vld [vmem:[%s7744_s6 + $0x10] sm:$0xff]  ;;  %v4613_v56 = vld [vmem:[%s7744_s6 + $0x380] sm:$0xff]  ;;  %v4610_v29 = vld [vmem:[%s7744_s6 + $0x368] sm:$0xff] }
 0x438   :  { %3473 = vmatpush.msra.mxu0 %v4591_v14  ;;  %3537 = vmatpush.msra.mxu1 %v4613_v56 }
 0x439   :  { %3283 = vmatpush.msra.mxu2 %v3194_v57  ;;  %3308 = vmatpush.msra.mxu3 %v3205_v7  ;;  %v2540_v57 = vadd.f32 %v6829_v47, %v6831_v63 }
 0x43a   :  { %3474 = vmatpush.msra.mxu0 %v4590_v60  ;;  %v4580_v60 = vld [vmem:[%s7744_s6 + $0x280] sm:$0xff] }
 0x43b   :  { %3284 = vmatpush.msra.mxu2 %v3193_v15  ;;  %3309 = vmatpush.msra.mxu3 %v3204_v37  ;;  %v7075_v15 = vpop.f32.mrf.mxu2 }
 0x43d   :  { %v2696_v13 = vpop.f32.mrf.mxu0  ;;  %v2743_v50 = vpop.f32.mrf.mxu1  ;;  %3285 = vmatpush.msra.mxu2 %v3192_v3 }
 0x43e   :  { %v6990_v19 = vadd.f32 %v2696_v13, %v2534_v16  ;;  %v6992_v5 = vadd.f32 %v2743_v50, %v2581_v36  ;;  %v3188_v16 = vld [vmem:[%s7744_s6 + $0x8] sm:$0xff]  ;;  %v4612_v13 = vld [vmem:[%s7744_s6 + $0x378] sm:$0xff]  ;;  %v3203_v50 = vld [vmem:[%s7744_s6 + $0x80] sm:$0xff] }
 0x43f   :  { %3286 = vmatpush.msra.mxu2 %v3191_v17  ;;  %v4589_v36 = vld [vmem:[%s7744_s6 + $0x2c8] sm:$0xff]  ;;  %3538 = vmatpush.msra.mxu1 %v4612_v13  ;;  %v2519_v13 = vadd.f32 %v6721_v58, %v6751_v4 }
 0x440   :  { %3475 = vmatpush.msra.mxu0 %v4589_v36  ;;  %3310 = vmatpush.msra.mxu3 %v3203_v50  ;;  %v4585_v17 = vld [vmem:[%s7744_s6 + $0x2a8] sm:$0xff]  ;;  %v4658_v36 = vld [vmem:[%s7744_s6 + $0x4d8] sm:$0xff]  ;;  %v2566_v50 = vadd.f32 %v6815_v52, %v6753_v51 }
 0x441   :  { %3287 = vmatpush.msra.mxu2 %v3190_v11  ;;  %3539 = vmatpush.msra.mxu1 %v4611_v28  ;;  %v2757_v58 = vadd.f32 %v6871_v2, %v2519_v13  ;;  %v4606_v51 = vld [vmem:[%s7744_s6 + $0x348] sm:$0xff]  ;;  %v3141_v2 = vld [vmem:[%s7745_s5] sm:$0x3] }
 0x442   :  { %3476 = vmatpush.msra.mxu0 %v4588_v35  ;;  %v2758_v4 = vadd.f32 %v6873_v20, %v2566_v50  ;;  %v4656_v52 = vld [vmem:[%s7744_s6 + $0x4c8] sm:$0xff]  ;;  %v4605_v20 = vld [vmem:[%s7744_s6 + $0x340] sm:$0xff] }
 0x443   :  { %3288 = vmatpush.msra.mxu2 %v3189_v42  ;;  %v2864_v11 = vpop.f32.mrf.mxu2  ;;  %3540 = vmatpush.msra.mxu1 %v4610_v29  ;;  %v4609_v42 = vld [vmem:[%s7744_s6 + $0x360] sm:$0xff] }
 0x444   :  { %3477 = vmatpush.msra.mxu0 %v4587_v41  ;;  %v4655_v41 = vld [vmem:[%s7744_s6 + $0x4c0] sm:$0xff] }
 0x445   :  { %v2699_v25 = vpop.f32.mrf.mxu0  ;;  %v2746_v6 = vpop.f32.mrf.mxu1  ;;  %3289 = vmatpush.msra.mxu2 %v3188_v16  ;;  %3541 = vmatpush.msra.mxu1 %v4609_v42  ;;  %v4608_v16 = vld [vmem:[%s7744_s6 + $0x358] sm:$0xff] }
 0x446   :  { %v7032_v31 = vadd.f32 %v2699_v25, %v2537_v49  ;;  %v7034_v54 = vadd.f32 %v2746_v6, %v2584_v33  ;;  %3478 = vmatpush.msra.mxu0 %v4586_v53  ;;  %v2911_v49 = vpop.f32.mrf.mxu3  ;;  %v4584_v33 = vld [vmem:[%s7744_s6 + $0x2a0] sm:$0xff] }
 0x447   :  { %3290 = vmatpush.msra.mxu2 %v3187_v38  ;;  %3542 = vmatpush.msra.mxu1 %v4608_v16  ;;  %v4657_v38 = vld [vmem:[%s7744_s6 + $0x4d0] sm:$0xff] }
 0x448   :  { %3479 = vmatpush.msra.mxu0 %v4585_v17  ;;  %v4604_v17 = vld [vmem:[%s7744_s6 + $0x338] sm:$0xff] }
 0x44a   :  { %3480 = vmatpush.msra.mxu0 %v4584_v33  ;;  %v7176_v33 = vperm.slane %v3141_v2, 0 }
 0x44b   :  { %v7145_v35 = vpop.f32.mrf.mxu2 }
 0x44c   :  { %3481 = vmatpush.msra.mxu0 %v4583_v30 }
 0x44d   :  { %v2702_v23 = vpop.f32.mrf.mxu0  ;;  %v2749_v3 = vpop.f32.mrf.mxu1 }
 0x44e   :  { %v7083_v47 = vadd.f32 %v2702_v23, %v2540_v57  ;;  %v7085_v63 = vadd.f32 %v2749_v3, %v2587_v44  ;;  %3482 = vmatpush.msra.mxu0 %v4582_v40  ;;  %v7137_v57 = vpop.f32.mrf.mxu3  ;;  %v4607_v44 = vld [vmem:[%s7744_s6 + $0x350] sm:$0xff]  ;;  %v2516_v23 = vadd.f32 %v6705_v21, %v6735_v8  ;;  %v2563_v3 = vadd.f32 %v6799_v43, %v6737_v61 }
 0x44f   :  { %3543 = vmatpush.msra.mxu1 %v4607_v44  ;;  %v2940_v8 = vadd.f32 %v2864_v11, %v2757_v58  ;;  %v2941_v61 = vadd.f32 %v2911_v49, %v2758_v4  ;;  %v4603_v49 = vld [vmem:[%s7744_s6 + $0x330] sm:$0xff]  ;;  %v4651_v58 = vld [vmem:[%s7744_s6 + $0x4a0] sm:$0xff] }
 0x450   :  { %v2755_v53 = vadd.f32 %v6852_v62, %v2516_v23  ;;  %v2756_v21 = vadd.f32 %v6854_v45, %v2563_v3  ;;  %v4552_v44 = vld [vmem:[%s7744_s6 + $0x1b0] sm:$0xff]  ;;  %v4551_v23 = vld [vmem:[%s7744_s6 + $0x1a8] sm:$0xff] }
 0x451   :  { %3544 = vmatpush.msra.mxu1 %v4606_v51  ;;  %v4555_v3 = vld [vmem:[%s7744_s6 + $0x1c8] sm:$0xff] }
 0x452   :  { %v2938_v11 = vadd.f32 %v7075_v15, %v2755_v53  ;;  %v2939_v30 = vadd.f32 %v7054_v46, %v2756_v21  ;;  %v4652_v15 = vld [vmem:[%s7744_s6 + $0x4a8] sm:$0xff]  ;;  %v4550_v53 = vld [vmem:[%s7744_s6 + $0x1a0] sm:$0xff] }
 0x453   :  { %3545 = vmatpush.msra.mxu1 %v4605_v20  ;;  %v7200_v16 = vpop.f32.mrf.mxu2  ;;  %v4662_v20 = vld [vmem:[%s7744_s6 + $0x4f8] sm:$0xff]  ;;  %v4554_v21 = vld [vmem:[%s7744_s6 + $0x1c0] sm:$0xff] }
 0x455   :  { %v2705_v25 = vpop.f32.mrf.mxu0  ;;  %v2752_v6 = vpop.f32.mrf.mxu1  ;;  %3546 = vmatpush.msra.mxu1 %v4604_v17 }
 0x456   :  { %v7108_v14 = vadd.f32 %v2705_v25, %v6846_v0  ;;  %v7110_v7 = vadd.f32 %v2752_v6, %v2590_v18  ;;  %v4581_v0 = vld [vmem:[%s7744_s6 + $0x288] sm:$0xff]  ;;  %v4654_v18 = vld [vmem:[%s7744_s6 + $0x4b8] sm:$0xff]  ;;  %v7178_v25 = vperm.slane %v3141_v2, 1  ;;  %v4653_v6 = vld [vmem:[%s7744_s6 + $0x4b0] sm:$0xff]  ;;  %v7186_v29 = vpop.f32.mrf.mxu3 }
 0x457   :  { %3483 = vmatpush.msra.mxu0 %v4581_v0  ;;  %3547 = vmatpush.msra.mxu1 %v4603_v49  ;;  %v2569_v0 = vadd.f32 %v6827_v32, %v6769_v55  ;;  %v4553_v55 = vld [vmem:[%s7744_s6 + $0x1b8] sm:$0xff]  ;;  %v4660_v49 = vld [vmem:[%s7744_s6 + $0x4e8] sm:$0xff] }
 0x458   :  { %v4557_v32 = vld [vmem:[%s7744_s6 + $0x1d8] sm:$0xff] }
 0x459   :  { %3484 = vmatpush.msra.mxu0 %v4580_v60  ;;  %v4602_v60 = vld [vmem:[%s7744_s6 + $0x328] sm:$0xff]  ;;  %v4650_v2 = vld [vmem:[%s7744_s6 + $0x498] sm:$0xff] }
 0x45a   :  { %3548 = vmatpush.msra.mxu1 %v4602_v60  ;;  %v4659_v60 = vld [vmem:[%s7744_s6 + $0x4e0] sm:$0xff] }
 0x45b   :  { %3664 = vmatpush.msrb.mxu0 %v4658_v36 }
 0x45d   :  { %v3044_v37 = vpop.f32.mrf.mxu0  ;;  %v3091_v56 = vpop.f32.mrf.mxu1  ;;  %3665 = vmatpush.msrb.mxu0 %v4657_v38  ;;  %v2760_v38 = vadd.f32 %v6896_v24, %v2569_v0  ;;  %v4647_v0 = vld [vmem:[%s7744_s6 + $0x480] sm:$0xff] }
 0x45e   :  { %v3121_v46 = vadd.f32 %v3044_v37, %v2938_v11  ;;  %v3122_v36 = vadd.f32 %v3091_v56, %v2939_v30  ;;  %v4556_v37 = vld [vmem:[%s7744_s6 + $0x1d0] sm:$0xff]  ;;  %v4601_v56 = vld [vmem:[%s7744_s6 + $0x320] sm:$0xff] }
 0x45f   :  { %3666 = vmatpush.msrb.mxu0 %v4656_v52  ;;  %3549 = vmatpush.msra.mxu1 %v4601_v56  ;;  %v4548_v11 = vld [vmem:[%s7744_s6 + $0x190] sm:$0xff]  ;;  %v4644_v56 = vld [vmem:[%s7744_s6 + $0x468] sm:$0xff] }
 0x460   :  { %v3147_v24 = vadd.f32 %v7176_v33, %v3121_v46  ;;  %v3148_v52 = vadd.f32 %v7178_v25, %v3122_v36  ;;  %v4573_v30 = vld [vmem:[%s7744_s6 + $0x250] sm:$0xff]  ;;  %v4547_v46 = vld [vmem:[%s7744_s6 + $0x188] sm:$0xff] }
 0x461   :  { %3667 = vmatpush.msrb.mxu0 %v4655_v41  ;;  %v2943_v41 = vadd.f32 %v7137_v57, %v2760_v38  ;;  %3696 = vmatpush.msrb.mxu1 %v4662_v20  ;;  %v4661_v57 = vld [vmem:[%s7744_s6 + $0x4f0] sm:$0xff]  ;;  %v4572_v36 = vld [vmem:[%s7744_s6 + $0x248] sm:$0xff]  ;;  %v4545_v38 = vld [vmem:[%s7744_s6 + $0x178] sm:$0xff] }
 0x463   :  { %3668 = vmatpush.msrb.mxu0 %v4654_v18  ;;  %v4549_v18 = vld [vmem:[%s7744_s6 + $0x198] sm:$0xff]  ;;  %3697 = vmatpush.msrb.mxu1 %v4661_v57  ;;  %v4542_v57 = vld [vmem:[%s7744_s6 + $0x160] sm:$0xff] }
 0x465   :  { %v3047_v43 = vpop.f32.mrf.mxu0  ;;  %v3094_v28 = vpop.f32.mrf.mxu1  ;;  %3669 = vmatpush.msrb.mxu0 %v4653_v6  ;;  %3698 = vmatpush.msrb.mxu1 %v4660_v49 }
 0x466   :  { %v3123_v62 = vadd.f32 %v3047_v43, %v2940_v8  ;;  %v3124_v45 = vadd.f32 %v3094_v28, %v2941_v61  ;;  %v4649_v8 = vld [vmem:[%s7744_s6 + $0x490] sm:$0xff]  ;;  %v7251_v61 = vpop.f32.mrf.mxu3  ;;  %v3167_v43 = vmax.f32 %v3147_v24, 0.0  ;;  %v3168_v28 = vmax.f32 %v3148_v52, 0.0  ;;  %v2873_v6 = vpop.f32.mrf.mxu2 }
 0x467   :  { %3670 = vmatpush.msrb.mxu0 %v4652_v15  ;;  %3699 = vmatpush.msrb.mxu1 %v4659_v60  ;;  %v4544_v24 = vld [vmem:[%s7744_s6 + $0x170] sm:$0xff] }
 0x468   :  { %v3149_v40 = vadd.f32 %v7176_v33, %v3123_v62  ;;  %v3150_v42 = vadd.f32 %v7178_v25, %v3124_v45  ;;  %v4574_v62 = vld [vmem:[%s7744_s6 + $0x258] sm:$0xff]  ;;  %v4648_v45 = vld [vmem:[%s7744_s6 + $0x488] sm:$0xff]  ;;  %v4569_v52 = vld [vmem:[%s7744_s6 + $0x230] sm:$0xff] }
 0x469   :  { %3671 = vmatpush.msrb.mxu0 %v4651_v58 }
 0x46a   :  { %v3169_v13 = vmax.f32 %v3149_v40, 0.0  ;;  %v3170_v50 = vmax.f32 %v3150_v42, 0.0 }
 0x46b   :  { %3672 = vmatpush.msrb.mxu0 %v4650_v2  ;;  %v4643_v2 = vld [vmem:[%s7744_s6 + $0x460] sm:$0xff] }
 0x46c   :  { %3248 = vmatmul.f32.vlgmr.msrb.gmra.mxu2 %v3169_v13  ;;  %4536 = vmatmul.msk.f32.vlgmr.msrb.gmra.mxu3 %vm3228_vm4, %v3170_v50  ;;  %v4646_v13 = vld [vmem:[%s7744_s6 + $0x478] sm:$0xff]  ;;  %v4546_v50 = vld [vmem:[%s7744_s6 + $0x180] sm:$0xff] }
 0x46d   :  { %3339 = vmatpush.msrb.mxu3 %v4553_v55  ;;  %v7222_v4 = vpop.f32.mrf.mxu0  ;;  %v3097_v51 = vpop.f32.mrf.mxu1  ;;  %3371 = vmatpush.msrb.mxu2 %v4557_v32  ;;  %v4571_v55 = vld [vmem:[%s7744_s6 + $0x240] sm:$0xff]  ;;  %v4645_v32 = vld [vmem:[%s7744_s6 + $0x470] sm:$0xff] }
 0x46e   :  { %v3126_v17 = vadd.f32 %v3097_v51, %v2943_v41  ;;  %3673 = vmatpush.msrb.mxu0 %v4649_v8  ;;  %v7310_v58 = vpop.f32.mrf.mxu3  ;;  %v2946_v51 = vadd.f32 %v2873_v6, %v6946_v10  ;;  %v4543_v10 = vld [vmem:[%s7744_s6 + $0x168] sm:$0xff] }
 0x46f   :  { %3340 = vmatpush.msrb.mxu3 %v4552_v44  ;;  %3372 = vmatpush.msrb.mxu2 %v4556_v37  ;;  %v4570_v37 = vld [vmem:[%s7744_s6 + $0x238] sm:$0xff]  ;;  %v4568_v41 = vld [vmem:[%s7744_s6 + $0x228] sm:$0xff] }
 0x470   :  { %v3152_v15 = vadd.f32 %v7178_v25, %v3126_v17  ;;  %3674 = vmatpush.msrb.mxu0 %v4648_v45  ;;  %v4565_v45 = vld [vmem:[%s7744_s6 + $0x210] sm:$0xff] }
 0x471   :  { %3341 = vmatpush.msrb.mxu3 %v4551_v23  ;;  %3373 = vmatpush.msrb.mxu2 %v4555_v3 }
 0x472   :  { %3675 = vmatpush.msrb.mxu0 %v4647_v0  ;;  %v3172_v44 = vmax.f32 %v3152_v15, 0.0  ;;  %v4538_v15 = vld [vmem:[%s7744_s6 + $0x140] sm:$0xff] }
 0x473   :  { %3342 = vmatpush.msrb.mxu3 %v4550_v53  ;;  %3374 = vmatpush.msrb.mxu2 %v4554_v21  ;;  %v2876_v53 = vpop.f32.mrf.mxu2  ;;  %v2942_v21 = vadd.f32 %v7145_v35, %v6901_v1  ;;  %v4541_v1 = vld [vmem:[%s7744_s6 + $0x158] sm:$0xff] }
 0x474   :  { %3291 = vmatmul.f32.vlgmr.msra.gmra.mxu2 %v3167_v43  ;;  %4537 = vmatmul.msk.f32.vlgmr.msra.gmra.mxu3 %vm3228_vm4, %v3168_v28  ;;  %v4567_v43 = vld [vmem:[%s7744_s6 + $0x220] sm:$0xff]  ;;  %v4566_v35 = vld [vmem:[%s7744_s6 + $0x218] sm:$0xff] }
 0x475   :  { %3343 = vmatpush.msrb.mxu3 %v4549_v18  ;;  %3404 = vmatpush.msra.mxu2 %v4574_v62  ;;  %v7272_v40 = vpop.f32.mrf.mxu0  ;;  %v7274_v42 = vpop.f32.mrf.mxu1  ;;  %v3125_v28 = vadd.f32 %v7222_v4, %v2942_v21  ;;  %v2572_v18 = vadd.f32 %v6844_v22, %v6779_v48  ;;  %v2948_v62 = vadd.f32 %v2876_v53, %v6963_v27  ;;  %v4540_v4 = vld [vmem:[%s7744_s6 + $0x150] sm:$0xff]  ;;  %v4539_v27 = vld [vmem:[%s7744_s6 + $0x148] sm:$0xff]  ;;  %v4599_v21 = vld [vmem:[%s7744_s6 + $0x318] sm:$0xff] }
 0x476   :  { %3676 = vmatpush.msrb.mxu0 %v4646_v13  ;;  %v2926_v0 = vpop.f32.mrf.mxu3 }
 0x477   :  { %3344 = vmatpush.msrb.mxu3 %v4548_v11  ;;  %3405 = vmatpush.msra.mxu2 %v4573_v30  ;;  %v2762_v49 = vadd.f32 %v6918_v26, %v2572_v18  ;;  %v3151_v48 = vadd.f32 %v7176_v33, %v3125_v28  ;;  %v4564_v30 = vld [vmem:[%s7744_s6 + $0x208] sm:$0xff]  ;;  %v2944_v26 = vadd.f32 %v7200_v16, %v6923_v12  ;;  %v4578_v16 = vld [vmem:[%s7744_s6 + $0x278] sm:$0xff] }
 0x478   :  { %3677 = vmatpush.msrb.mxu0 %v4645_v32  ;;  %v4562_v32 = vld [vmem:[%s7744_s6 + $0x1f8] sm:$0xff]  ;;  %v2951_v53 = vadd.f32 %v2926_v0, %v6992_v5  ;;  %v4598_v5 = vld [vmem:[%s7744_s6 + $0x310] sm:$0xff] }
 0x479   :  { %3345 = vmatpush.msrb.mxu3 %v4547_v46  ;;  %3406 = vmatpush.msra.mxu2 %v4572_v36  ;;  %v4563_v46 = vld [vmem:[%s7744_s6 + $0x200] sm:$0xff]  ;;  %v2945_v13 = vadd.f32 %v7186_v29, %v2762_v49  ;;  %v4683_v29 = vld [vmem:[%s7744_s6 + $0x598] sm:$0xff] }
 0x47a   :  { %3678 = vmatpush.msrb.mxu0 %v4644_v56  ;;  %v4682_v56 = vld [vmem:[%s7744_s6 + $0x590] sm:$0xff]  ;;  %v4620_v0 = vld [vmem:[%s7744_s6 + $0x3b8] sm:$0xff] }
 0x47b   :  { %3346 = vmatpush.msrb.mxu3 %v4546_v50  ;;  %3407 = vmatpush.msra.mxu2 %v4571_v55  ;;  %v7375_v36 = vpop.f32.mrf.mxu2  ;;  %v3171_v50 = vmax.f32 %v3151_v48, 0.0  ;;  %v3127_v55 = vadd.f32 %v7272_v40, %v2944_v26  ;;  %v4577_v40 = vld [vmem:[%s7744_s6 + $0x270] sm:$0xff]  ;;  %v4638_v26 = vld [vmem:[%s7744_s6 + $0x440] sm:$0xff] }
 0x47c   :  { %4558 = vmatmul.msk.f32.vlgmr.msrb.gmra.mxu2 %vm3228_vm4, %v3172_v44  ;;  %3679 = vmatpush.msrb.mxu0 %v4643_v2  ;;  %v2575_v44 = vadd.f32 %v6862_v39, %v6787_v59  ;;  %v4575_v2 = vld [vmem:[%s7744_s6 + $0x260] sm:$0xff] }
 0x47d   :  { %3347 = vmatpush.msrb.mxu3 %v4545_v38  ;;  %3408 = vmatpush.msra.mxu2 %v4570_v37  ;;  %v3056_v23 = vpop.f32.mrf.mxu0  ;;  %v7320_v3 = vpop.f32.mrf.mxu1  ;;  %v3128_v38 = vadd.f32 %v7274_v42, %v2945_v13  ;;  %v4561_v37 = vld [vmem:[%s7744_s6 + $0x1f0] sm:$0xff] }
 0x47e   :  { %v3129_v20 = vadd.f32 %v3056_v23, %v2946_v51  ;;  %v2764_v59 = vadd.f32 %v6941_v34, %v2575_v44  ;;  %v3153_v51 = vadd.f32 %v7176_v33, %v3127_v55  ;;  %v4681_v23 = vld [vmem:[%s7744_s6 + $0x588] sm:$0xff] }
 0x47f   :  { %3348 = vmatpush.msrb.mxu3 %v4544_v24  ;;  %3409 = vmatpush.msra.mxu2 %v4569_v52  ;;  %v4576_v24 = vld [vmem:[%s7744_s6 + $0x268] sm:$0xff]  ;;  %v3154_v34 = vadd.f32 %v7178_v25, %v3128_v38 }
 0x480   :  { %v3155_v8 = vadd.f32 %v7176_v33, %v3129_v20  ;;  %v4560_v52 = vld [vmem:[%s7744_s6 + $0x1e8] sm:$0xff]  ;;  %v4559_v20 = vld [vmem:[%s7744_s6 + $0x1e0] sm:$0xff] }
 0x481   :  { %3349 = vmatpush.msrb.mxu3 %v4543_v10  ;;  %3410 = vmatpush.msra.mxu2 %v4568_v41  ;;  %v2929_v10 = vpop.f32.mrf.mxu3  ;;  %v2947_v41 = vadd.f32 %v7251_v61, %v2764_v59  ;;  %v3174_v28 = vmax.f32 %v3154_v34, 0.0  ;;  %v4680_v61 = vld [vmem:[%s7744_s6 + $0x580] sm:$0xff]  ;;  %v4675_v34 = vld [vmem:[%s7744_s6 + $0x558] sm:$0xff] }
 0x482   :  { %v3175_v17 = vmax.f32 %v3155_v8, 0.0  ;;  %v3173_v8 = vmax.f32 %v3153_v51, 0.0  ;;  %v2953_v18 = vadd.f32 %v2929_v10, %v7034_v54  ;;  %v4676_v51 = vld [vmem:[%s7744_s6 + $0x560] sm:$0xff]  ;;  %v4635_v10 = vld [vmem:[%s7744_s6 + $0x428] sm:$0xff] }
 0x483   :  { %3350 = vmatpush.msrb.mxu3 %v4542_v57  ;;  %3411 = vmatpush.msra.mxu2 %v4567_v43  ;;  %v4641_v57 = vld [vmem:[%s7744_s6 + $0x458] sm:$0xff]  ;;  %v2882_v43 = vpop.f32.mrf.mxu2 }
 0x484   :  { %3485 = vmatmul.f32.vlgmr.msra.gmra.mxu0 %v3175_v17  ;;  %v3130_v17 = vadd.f32 %v7320_v3, %v2947_v41  ;;  %v4640_v3 = vld [vmem:[%s7744_s6 + $0x450] sm:$0xff] }
 0x485   :  { %3351 = vmatpush.msrb.mxu3 %v4541_v1  ;;  %3412 = vmatpush.msra.mxu2 %v4566_v35  ;;  %v3059_v6 = vpop.f32.mrf.mxu0  ;;  %v7357_v11 = vpop.f32.mrf.mxu1  ;;  %v2952_v35 = vadd.f32 %v2882_v43, %v7032_v31  ;;  %v4639_v31 = vld [vmem:[%s7744_s6 + $0x448] sm:$0xff]  ;;  %v4674_v41 = vld [vmem:[%s7744_s6 + $0x550] sm:$0xff]  ;;  %v4633_v43 = vld [vmem:[%s7744_s6 + $0x418] sm:$0xff] }
 0x486   :  { %v3131_v22 = vadd.f32 %v3059_v6, %v2948_v62  ;;  %v3156_v54 = vadd.f32 %v7178_v25, %v3130_v17 }
 0x487   :  { %3352 = vmatpush.msrb.mxu3 %v4540_v4  ;;  %3413 = vmatpush.msra.mxu2 %v4565_v45  ;;  %v4597_v45 = vld [vmem:[%s7744_s6 + $0x308] sm:$0xff] }
 0x488   :  { %v3157_v60 = vadd.f32 %v7176_v33, %v3131_v22  ;;  %v4596_v22 = vld [vmem:[%s7744_s6 + $0x300] sm:$0xff]  ;;  %v3176_v55 = vmax.f32 %v3156_v54, 0.0 }
 0x489   :  { %3353 = vmatpush.msrb.mxu3 %v4539_v27  ;;  %3414 = vmatpush.msra.mxu2 %v4564_v30 }
 0x48a   :  { %v3177_v12 = vmax.f32 %v3157_v60, 0.0  ;;  %v4679_v60 = vld [vmem:[%s7744_s6 + $0x578] sm:$0xff] }
 0x48b   :  { %3354 = vmatpush.msrb.mxu3 %v4538_v15  ;;  %3415 = vmatpush.msra.mxu2 %v4563_v46  ;;  %v2949_v15 = vadd.f32 %v7310_v58, %v6965_v9  ;;  %v4678_v9 = vld [vmem:[%s7744_s6 + $0x570] sm:$0xff]  ;;  %v4700_v58 = vld [vmem:[%s7744_s6 + $0x618] sm:$0xff] }
 0x48c   :  { %3355 = vmatmul.f32.vlgmr.msrb.gmra.mxu3 %v3171_v50  ;;  %3550 = vmatmul.f32.vlgmr.msra.gmra.mxu1 %v3177_v12  ;;  %v2932_v50 = vpop.f32.mrf.mxu3 }
 0x48d   :  { %3436 = vmatpush.msra.mxu3 %v4578_v16  ;;  %3416 = vmatpush.msra.mxu2 %v4562_v32  ;;  %v7398_v39 = vpop.f32.mrf.mxu0  ;;  %v3109_v42 = vpop.f32.mrf.mxu1  ;;  %v4619_v16 = vld [vmem:[%s7744_s6 + $0x3b0] sm:$0xff]  ;;  %v3132_v32 = vadd.f32 %v7357_v11, %v2949_v15  ;;  %v2955_v44 = vadd.f32 %v2932_v50, %v7085_v63  ;;  %v4618_v11 = vld [vmem:[%s7744_s6 + $0x3a8] sm:$0xff]  ;;  %v4689_v15 = vld [vmem:[%s7744_s6 + $0x5c0] sm:$0xff] }
 0x48e   :  { %3761 = vmatpush.msra.mxu1 %v4683_v29  ;;  %v3134_v1 = vadd.f32 %v3109_v42, %v2951_v53  ;;  %v4699_v63 = vld [vmem:[%s7744_s6 + $0x610] sm:$0xff]  ;;  %v4696_v53 = vld [vmem:[%s7744_s6 + $0x5f8] sm:$0xff] }
 0x48f   :  { %3437 = vmatpush.msra.mxu3 %v4577_v40  ;;  %3417 = vmatpush.msra.mxu2 %v4561_v37  ;;  %v4677_v40 = vld [vmem:[%s7744_s6 + $0x568] sm:$0xff]  ;;  %v4617_v37 = vld [vmem:[%s7744_s6 + $0x3a0] sm:$0xff]  ;;  %v3158_v59 = vadd.f32 %v7178_v25, %v3132_v32 }
 0x490   :  { %3762 = vmatpush.msra.mxu1 %v4682_v56  ;;  %v3160_v48 = vadd.f32 %v7178_v25, %v3134_v1  ;;  %v4637_v56 = vld [vmem:[%s7744_s6 + $0x438] sm:$0xff]  ;;  %v4672_v1 = vld [vmem:[%s7744_s6 + $0x540] sm:$0xff]  ;;  %v4665_v32 = vld [vmem:[%s7744_s6 + $0x508] sm:$0xff] }
 0x491   :  { %3438 = vmatpush.msra.mxu3 %v4576_v24  ;;  %3418 = vmatpush.msra.mxu2 %v4560_v52  ;;  %v4698_v24 = vld [vmem:[%s7744_s6 + $0x608] sm:$0xff]  ;;  %v4636_v52 = vld [vmem:[%s7744_s6 + $0x430] sm:$0xff] }
 0x492   :  { %3763 = vmatpush.msra.mxu1 %v4681_v23  ;;  %v3180_v12 = vmax.f32 %v3160_v48, 0.0  ;;  %v4697_v23 = vld [vmem:[%s7744_s6 + $0x600] sm:$0xff] }
 0x493   :  { %3439 = vmatpush.msra.mxu3 %v4575_v2  ;;  %3419 = vmatpush.msra.mxu2 %v4559_v20  ;;  %v3178_v2 = vmax.f32 %v3158_v59, 0.0  ;;  %v4668_v48 = vld [vmem:[%s7744_s6 + $0x520] sm:$0xff] }
 0x494   :  { %3420 = vmatmul.f32.vlgmr.msra.gmra.mxu2 %v3173_v8  ;;  %4579 = vmatmul.msk.f32.vlgmr.msra.gmra.mxu3 %vm3228_vm4, %v3174_v28  ;;  %v4673_v8 = vld [vmem:[%s7744_s6 + $0x548] sm:$0xff]  ;;  %v2885_v28 = vpop.f32.mrf.mxu2 }
 0x495   :  { %3501 = vmatpush.msrb.mxu3 %v4599_v21  ;;  %3631 = vmatpush.msrb.mxu2 %v4641_v57  ;;  %v3065_v62 = vpop.f32.mrf.mxu0  ;;  %v3112_v4 = vpop.f32.mrf.mxu1  ;;  %v4634_v21 = vld [vmem:[%s7744_s6 + $0x420] sm:$0xff]  ;;  %v4695_v57 = vld [vmem:[%s7744_s6 + $0x5f0] sm:$0xff]  ;;  %v2954_v54 = vadd.f32 %v2885_v28, %v7083_v47  ;;  %v4667_v47 = vld [vmem:[%s7744_s6 + $0x518] sm:$0xff] }
 0x496   :  { %v3135_v49 = vadd.f32 %v3065_v62, %v2952_v35  ;;  %v3136_v6 = vadd.f32 %v3112_v4, %v2953_v18  ;;  %3764 = vmatpush.msra.mxu1 %v4680_v61  ;;  %v4632_v61 = vld [vmem:[%s7744_s6 + $0x410] sm:$0xff]  ;;  %v4671_v35 = vld [vmem:[%s7744_s6 + $0x538] sm:$0xff]  ;;  %v4693_v18 = vld [vmem:[%s7744_s6 + $0x5e0] sm:$0xff] }
 0x497   :  { %3502 = vmatpush.msrb.mxu3 %v4598_v5  ;;  %3632 = vmatpush.msrb.mxu2 %v4640_v3  ;;  %v4694_v5 = vld [vmem:[%s7744_s6 + $0x5e8] sm:$0xff]  ;;  %v4670_v62 = vld [vmem:[%s7744_s6 + $0x530] sm:$0xff]  ;;  %v4692_v4 = vld [vmem:[%s7744_s6 + $0x5d8] sm:$0xff] }
 0x498   :  { %v3161_v27 = vadd.f32 %v7176_v33, %v3135_v49  ;;  %v3162_v30 = vadd.f32 %v7178_v25, %v3136_v6  ;;  %v4631_v3 = vld [vmem:[%s7744_s6 + $0x408] sm:$0xff]  ;;  %v4691_v6 = vld [vmem:[%s7744_s6 + $0x5d0] sm:$0xff] }
 0x499   :  { %3503 = vmatpush.msrb.mxu3 %v4597_v45  ;;  %3633 = vmatpush.msrb.mxu2 %v4639_v31  ;;  %v4630_v45 = vld [vmem:[%s7744_s6 + $0x400] sm:$0xff]  ;;  %v4669_v49 = vld [vmem:[%s7744_s6 + $0x528] sm:$0xff]  ;;  %v4629_v31 = vld [vmem:[%s7744_s6 + $0x3f8] sm:$0xff] }
 0x49a   :  { %v3181_v46 = vmax.f32 %v3161_v27, 0.0  ;;  %v3182_v13 = vmax.f32 %v3162_v30, 0.0  ;;  %v4628_v27 = vld [vmem:[%s7744_s6 + $0x3f0] sm:$0xff] }
 0x49b   :  { %3504 = vmatpush.msrb.mxu3 %v4596_v22  ;;  %3634 = vmatpush.msrb.mxu2 %v4638_v26  ;;  %v4690_v22 = vld [vmem:[%s7744_s6 + $0x5c8] sm:$0xff]  ;;  %v3851_v28 = vld [vmem:[%s7748_s8 + $0x50] sm:$0xff] }
 0x49c   :  { %3680 = vmatmul.f32.vlgmr.msrb.gmra.mxu0 %v3181_v46  ;;  %4600 = vmatmul.msk.f32.vlgmr.msrb.gmra.mxu3 %vm3228_vm4, %v3176_v55  ;;  %v2888_v30 = vpop.f32.mrf.mxu2  ;;  %v4627_v46 = vld [vmem:[%s7744_s6 + $0x3e8] sm:$0xff]  ;;  %v4626_v55 = vld [vmem:[%s7744_s6 + $0x3e0] sm:$0xff] }
 0x49d   :  { %3566 = vmatpush.msra.mxu3 %v4620_v0  ;;  %3729 = vmatpush.msra.mxu2 %v4679_v60  ;;  %v3115_v38 = vpop.f32.mrf.mxu1  ;;  %v3068_v17 = vpop.f32.mrf.mxu0  ;;  %v2956_v60 = vadd.f32 %v2888_v30, %v7108_v14  ;;  %v4688_v14 = vld [vmem:[%s7744_s6 + $0x5b8] sm:$0xff] }
 0x49e   :  { %4642 = vmatmul.msk.f32.vlgmr.msrb.gmra.mxu2 %vm3228_vm4, %v3180_v12  ;;  %4663 = vmatmul.msk.f32.vlgmr.msrb.gmra.mxu1 %vm3228_vm4, %v3182_v13  ;;  %v3138_v29 = vadd.f32 %v3115_v38, %v2955_v44  ;;  %v3137_v0 = vadd.f32 %v3068_v17, %v2954_v54  ;;  %v4666_v13 = vld [vmem:[%s7744_s6 + $0x510] sm:$0xff]  ;;  %v2950_v12 = vadd.f32 %v7375_v36, %v6990_v19  ;;  %v4664_v19 = vld [vmem:[%s7744_s6 + $0x500] sm:$0xff]  ;;  %v4686_v38 = vld [vmem:[%s7744_s6 + $0x5a8] sm:$0xff] }
 0x49f   :  { %3567 = vmatpush.msra.mxu3 %v4619_v16  ;;  %3730 = vmatpush.msra.mxu2 %v4678_v9  ;;  %v4687_v9 = vld [vmem:[%s7744_s6 + $0x5b0] sm:$0xff]  ;;  %v3850_v17 = vld [vmem:[%s7748_s8 + $0x48] sm:$0xff] }
 0x4a0   :  { %3794 = vmatpush.msrb.mxu1 %v4700_v58  ;;  %v3164_v42 = vadd.f32 %v7178_v25, %v3138_v29  ;;  %v3163_v16 = vadd.f32 %v7176_v33, %v3137_v0  ;;  %v4625_v58 = vld [vmem:[%s7744_s6 + $0x3d8] sm:$0xff]  ;;  %v3133_v44 = vadd.f32 %v7398_v39, %v2950_v12  ;;  %v4624_v39 = vld [vmem:[%s7744_s6 + $0x3d0] sm:$0xff]  ;;  %v4685_v29 = vld [vmem:[%s7744_s6 + $0x5a0] sm:$0xff] }
 0x4a1   :  { %3568 = vmatpush.msra.mxu3 %v4618_v11  ;;  %3731 = vmatpush.msra.mxu2 %v4677_v40  ;;  %v3842_v54 = vld [vmem:[%s7748_s8 + $0x8] sm:$0xff] }
 0x4a2   :  { %3795 = vmatpush.msrb.mxu1 %v4699_v63  ;;  %v3184_v20 = vmax.f32 %v3164_v42, 0.0  ;;  %v3183_v11 = vmax.f32 %v3163_v16, 0.0  ;;  %v3159_v40 = vadd.f32 %v7176_v33, %v3133_v44  ;;  %v4623_v63 = vld [vmem:[%s7744_s6 + $0x3c8] sm:$0xff] }
 0x4a3   :  { %3569 = vmatpush.msra.mxu3 %v4617_v37  ;;  %3732 = vmatpush.msra.mxu2 %v4676_v51  ;;  %v2935_v37 = vpop.f32.mrf.mxu3  ;;  %v4622_v51 = vld [vmem:[%s7744_s6 + $0x3c0] sm:$0xff]  ;;  %v3890_v16 = vld [vmem:[%s7749_s10 + $0x28] sm:$0xff] }
 0x4a4   :  { %3796 = vmatpush.msrb.mxu1 %v4698_v24  ;;  %4621 = vmatmul.msk.f32.vlgmr.msra.gmra.mxu3 %vm3228_vm4, %v3178_v2  ;;  %v4701_v2 = vld [vmem:[%s7744_s6 + $0x620] sm:$0xff] }
 0x4a5   :  { %3599 = vmatpush.msrb.mxu3 %v4637_v56  ;;  %3733 = vmatpush.msra.mxu2 %v4675_v34  ;;  %v3071_v26 = vpop.f32.mrf.mxu0  ;;  %v3118_v42 = vpop.f32.mrf.mxu1  ;;  %v2957_v56 = vadd.f32 %v2935_v37, %v7110_v7  ;;  %v4703_v34 = vld [vmem:[%s7744_s6 + $0x630] sm:$0xff] }
 0x4a6   :  { %3797 = vmatpush.msrb.mxu1 %v4697_v23  ;;  %v3139_v50 = vadd.f32 %v3071_v26, %v2956_v60  ;;  %v4702_v23 = vld [vmem:[%s7744_s6 + $0x628] sm:$0xff]  ;;  %v3893_v26 = vld [vmem:[%s7749_s10 + $0x40] sm:$0xff]  ;;  %v3892_v60 = vld [vmem:[%s7749_s10 + $0x38] sm:$0xff] }
 0x4a7   :  { %3600 = vmatpush.msrb.mxu3 %v4636_v52  ;;  %3734 = vmatpush.msra.mxu2 %v4674_v41  ;;  %v3140_v24 = vadd.f32 %v3118_v42, %v2957_v56  ;;  %v4704_v52 = vld [vmem:[%s7744_s6 + $0x638] sm:$0xff] }
 0x4a8   :  { %4684 = vmatmul.msk.f32.vlgmr.msra.gmra.mxu1 %vm3228_vm4, %v3184_v20  ;;  %v3165_v36 = vadd.f32 %v7176_v33, %v3139_v50  ;;  %v3179_v33 = vmax.f32 %v3159_v40, 0.0  ;;  %v3891_v50 = vld [vmem:[%s7749_s10 + $0x30] sm:$0xff] }
 0x4a9   :  { %3601 = vmatpush.msrb.mxu3 %v4635_v10  ;;  %3798 = vmatpush.msrb.mxu1 %v4696_v53  ;;  %v3166_v7 = vadd.f32 %v7178_v25, %v3140_v24  ;;  %v3855_v10 = vld [vmem:[%s7748_s8 + $0x70] sm:$0xff] }
 0x4aa   :  { %3735 = vmatpush.msra.mxu2 %v4673_v8  ;;  %v3185_v59 = vmax.f32 %v3165_v36, 0.0  ;;  %v3853_v8 = vld [vmem:[%s7748_s8 + $0x60] sm:$0xff] }
 0x4ab   :  { %3602 = vmatpush.msrb.mxu3 %v4634_v21  ;;  %3799 = vmatpush.msrb.mxu1 %v4695_v57  ;;  %v3186_v20 = vmax.f32 %v3166_v7, 0.0  ;;  %v3854_v21 = vld [vmem:[%s7748_s8 + $0x68] sm:$0xff] }
 0x4ac   :  { %3736 = vmatpush.msra.mxu2 %v4672_v1 }
 0x4ad   :  { %3603 = vmatpush.msrb.mxu3 %v4633_v43  ;;  %3800 = vmatpush.msrb.mxu1 %v4694_v5  ;;  %v3852_v43 = vld [vmem:[%s7748_s8 + $0x58] sm:$0xff]  ;;  %v3849_v5 = vld [vmem:[%s7748_s8 + $0x40] sm:$0xff] }
 0x4ae   :  { %3737 = vmatpush.msra.mxu2 %v4671_v35 }
 0x4af   :  { %3604 = vmatpush.msrb.mxu3 %v4632_v61  ;;  %3801 = vmatpush.msrb.mxu1 %v4693_v18  ;;  %v3848_v61 = vld [vmem:[%s7748_s8 + $0x38] sm:$0xff]  ;;  %v3847_v18 = vld [vmem:[%s7748_s8 + $0x30] sm:$0xff] }
 0x4b0   :  { %3738 = vmatpush.msra.mxu2 %v4670_v62  ;;  %v3845_v62 = vld [vmem:[%s7748_s8 + $0x20] sm:$0xff] }
 0x4b1   :  { %3605 = vmatpush.msrb.mxu3 %v4631_v3  ;;  %3802 = vmatpush.msrb.mxu1 %v4692_v4  ;;  %v3846_v3 = vld [vmem:[%s7748_s8 + $0x28] sm:$0xff] }
 0x4b2   :  { %3739 = vmatpush.msra.mxu2 %v4669_v49  ;;  %v3843_v49 = vld [vmem:[%s7748_s8 + $0x10] sm:$0xff] }
 0x4b3   :  { %3606 = vmatpush.msrb.mxu3 %v4630_v45  ;;  %3803 = vmatpush.msrb.mxu1 %v4691_v6  ;;  %v3844_v45 = vld [vmem:[%s7748_s8 + $0x18] sm:$0xff] }
 0x4b4   :  { %3740 = vmatpush.msra.mxu2 %v4668_v48  ;;  %v3841_v48 = vld [vmem:[%s7748_s8] sm:$0xff] }
 0x4b5   :  { %3607 = vmatpush.msrb.mxu3 %v4629_v31  ;;  %3804 = vmatpush.msrb.mxu1 %v4690_v22  ;;  %v3895_v22 = vld [vmem:[%s7749_s10 + $0x50] sm:$0xf] }
 0x4b6   :  { %3741 = vmatpush.msra.mxu2 %v4667_v47  ;;  %4707 = vmatpush.msk.msra.mxu0 %vm259_vm0, %v3895_v22 }
 0x4b7   :  { %3608 = vmatpush.msrb.mxu3 %v4628_v27  ;;  %3805 = vmatpush.msrb.mxu1 %v4689_v15  ;;  %v3894_v27 = vld [vmem:[%s7749_s10 + $0x48] sm:$0xff] }
 0x4b8   :  { %3742 = vmatpush.msra.mxu2 %v4666_v13  ;;  %3912 = vmatpush.msra.mxu0 %v3894_v27 }
 0x4b9   :  { %3609 = vmatpush.msrb.mxu3 %v4627_v46  ;;  %3806 = vmatpush.msrb.mxu1 %v4688_v14 }
 0x4ba   :  { %3743 = vmatpush.msra.mxu2 %v4665_v32  ;;  %3913 = vmatpush.msra.mxu0 %v3893_v26 }
 0x4bb   :  { %3610 = vmatpush.msrb.mxu3 %v4626_v55  ;;  %3807 = vmatpush.msrb.mxu1 %v4687_v9 }
 0x4bc   :  { %3744 = vmatpush.msra.mxu2 %v4664_v19  ;;  %3914 = vmatpush.msra.mxu0 %v3892_v60 }
 0x4bd   :  { %3611 = vmatpush.msrb.mxu3 %v4625_v58  ;;  %3808 = vmatpush.msrb.mxu1 %v4686_v38  ;;  %v3889_v58 = vld [vmem:[%s7749_s10 + $0x20] sm:$0xff]  ;;  %v3888_v38 = vld [vmem:[%s7749_s10 + $0x18] sm:$0xff] }
 0x4be   :  { %3745 = vmatmul.f32.vlgmr.msra.gmra.mxu2 %v3183_v11  ;;  %3915 = vmatpush.msra.mxu0 %v3891_v50 }
 0x4bf   :  { %3612 = vmatpush.msrb.mxu3 %v4624_v39  ;;  %3809 = vmatpush.msrb.mxu1 %v4685_v29 }
 0x4c0   :  { %3810 = vmatmul.f32.vlgmr.msrb.gmra.mxu1 %v3185_v59  ;;  %3916 = vmatpush.msra.mxu0 %v3890_v16 }
 0x4c1   :  { %3613 = vmatpush.msrb.mxu3 %v4623_v63 }
 0x4c2   :  { %3917 = vmatpush.msra.mxu0 %v3889_v58 }
 0x4c3   :  { %3614 = vmatpush.msrb.mxu3 %v4622_v51 }
 0x4c4   :  { %3615 = vmatmul.f32.vlgmr.msrb.gmra.mxu3 %v3179_v33  ;;  %3918 = vmatpush.msra.mxu0 %v3888_v38 }
 0x4c5   :  { %3826 = vmatpush.msra.mxu3 %v4704_v52 }
 0x4c7   :  { %3827 = vmatpush.msra.mxu3 %v4703_v34 }
 0x4c9   :  { %3828 = vmatpush.msra.mxu3 %v4702_v23  ;;  %v4710_v23 = vld [vmem:[%s7746_s7] ss:$0 sm:$0xff] }
 0x4cb   :  { %3829 = vmatpush.msra.mxu3 %v4701_v2 }
 0x4cc   :  { %4705 = vmatmul.msk.f32.vlgmr.msra.gmra.mxu3 %vm3228_vm4, %v3186_v20 }
 0x4cd   :  { %3865 = vmatpush.msrb.mxu3 %v3855_v10 }
 0x4cf   :  { %3866 = vmatpush.msrb.mxu3 %v3854_v21  ;;  %v4711_v21 = vld [vmem:[%s7747_s9] ss:$0 sm:$0xff] }
 0x4d1   :  { %3867 = vmatpush.msrb.mxu3 %v3853_v8 }
 0x4d3   :  { %3868 = vmatpush.msrb.mxu3 %v3852_v43 }
 0x4d5   :  { %3869 = vmatpush.msrb.mxu3 %v3851_v28  ;;  %v4712_v28 = vld [vmem:[%s7750_s11] ss:$0 sm:$0xff] }
 0x4d7   :  { %3870 = vmatpush.msrb.mxu3 %v3850_v17 }
 0x4d9   :  { %3871 = vmatpush.msrb.mxu3 %v3849_v5 }
 0x4db   :  { %3872 = vmatpush.msrb.mxu3 %v3848_v61 }
 0x4dd   :  { %3873 = vmatpush.msrb.mxu3 %v3847_v18 }
 0x4df   :  { %3874 = vmatpush.msrb.mxu3 %v3846_v3 }
 0x4e1   :  { %3875 = vmatpush.msrb.mxu3 %v3845_v62 }
 0x4e3   :  { %3876 = vmatpush.msrb.mxu3 %v3844_v45 }
 0x4e5   :  { %3877 = vmatpush.msrb.mxu3 %v3843_v49 }
 0x4e7   :  { %3878 = vmatpush.msrb.mxu3 %v3842_v54 }
 0x4e9   :  { %3879 = vmatpush.msrb.mxu3 %v3841_v48 }
 0x4ef   :  { %v3269_v25 = vpop.f32.mrf.mxu3  ;;  %v3249_v53 = vpop.f32.mrf.mxu2 }
 0x4f0   :  { %v3270_v0 = vadd.f32 %v3269_v25, %v3249_v53  ;;  %v3887_v25 = vld [vmem:[%s7749_s10 + $0x10] sm:$0xff]  ;;  %v3885_v53 = vld [vmem:[%s7749_s10] sm:$0xff] }
 0x4f1   :  { %3919 = vmatpush.msra.mxu0 %v3887_v25 }
 0x4f7   :  { %v3312_v41 = vpop.f32.mrf.mxu3  ;;  %v3292_v1 = vpop.f32.mrf.mxu2 }
 0x4f8   :  { %v3293_v47 = vadd.f32 %v3292_v1, %v3270_v0 }
 0x4fa   :  { %v3313_v55 = vadd.f32 %v3312_v41, %v3293_v47  ;;  %v3886_v41 = vld [vmem:[%s7749_s10 + $0x8] sm:$0xff] }
 0x4fb   :  { %3920 = vmatpush.msra.mxu0 %v3886_v41 }
 0x4fd   :  { %3921 = vmatpush.msra.mxu0 %v3885_v53 }
 0x4ff   :  { %v3376_v4 = vpop.f32.mrf.mxu2 }
 0x501   :  { %v3486_v46 = vpop.f32.mrf.mxu0 }
 0x509   :  { %v3551_v6 = vpop.f32.mrf.mxu1 }
 0x50f   :  { %v3356_v57 = vpop.f32.mrf.mxu3 }
 0x510   :  { %v3377_v13 = vadd.f32 %v3376_v4, %v3356_v57 }
 0x512   :  { %v3379_v32 = vadd.f32 %v3377_v13, %v3313_v55 }
 0x517   :  { %v3441_v35 = vpop.f32.mrf.mxu3  ;;  %v3421_v30 = vpop.f32.mrf.mxu2 }
 0x518   :  { %v3442_v12 = vadd.f32 %v3441_v35, %v3421_v30 }
 0x519   :  { %v3681_v11 = vpop.f32.mrf.mxu0 }
 0x51a   :  { %v3444_v19 = vadd.f32 %v3442_v12, %v3379_v32 }
 0x51b   :  { %v3701_v15 = vpop.f32.mrf.mxu1 }
 0x51c   :  { %v3702_v59 = vadd.f32 %v3701_v15, %v3681_v11 }
 0x51f   :  { %v3506_v31 = vpop.f32.mrf.mxu3 }
 0x520   :  { %v3507_v9 = vadd.f32 %v3506_v31, %v3486_v46 }
 0x521   :  { %v3636_v44 = vpop.f32.mrf.mxu2 }
 0x522   :  { %v3509_v39 = vadd.f32 %v3507_v9, %v3444_v19 }
 0x525   :  { %v3766_v29 = vpop.f32.mrf.mxu1 }
 0x527   :  { %v3571_v14 = vpop.f32.mrf.mxu3 }
 0x528   :  { %v3572_v36 = vadd.f32 %v3571_v14, %v3551_v6 }
 0x52a   :  { %v3574_v63 = vadd.f32 %v3572_v36, %v3509_v39 }
 0x53d   :  { %v3811_v24 = vpop.f32.mrf.mxu1 }
 0x541   :  { %v3746_v56 = vpop.f32.mrf.mxu2 }
 0x542   :  { %v3767_v33 = vadd.f32 %v3766_v29, %v3746_v56 }
 0x547   :  { %v3616_v40 = vpop.f32.mrf.mxu3 }
 0x548   :  { %v3637_v37 = vadd.f32 %v3636_v44, %v3616_v40 }
 0x54a   :  { %v3639_v42 = vadd.f32 %v3637_v37, %v3574_v63 }
 0x54c   :  { %v3704_v51 = vadd.f32 %v3702_v59, %v3639_v42 }
 0x54e   :  { %v3769_v34 = vadd.f32 %v3767_v33, %v3704_v51 }
 0x54f   :  { %v3831_v52 = vpop.f32.mrf.mxu3 }
 0x550   :  { %v3832_v7 = vadd.f32 %v3831_v52, %v3811_v24 }
 0x552   :  { %v3834_v2 = vadd.f32 %v3832_v7, %v3769_v34 }
 0x554   :  { %v3839_v20 = vadd.f32 %v4710_v23, %v3834_v2 }
 0x556   :  { %v3840_v10 = vmax.f32 %v3839_v20, 0.0 }
 0x558   :  { %4706 = vmatmul.msk.f32.vlgmr.msrb.gmra.mxu3 %vm3860_vm5, %v3840_v10 }
 0x5db   :  { %v3881_v8 = vpop.f32.mrf.mxu3 }
 0x5dc   :  { %v3882_v57 = vadd.f32 %v4711_v21, %v3881_v8 }
 0x5de   :  { %v3884_v43 = vmax.f32 %v3882_v57, 0.0 }
 0x5e0   :  { %4708 = vmatmul.msk.f32.vlgmr.msra.gmra.mxu0 %vm2262_vm3, %v3884_v43 }
 0x65d   :  { %v3923_v17 = vpop.f32.mrf.mxu0 }
 0x65e   :  { %v3924_v1 = vadd.f32 %v4712_v28, %v3923_v17 }
 0x660   :  { %3926 = vmax.xlane.f32.xlu0 %v3924_v1 }
 0x6d3   :  { %v3927_v5 = vpop.xlane.xlu0 %3926 }
 0x6d4   :  { %v3928_v61 = vsub.f32 %v3924_v1, %v3927_v5 }
 0x6d6   :  { %v3929_v35 = vmul.f32 1.442695, %v3928_v61 }
 0x6d8   :  { %4713 = vpow2.f32 %v3929_v35 }
 0x6de   :  { %v4714_v18 = vpop.eup %4713 }
 0x6df   :  { %3931 = vadd.xlane.f32.xlu0 %v4714_v18 }
 0x752   :  { %v3932_v3 = vpop.xlane.xlu0 %3931 }
 0x753   :  { %4715 = vlog2.f32 %v3932_v3 }
 0x759   :  { %v4716_v62 = vpop.eup %4715 }
 0x75a   :  { %v3934_v4 = vmul.f32 0.6931472, %v4716_v62 }
 0x75c   :  { %v3935_v45 = vsub.f32 %v3928_v61, %v3934_v4 }
 0x75e   :  { %3936 = vst [vmem:[%s7751_s12] sm:$0xff] %v3935_v45 }

</bundles_post_ra>
